<compile_context>
chip_gen: v7x
topology: tpu7x:2x2x1
jax: 0.10.0
libtpu: 0.0.40
codegen_flags: <defaults>
</compile_context>

<pallas_src>
import functools

import numpy as np
import jax
import jax.numpy as jnp
from jax.experimental import pallas as pl
from jax.experimental.pallas import tpu as pltpu


# --------------------------------------------------------------------------
# Fused decoder kernel (one pallas_call, grid over T shards)
# --------------------------------------------------------------------------

def _decoder_fused_kernel(
    noise_ref, enc_ref, kron_ref, rep_n_ref, rep_nt_ref, mask_ref,
    ip1w_ref, ip1b_ref, ip2w_ref, ip2b_ref,
    wih_ref, bih_ref, whh_ref, bhh_ref, v2t_ref, v1t_ref, wmlp_ref, bmlp_ref,
    p1w_ref, p1b_ref, p2w_ref, p2b_ref,
    out_ref,
    *, n_layers, n_adj, order, hidden, t_sub):
    f32 = jnp.float32
    H = hidden

    def mm(a, b):
        return jnp.dot(a, b, preferred_element_type=f32)

    # ---- input projections: relu(relu(x @ W1 + b1) @ W2 + b2) ----
    x = noise_ref[...]                                              # (rows, out_dim)
    x = jnp.maximum(mm(x, ip1w_ref[...]) + ip1b_ref[...], 0.0)      # (rows, 256)
    x = jnp.maximum(mm(x, ip2w_ref[...]) + ip2b_ref[...], 0.0)      # (rows, R)

    for layer in range(n_layers):
        # ---- GRU cell, batched over all t (reference holds `state` fixed) ----
        state = enc_ref[layer]                                      # (BN, H)
        gh_small = mm(state, whh_ref[layer]) + bhh_ref[layer]       # (BN, 3H)
        # Tile to all time steps with sublane copies (no replication matmul).
        gh = jnp.concatenate([gh_small] * t_sub, axis=0)            # (rows, 3H)
        state_full = jnp.concatenate([state] * t_sub, axis=0)       # (rows, H)

        gx = mm(x, wih_ref[layer]) + bih_ref[layer]                 # (rows, 3H)
        rz = jax.nn.sigmoid(gx[:, :2 * H] + gh[:, :2 * H])          # one 2H-wide sigmoid
        r = rz[:, :H]
        z = rz[:, H:]
        n = jnp.tanh(gx[:, 2 * H:] + r * gh[:, 2 * H:])
        hid = jnp.tanh((1.0 - z) * n + z * state_full)              # (rows, H)

        # ---- adaptive adjacency (transposed): softmax(relu(v1 @ v2), axis=1)^T ----
        lt = jnp.maximum(mm(v2t_ref[layer], v1t_ref[layer]), 0.0)   # (N, N) = relu(v1@v2)^T
        e = jnp.exp(lt - jnp.max(lt, axis=0, keepdims=True))
        adp_t = e / jnp.sum(e, axis=0, keepdims=True)               # (N, N) = adp^T
        # kron(I_TB, adp^T) built in-kernel only for the adaptive support.
        m_adp = mm(mm(rep_n_ref[...], adp_t), rep_nt_ref[...]) * mask_ref[...]

        # ---- gwnet GCN: diffusion chunks, lane-concat, single K=224 MLP matmul ----
        chunks = [hid]
        for s in range(n_adj + 1):
            m = kron_ref[s] if s < n_adj else m_adp                 # (rows, rows)
            xk = hid
            for _ in range(order):
                xk = mm(m, xk)                                      # (rows, H)
                chunks.append(xk)
        hcat = jnp.concatenate(chunks, axis=1)                      # (rows, (order*(n_adj+1)+1)*H)
        # TODO(synk): F.dropout omitted (eval-mode / deterministic semantics).
        x = jnp.tanh(mm(hcat, wmlp_ref[layer]) + bmlp_ref[layer])   # (rows, R)

    # ---- output projections ----
    y = jnp.maximum(mm(x, p1w_ref[...]) + p1b_ref[...], 0.0)        # (rows, 256)
    y = mm(y, p2w_ref[...]) + p2b_ref[...]                          # (rows, out_dim)
    out_ref[...] = y.astype(out_ref.dtype)


# --------------------------------------------------------------------------
# Parameters (deterministic, synthetic), host-side packing & constants
# --------------------------------------------------------------------------

def init_params(key, *, num_node, rnn_unit, output_dim, n_adj, order=2):
    H = 2 * rnn_unit
    support_len = n_adj + 1
    c_in_mlp = (order * support_len + 1) * H
    keys = iter(jax.random.split(key, 32))

    def dense(k, din, dout, scale=0.05):
        kw, kb = jax.random.split(k)
        return (scale * jax.random.normal(kw, (din, dout), jnp.float32),
                scale * jax.random.normal(kb, (dout,), jnp.float32))

    params = {
        "ip1": dense(next(keys), output_dim, 256),      # input_projection
        "ip2": dense(next(keys), 256, rnn_unit),        # input_projection_2
        "p1": dense(next(keys), rnn_unit, 256),         # projection_layer
        "p2": dense(next(keys), 256, output_dim),       # projection_layer_2
        "cells": [],
    }
    for _ in range(2):                                   # two stgru layers (hardcoded)
        c = {}
        c["W_ih"], c["b_ih"] = dense(next(keys), rnn_unit, 3 * H)   # GRUCell weight_ih^T
        c["W_hh"], c["b_hh"] = dense(next(keys), H, 3 * H)          # GRUCell weight_hh^T
        c["nodevec1"] = jax.random.normal(next(keys), (num_node, 10), jnp.float32)
        c["nodevec2"] = jax.random.normal(next(keys), (10, num_node), jnp.float32)
        c["W_mlp"], c["b_mlp"] = dense(next(keys), c_in_mlp, rnn_unit)
        params["cells"].append(c)
    return params


def pack_params(params):
    """One-time host-side packing into kernel-ready stacked arrays."""
    cells = params["cells"]
    return {
        "ip1w": params["ip1"][0], "ip1b": params["ip1"][1].reshape(1, -1),
        "ip2w": params["ip2"][0], "ip2b": params["ip2"][1].reshape(1, -1),
        "p1w": params["p1"][0], "p1b": params["p1"][1].reshape(1, -1),
        "p2w": params["p2"][0], "p2b": params["p2"][1].reshape(1, -1),
        "wih": jnp.stack([c["W_ih"] for c in cells]),                    # (L, R, 3H)
        "bih": jnp.stack([c["b_ih"].reshape(1, -1) for c in cells]),     # (L, 1, 3H)
        "whh": jnp.stack([c["W_hh"] for c in cells]),                    # (L, H, 3H)
        "bhh": jnp.stack([c["b_hh"].reshape(1, -1) for c in cells]),     # (L, 1, 3H)
        "v2t": jnp.stack([jnp.transpose(c["nodevec2"]) for c in cells]), # (L, N, 10)
        "v1t": jnp.stack([jnp.transpose(c["nodevec1"]) for c in cells]), # (L, 10, N)
        "wmlp": jnp.stack([c["W_mlp"] for c in cells]),                  # (L, Cin, R) un-split
        "bmlp": jnp.stack([c["b_mlp"].reshape(1, -1) for c in cells]),   # (L, 1, R)
    }


def make_constants(t_sub, B, N, adj_list):
    """Per-T-shard constants, built once on the host.

    kron_static[s] = kron(I_{t_sub*B}, A_s^T) applies A_s^T to every (t, b)
    node block of a (t_sub*B*N, H) activation slab in one matmul.
    """
    TB = t_sub * B
    eye_tb = np.eye(TB, dtype=np.float32)
    rep_n = np.tile(np.eye(N, dtype=np.float32), (TB, 1))                  # (rows, N)
    mask = np.kron(eye_tb, np.ones((N, N), np.float32))                    # (rows, rows)
    kron_static = np.stack(
        [np.kron(eye_tb, np.asarray(a, np.float32).T) for a in adj_list],
        axis=0)                                                            # (n_adj, rows, rows)
    return {
        "rep_n": jnp.asarray(rep_n),
        "rep_nt": jnp.asarray(np.ascontiguousarray(rep_n.T)),
        "mask": jnp.asarray(mask),
        "kron_static": jnp.asarray(kron_static),
    }


# --------------------------------------------------------------------------
# Forward pass (single fused pallas_call, T-sharded grid)
# --------------------------------------------------------------------------

def decoder_forward(packed, consts, encoder_hidden_state, noise, *,
                    num_node, rnn_unit, output_dim, horrizon, n_adj,
                    order=2, n_layers=2, n_shards=2):
    T = horrizon
    BN = encoder_hidden_state.shape[1]
    assert T % n_shards == 0
    t_sub = T // n_shards
    rows_sub = t_sub * BN
    rows = T * BN
    H = 2 * rnn_unit

    kernel = functools.partial(
        _decoder_fused_kernel, n_layers=n_layers, n_adj=n_adj, order=order,
        hidden=H, t_sub=t_sub)

    def full(shape):
        nd = len(shape)
        return pl.BlockSpec(tuple(shape), lambda i, nd=nd: (0,) * nd)

    in_specs = [
        pl.BlockSpec((rows_sub, output_dim), lambda i: (i, 0)),      # noise (T-sharded)
        full(encoder_hidden_state.shape),                            # enc
        full((n_adj, rows_sub, rows_sub)),                           # kron_static
        full((rows_sub, num_node)),                                  # rep_n
        full((num_node, rows_sub)),                                  # rep_nt
        full((rows_sub, rows_sub)),                                  # mask
        full(packed["ip1w"].shape), full(packed["ip1b"].shape),
        full(packed["ip2w"].shape), full(packed["ip2b"].shape),
        full(packed["wih"].shape), full(packed["bih"].shape),
        full(packed["whh"].shape), full(packed["bhh"].shape),
        full(packed["v2t"].shape), full(packed["v1t"].shape),
        full(packed["wmlp"].shape), full(packed["bmlp"].shape),
        full(packed["p1w"].shape), full(packed["p1b"].shape),
        full(packed["p2w"].shape), full(packed["p2b"].shape),
    ]

    out = pl.pallas_call(
        kernel,
        grid=(n_shards,),
        in_specs=in_specs,
        out_specs=pl.BlockSpec((rows_sub, output_dim), lambda i: (i, 0)),
        out_shape=jax.ShapeDtypeStruct((rows, output_dim), jnp.float32),
        compiler_params=pltpu.CompilerParams(
            dimension_semantics=("parallel",)),
    )(noise.reshape(rows, output_dim), encoder_hidden_state,
      consts["kron_static"], consts["rep_n"], consts["rep_nt"], consts["mask"],
      packed["ip1w"], packed["ip1b"], packed["ip2w"], packed["ip2b"],
      packed["wih"], packed["bih"], packed["whh"], packed["bhh"],
      packed["v2t"], packed["v1t"], packed["wmlp"], packed["bmlp"],
      packed["p1w"], packed["p1b"], packed["p2w"], packed["p2b"])
    return out.reshape(T, BN, output_dim)


# --------------------------------------------------------------------------
# Pure-JAX reference (mirrors the PyTorch module) for correctness checking
# --------------------------------------------------------------------------

def decoder_forward_reference(params, adj_list, enc, noise, *,
                              num_node, rnn_unit, output_dim, horrizon, order=2):
    P = jax.lax.Precision.HIGHEST
    T = horrizon
    BN = enc.shape[1]
    B = BN // num_node
    H = 2 * rnn_unit

    x = noise                                                   # go symbol (zeros) + noise
    W, b = params["ip1"]; x = jax.nn.relu(jnp.dot(x, W, precision=P) + b)
    W, b = params["ip2"]; x = jax.nn.relu(jnp.dot(x, W, precision=P) + b)

    for layer in range(2):
        c = params["cells"][layer]
        state = enc[layer]
        hs = []
        for t in range(T):
            gx = jnp.dot(x[t], c["W_ih"], precision=P) + c["b_ih"]
            gh = jnp.dot(state, c["W_hh"], precision=P) + c["b_hh"]
            r = jax.nn.sigmoid(gx[:, :H] + gh[:, :H])
            z = jax.nn.sigmoid(gx[:, H:2 * H] + gh[:, H:2 * H])
            n = jnp.tanh(gx[:, 2 * H:] + r * gh[:, 2 * H:])
            hs.append(jnp.tanh((1.0 - z) * n + z * state))       # state NOT updated (as in ref)
        hidden = jnp.stack(hs)                                   # (T, BN, H)
        xg = hidden.reshape(T, B, num_node, H)
        adp = jax.nn.softmax(
            jax.nn.relu(jnp.dot(c["nodevec1"], c["nodevec2"], precision=P)), axis=1)
        support = list(adj_list) + [adp]
        out = [xg]
        for a in support:
            x1 = jnp.einsum("tbnf,nm->tbmf", xg, a, precision=P)
            out.append(x1)
            for _ in range(2, order + 1):
                x1 = jnp.einsum("tbnf,nm->tbmf", x1, a, precision=P)
                out.append(x1)
        h = jnp.concatenate(out, axis=3).reshape(T * B, num_node, -1)
        h = jnp.dot(h, c["W_mlp"], precision=P) + c["b_mlp"]
        x = jnp.tanh(h).reshape(T, BN, rnn_unit)

    W, b = params["p1"]; y = jax.nn.relu(jnp.dot(x, W, precision=P) + b)
    W, b = params["p2"]; y = jnp.dot(y, W, precision=P) + b
    return y


# --------------------------------------------------------------------------
# Driver
# --------------------------------------------------------------------------

if __name__ == "__main__":
    num_node = 8        # N
    rnn_unit = 16       # R  (GRU hidden size is 2R = 32)
    output_dim = 4
    horrizon = 6        # T
    batch = 2           # B
    n_adj = 2           # gcn support_len = n_adj + 1 = 3
    order = 2
    n_shards = 2        # T-split grid (exact: node mixing never crosses t)

    key = jax.random.PRNGKey(0)
    k_par, k_adj, k_enc, k_noise = jax.random.split(key, 4)

    params = init_params(k_par, num_node=num_node, rnn_unit=rnn_unit,
                         output_dim=output_dim, n_adj=n_adj, order=order)
    adj_list = [jax.nn.softmax(jax.random.normal(k, (num_node, num_node), jnp.float32),
                               axis=1)
                for k in jax.random.split(k_adj, n_adj)]
    encoder_hidden_state = jax.random.normal(
        k_enc, (2, batch * num_node, 2 * rnn_unit), jnp.float32)
    noise = 0.01 * jax.random.normal(
        k_noise, (horrizon, batch * num_node, output_dim), jnp.float32)

    # One-time host-side prep (outside jit): packed weights, per-shard
    # replication / mask / static-kron constants.
    packed = pack_params(params)
    consts = make_constants(horrizon // n_shards, batch, num_node, adj_list)

    fwd = jax.jit(functools.partial(
        decoder_forward, num_node=num_node, rnn_unit=rnn_unit,
        output_dim=output_dim, horrizon=horrizon, n_adj=n_adj, order=order,
        n_shards=n_shards))

    out = fwd(packed, consts, encoder_hidden_state, noise)
    jax.block_until_ready(out)

    assert out.shape == (horrizon, batch * num_node, output_dim)
    assert bool(jnp.all(jnp.isfinite(out)))

    ref = decoder_forward_reference(params, adj_list, encoder_hidden_state, noise,
                                    num_node=num_node, rnn_unit=rnn_unit,
                                    output_dim=output_dim, horrizon=horrizon,
                                    order=order)
    max_err = float(jnp.max(jnp.abs(out - ref)))
    assert max_err < 5e-3, f"mismatch vs pure-JAX reference: {max_err}"
    print("KERNEL_OK")
</pallas_src>

<mosaic_0001>
module attributes {stable_mosaic.version = 11 : i64} {
  func.func @_decoder_fused_kernel(%arg0: i32, %arg1: memref<48x4xf32, #tpu.memory_space<vmem>>, %arg2: memref<2x16x32xf32, #tpu.memory_space<vmem>>, %arg3: memref<2x48x48xf32, #tpu.memory_space<vmem>>, %arg4: memref<48x8xf32, #tpu.memory_space<vmem>>, %arg5: memref<8x48xf32, #tpu.memory_space<vmem>>, %arg6: memref<48x48xf32, #tpu.memory_space<vmem>>, %arg7: memref<4x256xf32, #tpu.memory_space<vmem>>, %arg8: memref<1x256xf32, #tpu.memory_space<vmem>>, %arg9: memref<256x16xf32, #tpu.memory_space<vmem>>, %arg10: memref<1x16xf32, #tpu.memory_space<vmem>>, %arg11: memref<2x16x96xf32, #tpu.memory_space<vmem>>, %arg12: memref<2x1x96xf32, #tpu.memory_space<vmem>>, %arg13: memref<2x32x96xf32, #tpu.memory_space<vmem>>, %arg14: memref<2x1x96xf32, #tpu.memory_space<vmem>>, %arg15: memref<2x8x10xf32, #tpu.memory_space<vmem>>, %arg16: memref<2x10x8xf32, #tpu.memory_space<vmem>>, %arg17: memref<2x224x16xf32, #tpu.memory_space<vmem>>, %arg18: memref<2x1x16xf32, #tpu.memory_space<vmem>>, %arg19: memref<16x256xf32, #tpu.memory_space<vmem>>, %arg20: memref<1x256xf32, #tpu.memory_space<vmem>>, %arg21: memref<256x4xf32, #tpu.memory_space<vmem>>, %arg22: memref<1x4xf32, #tpu.memory_space<vmem>>, %arg23: memref<48x4xf32, #tpu.memory_space<vmem>>) attributes {dimension_semantics = [#tpu.dimension_semantics<parallel>], iteration_bounds = array<i64: 2>, scalar_prefetch = 0 : i64, scratch_operands = 0 : i64, tpu.core_type = #tpu.core_type<tc>, window_params = [{transform_indices = @transform_0, window_bounds = array<i64: 48, 4>}, {pipeline_mode = #tpu.pipeline_mode<synchronous>, transform_indices = @transform_1, window_bounds = array<i64: 2, 16, 32>}, {pipeline_mode = #tpu.pipeline_mode<synchronous>, transform_indices = @transform_2, window_bounds = array<i64: 2, 48, 48>}, {pipeline_mode = #tpu.pipeline_mode<synchronous>, transform_indices = @transform_3, window_bounds = array<i64: 48, 8>}, {pipeline_mode = #tpu.pipeline_mode<synchronous>, transform_indices = @transform_4, window_bounds = array<i64: 8, 48>}, {pipeline_mode = #tpu.pipeline_mode<synchronous>, transform_indices = @transform_5, window_bounds = array<i64: 48, 48>}, {pipeline_mode = #tpu.pipeline_mode<synchronous>, transform_indices = @transform_6, window_bounds = array<i64: 4, 256>}, {pipeline_mode = #tpu.pipeline_mode<synchronous>, transform_indices = @transform_7, window_bounds = array<i64: 1, 256>}, {pipeline_mode = #tpu.pipeline_mode<synchronous>, transform_indices = @transform_8, window_bounds = array<i64: 256, 16>}, {pipeline_mode = #tpu.pipeline_mode<synchronous>, transform_indices = @transform_9, window_bounds = array<i64: 1, 16>}, {pipeline_mode = #tpu.pipeline_mode<synchronous>, transform_indices = @transform_10, window_bounds = array<i64: 2, 16, 96>}, {pipeline_mode = #tpu.pipeline_mode<synchronous>, transform_indices = @transform_11, window_bounds = array<i64: 2, 1, 96>}, {pipeline_mode = #tpu.pipeline_mode<synchronous>, transform_indices = @transform_12, window_bounds = array<i64: 2, 32, 96>}, {pipeline_mode = #tpu.pipeline_mode<synchronous>, transform_indices = @transform_13, window_bounds = array<i64: 2, 1, 96>}, {pipeline_mode = #tpu.pipeline_mode<synchronous>, transform_indices = @transform_14, window_bounds = array<i64: 2, 8, 10>}, {pipeline_mode = #tpu.pipeline_mode<synchronous>, transform_indices = @transform_15, window_bounds = array<i64: 2, 10, 8>}, {pipeline_mode = #tpu.pipeline_mode<synchronous>, transform_indices = @transform_16, window_bounds = array<i64: 2, 224, 16>}, {pipeline_mode = #tpu.pipeline_mode<synchronous>, transform_indices = @transform_17, window_bounds = array<i64: 2, 1, 16>}, {pipeline_mode = #tpu.pipeline_mode<synchronous>, transform_indices = @transform_18, window_bounds = array<i64: 16, 256>}, {pipeline_mode = #tpu.pipeline_mode<synchronous>, transform_indices = @transform_19, window_bounds = array<i64: 1, 256>}, {pipeline_mode = #tpu.pipeline_mode<synchronous>, transform_indices = @transform_20, window_bounds = array<i64: 256, 4>}, {pipeline_mode = #tpu.pipeline_mode<synchronous>, transform_indices = @transform_21, window_bounds = array<i64: 1, 4>}, {transform_indices = @transform_22, window_bounds = array<i64: 48, 4>}]} {
    %c0 = arith.constant 0 : index
    %c0_0 = arith.constant 0 : index
    %0 = vector.load %arg1[%c0, %c0_0] : memref<48x4xf32, #tpu.memory_space<vmem>>, vector<48x4xf32>
    %c0_1 = arith.constant 0 : index
    %c0_2 = arith.constant 0 : index
    %1 = vector.load %arg7[%c0_1, %c0_2] : memref<4x256xf32, #tpu.memory_space<vmem>>, vector<4x256xf32>
    %cst = arith.constant dense<0.000000e+00> : vector<48x256xf32>
    %2 = tpu.matmul %0, %1, %cst {dimension_numbers = #tpu.dot_dimension_numbers<[1], [0], [0], [1], [0, 0, 1, 1], [], []>} : vector<48x4xf32>, vector<4x256xf32>, vector<48x256xf32> -> vector<48x256xf32>
    %c0_3 = arith.constant 0 : index
    %c0_4 = arith.constant 0 : index
    %3 = vector.load %arg8[%c0_3, %c0_4] : memref<1x256xf32, #tpu.memory_space<vmem>>, vector<1x256xf32>
    %4 = vector.broadcast %3 : vector<1x256xf32> to vector<48x256xf32>
    %5 = arith.addf %2, %4 : vector<48x256xf32>
    %cst_5 = arith.constant 0.000000e+00 : f32
    %6 = vector.broadcast %cst_5 : f32 to vector<48x256xf32>
    %7 = arith.maximumf %5, %6 : vector<48x256xf32>
    %c0_6 = arith.constant 0 : index
    %c0_7 = arith.constant 0 : index
    %8 = vector.load %arg9[%c0_6, %c0_7] : memref<256x16xf32, #tpu.memory_space<vmem>>, vector<256x16xf32>
    %cst_8 = arith.constant dense<0.000000e+00> : vector<48x16xf32>
    %9 = tpu.matmul %7, %8, %cst_8 {dimension_numbers = #tpu.dot_dimension_numbers<[1], [0], [0], [1], [0, 0, 1, 1], [], []>} : vector<48x256xf32>, vector<256x16xf32>, vector<48x16xf32> -> vector<48x16xf32>
    %c0_9 = arith.constant 0 : index
    %c0_10 = arith.constant 0 : index
    %10 = vector.load %arg10[%c0_9, %c0_10] : memref<1x16xf32, #tpu.memory_space<vmem>>, vector<1x16xf32>
    %11 = vector.broadcast %10 : vector<1x16xf32> to vector<48x16xf32>
    %12 = arith.addf %9, %11 : vector<48x16xf32>
    %cst_11 = arith.constant 0.000000e+00 : f32
    %13 = vector.broadcast %cst_11 : f32 to vector<48x16xf32>
    %14 = arith.maximumf %12, %13 : vector<48x16xf32>
    %c0_12 = arith.constant 0 : index
    %c0_13 = arith.constant 0 : index
    %c0_14 = arith.constant 0 : index
    %15 = vector.load %arg2[%c0_12, %c0_13, %c0_14] : memref<2x16x32xf32, #tpu.memory_space<vmem>>, vector<1x16x32xf32>
    %16 = vector.shape_cast %15 : vector<1x16x32xf32> to vector<16x32xf32>
    %c0_15 = arith.constant 0 : index
    %c0_16 = arith.constant 0 : index
    %c0_17 = arith.constant 0 : index
    %17 = vector.load %arg13[%c0_15, %c0_16, %c0_17] : memref<2x32x96xf32, #tpu.memory_space<vmem>>, vector<1x32x96xf32>
    %18 = vector.shape_cast %17 : vector<1x32x96xf32> to vector<32x96xf32>
    %cst_18 = arith.constant dense<0.000000e+00> : vector<16x96xf32>
    %19 = tpu.matmul %16, %18, %cst_18 {dimension_numbers = #tpu.dot_dimension_numbers<[1], [0], [0], [1], [0, 0, 1, 1], [], []>} : vector<16x32xf32>, vector<32x96xf32>, vector<16x96xf32> -> vector<16x96xf32>
    %c0_19 = arith.constant 0 : index
    %c0_20 = arith.constant 0 : index
    %c0_21 = arith.constant 0 : index
    %20 = vector.load %arg14[%c0_19, %c0_20, %c0_21] : memref<2x1x96xf32, #tpu.memory_space<vmem>>, vector<1x1x96xf32>
    %21 = vector.shape_cast %20 : vector<1x1x96xf32> to vector<1x96xf32>
    %22 = vector.broadcast %21 : vector<1x96xf32> to vector<16x96xf32>
    %23 = arith.addf %19, %22 : vector<16x96xf32>
    %24 = tpu.concatenate %23, %23, %23 in 0 : vector<16x96xf32>, vector<16x96xf32>, vector<16x96xf32> -> vector<48x96xf32>
    %25 = tpu.concatenate %16, %16, %16 in 0 : vector<16x32xf32>, vector<16x32xf32>, vector<16x32xf32> -> vector<48x32xf32>
    %c0_22 = arith.constant 0 : index
    %c0_23 = arith.constant 0 : index
    %c0_24 = arith.constant 0 : index
    %26 = vector.load %arg11[%c0_22, %c0_23, %c0_24] : memref<2x16x96xf32, #tpu.memory_space<vmem>>, vector<1x16x96xf32>
    %27 = vector.shape_cast %26 : vector<1x16x96xf32> to vector<16x96xf32>
    %cst_25 = arith.constant dense<0.000000e+00> : vector<48x96xf32>
    %28 = tpu.matmul %14, %27, %cst_25 {dimension_numbers = #tpu.dot_dimension_numbers<[1], [0], [0], [1], [0, 0, 1, 1], [], []>} : vector<48x16xf32>, vector<16x96xf32>, vector<48x96xf32> -> vector<48x96xf32>
    %c0_26 = arith.constant 0 : index
    %c0_27 = arith.constant 0 : index
    %c0_28 = arith.constant 0 : index
    %29 = vector.load %arg12[%c0_26, %c0_27, %c0_28] : memref<2x1x96xf32, #tpu.memory_space<vmem>>, vector<1x1x96xf32>
    %30 = vector.shape_cast %29 : vector<1x1x96xf32> to vector<1x96xf32>
    %31 = vector.broadcast %30 : vector<1x96xf32> to vector<48x96xf32>
    %32 = arith.addf %28, %31 : vector<48x96xf32>
    %33 = vector.extract_strided_slice %32 {offsets = [0, 0], sizes = [48, 64], strides = [1, 1]} : vector<48x96xf32> to vector<48x64xf32>
    %34 = vector.extract_strided_slice %24 {offsets = [0, 0], sizes = [48, 64], strides = [1, 1]} : vector<48x96xf32> to vector<48x64xf32>
    %35 = arith.addf %33, %34 : vector<48x64xf32>
    %36 = arith.negf %35 : vector<48x64xf32>
    %37 = math.exp %36 : vector<48x64xf32>
    %cst_29 = arith.constant 1.000000e+00 : f32
    %38 = vector.broadcast %cst_29 : f32 to vector<48x64xf32>
    %39 = arith.addf %38, %37 : vector<48x64xf32>
    %40 = arith.divf %38, %39 : vector<48x64xf32>
    %41 = vector.extract_strided_slice %40 {offsets = [0, 0], sizes = [48, 32], strides = [1, 1]} : vector<48x64xf32> to vector<48x32xf32>
    %42 = vector.extract_strided_slice %40 {offsets = [0, 32], sizes = [48, 32], strides = [1, 1]} : vector<48x64xf32> to vector<48x32xf32>
    %43 = vector.extract_strided_slice %32 {offsets = [0, 64], sizes = [48, 32], strides = [1, 1]} : vector<48x96xf32> to vector<48x32xf32>
    %44 = vector.extract_strided_slice %24 {offsets = [0, 64], sizes = [48, 32], strides = [1, 1]} : vector<48x96xf32> to vector<48x32xf32>
    %45 = arith.mulf %41, %44 : vector<48x32xf32>
    %46 = arith.addf %43, %45 : vector<48x32xf32>
    %47 = math.tanh %46 : vector<48x32xf32>
    %cst_30 = arith.constant 1.000000e+00 : f32
    %48 = vector.broadcast %cst_30 : f32 to vector<48x32xf32>
    %49 = arith.subf %48, %42 : vector<48x32xf32>
    %50 = arith.mulf %49, %47 : vector<48x32xf32>
    %51 = arith.mulf %42, %25 : vector<48x32xf32>
    %52 = arith.addf %50, %51 : vector<48x32xf32>
    %53 = math.tanh %52 : vector<48x32xf32>
    %c0_31 = arith.constant 0 : index
    %c0_32 = arith.constant 0 : index
    %c0_33 = arith.constant 0 : index
    %54 = vector.load %arg15[%c0_31, %c0_32, %c0_33] : memref<2x8x10xf32, #tpu.memory_space<vmem>>, vector<1x8x10xf32>
    %55 = vector.shape_cast %54 : vector<1x8x10xf32> to vector<8x10xf32>
    %c0_34 = arith.constant 0 : index
    %c0_35 = arith.constant 0 : index
    %c0_36 = arith.constant 0 : index
    %56 = vector.load %arg16[%c0_34, %c0_35, %c0_36] : memref<2x10x8xf32, #tpu.memory_space<vmem>>, vector<1x10x8xf32>
    %57 = vector.shape_cast %56 : vector<1x10x8xf32> to vector<10x8xf32>
    %cst_37 = arith.constant dense<0.000000e+00> : vector<8x8xf32>
    %58 = tpu.matmul %55, %57, %cst_37 {dimension_numbers = #tpu.dot_dimension_numbers<[1], [0], [0], [1], [0, 0, 1, 1], [], []>} : vector<8x10xf32>, vector<10x8xf32>, vector<8x8xf32> -> vector<8x8xf32>
    %cst_38 = arith.constant 0.000000e+00 : f32
    %59 = vector.broadcast %cst_38 : f32 to vector<8x8xf32>
    %60 = arith.maximumf %58, %59 : vector<8x8xf32>
    %cst_39 = arith.constant dense<0xFF800000> : vector<8xf32>
    %61 = vector.multi_reduction <maximumf>, %60, %cst_39 [0] : vector<8x8xf32> to vector<8xf32>
    %62 = vector.shape_cast %61 : vector<8xf32> to vector<1x8xf32>
    %63 = vector.broadcast %62 : vector<1x8xf32> to vector<8x8xf32>
    %64 = arith.subf %60, %63 : vector<8x8xf32>
    %65 = math.exp %64 : vector<8x8xf32>
    %cst_40 = arith.constant dense<0.000000e+00> : vector<8xf32>
    %66 = vector.multi_reduction <add>, %65, %cst_40 [0] : vector<8x8xf32> to vector<8xf32>
    %67 = vector.shape_cast %66 : vector<8xf32> to vector<1x8xf32>
    %68 = vector.broadcast %67 : vector<1x8xf32> to vector<8x8xf32>
    %69 = arith.divf %65, %68 : vector<8x8xf32>
    %c0_41 = arith.constant 0 : index
    %c0_42 = arith.constant 0 : index
    %70 = vector.load %arg4[%c0_41, %c0_42] : memref<48x8xf32, #tpu.memory_space<vmem>>, vector<48x8xf32>
    %cst_43 = arith.constant dense<0.000000e+00> : vector<48x8xf32>
    %71 = tpu.matmul %70, %69, %cst_43 {dimension_numbers = #tpu.dot_dimension_numbers<[1], [0], [0], [1], [0, 0, 1, 1], [], []>} : vector<48x8xf32>, vector<8x8xf32>, vector<48x8xf32> -> vector<48x8xf32>
    %c0_44 = arith.constant 0 : index
    %c0_45 = arith.constant 0 : index
    %72 = vector.load %arg5[%c0_44, %c0_45] : memref<8x48xf32, #tpu.memory_space<vmem>>, vector<8x48xf32>
    %cst_46 = arith.constant dense<0.000000e+00> : vector<48x48xf32>
    %73 = tpu.matmul %71, %72, %cst_46 {dimension_numbers = #tpu.dot_dimension_numbers<[1], [0], [0], [1], [0, 0, 1, 1], [], []>} : vector<48x8xf32>, vector<8x48xf32>, vector<48x48xf32> -> vector<48x48xf32>
    %c0_47 = arith.constant 0 : index
    %c0_48 = arith.constant 0 : index
    %74 = vector.load %arg6[%c0_47, %c0_48] : memref<48x48xf32, #tpu.memory_space<vmem>>, vector<48x48xf32>
    %75 = arith.mulf %73, %74 : vector<48x48xf32>
    %c0_49 = arith.constant 0 : index
    %c0_50 = arith.constant 0 : index
    %c0_51 = arith.constant 0 : index
    %76 = vector.load %arg3[%c0_49, %c0_50, %c0_51] : memref<2x48x48xf32, #tpu.memory_space<vmem>>, vector<1x48x48xf32>
    %77 = vector.shape_cast %76 : vector<1x48x48xf32> to vector<48x48xf32>
    %cst_52 = arith.constant dense<0.000000e+00> : vector<48x32xf32>
    %78 = tpu.matmul %77, %53, %cst_52 {dimension_numbers = #tpu.dot_dimension_numbers<[1], [0], [0], [1], [0, 0, 1, 1], [], []>} : vector<48x48xf32>, vector<48x32xf32>, vector<48x32xf32> -> vector<48x32xf32>
    %cst_53 = arith.constant dense<0.000000e+00> : vector<48x32xf32>
    %79 = tpu.matmul %77, %78, %cst_53 {dimension_numbers = #tpu.dot_dimension_numbers<[1], [0], [0], [1], [0, 0, 1, 1], [], []>} : vector<48x48xf32>, vector<48x32xf32>, vector<48x32xf32> -> vector<48x32xf32>
    %c1 = arith.constant 1 : index
    %c0_54 = arith.constant 0 : index
    %c0_55 = arith.constant 0 : index
    %80 = vector.load %arg3[%c1, %c0_54, %c0_55] : memref<2x48x48xf32, #tpu.memory_space<vmem>>, vector<1x48x48xf32>
    %81 = vector.shape_cast %80 : vector<1x48x48xf32> to vector<48x48xf32>
    %cst_56 = arith.constant dense<0.000000e+00> : vector<48x32xf32>
    %82 = tpu.matmul %81, %53, %cst_56 {dimension_numbers = #tpu.dot_dimension_numbers<[1], [0], [0], [1], [0, 0, 1, 1], [], []>} : vector<48x48xf32>, vector<48x32xf32>, vector<48x32xf32> -> vector<48x32xf32>
    %cst_57 = arith.constant dense<0.000000e+00> : vector<48x32xf32>
    %83 = tpu.matmul %81, %82, %cst_57 {dimension_numbers = #tpu.dot_dimension_numbers<[1], [0], [0], [1], [0, 0, 1, 1], [], []>} : vector<48x48xf32>, vector<48x32xf32>, vector<48x32xf32> -> vector<48x32xf32>
    %cst_58 = arith.constant dense<0.000000e+00> : vector<48x32xf32>
    %84 = tpu.matmul %75, %53, %cst_58 {dimension_numbers = #tpu.dot_dimension_numbers<[1], [0], [0], [1], [0, 0, 1, 1], [], []>} : vector<48x48xf32>, vector<48x32xf32>, vector<48x32xf32> -> vector<48x32xf32>
    %cst_59 = arith.constant dense<0.000000e+00> : vector<48x32xf32>
    %85 = tpu.matmul %75, %84, %cst_59 {dimension_numbers = #tpu.dot_dimension_numbers<[1], [0], [0], [1], [0, 0, 1, 1], [], []>} : vector<48x48xf32>, vector<48x32xf32>, vector<48x32xf32> -> vector<48x32xf32>
    %86 = tpu.concatenate %53, %78, %79, %82, %83, %84, %85 in 1 : vector<48x32xf32>, vector<48x32xf32>, vector<48x32xf32>, vector<48x32xf32>, vector<48x32xf32>, vector<48x32xf32>, vector<48x32xf32> -> vector<48x224xf32>
    %c0_60 = arith.constant 0 : index
    %c0_61 = arith.constant 0 : index
    %c0_62 = arith.constant 0 : index
    %87 = vector.load %arg17[%c0_60, %c0_61, %c0_62] : memref<2x224x16xf32, #tpu.memory_space<vmem>>, vector<1x224x16xf32>
    %88 = vector.shape_cast %87 : vector<1x224x16xf32> to vector<224x16xf32>
    %cst_63 = arith.constant dense<0.000000e+00> : vector<48x16xf32>
    %89 = tpu.matmul %86, %88, %cst_63 {dimension_numbers = #tpu.dot_dimension_numbers<[1], [0], [0], [1], [0, 0, 1, 1], [], []>} : vector<48x224xf32>, vector<224x16xf32>, vector<48x16xf32> -> vector<48x16xf32>
    %c0_64 = arith.constant 0 : index
    %c0_65 = arith.constant 0 : index
    %c0_66 = arith.constant 0 : index
    %90 = vector.load %arg18[%c0_64, %c0_65, %c0_66] : memref<2x1x16xf32, #tpu.memory_space<vmem>>, vector<1x1x16xf32>
    %91 = vector.shape_cast %90 : vector<1x1x16xf32> to vector<1x16xf32>
    %92 = vector.broadcast %91 : vector<1x16xf32> to vector<48x16xf32>
    %93 = arith.addf %89, %92 : vector<48x16xf32>
    %94 = math.tanh %93 : vector<48x16xf32>
    %c1_67 = arith.constant 1 : index
    %c0_68 = arith.constant 0 : index
    %c0_69 = arith.constant 0 : index
    %95 = vector.load %arg2[%c1_67, %c0_68, %c0_69] : memref<2x16x32xf32, #tpu.memory_space<vmem>>, vector<1x16x32xf32>
    %96 = vector.shape_cast %95 : vector<1x16x32xf32> to vector<16x32xf32>
    %c1_70 = arith.constant 1 : index
    %c0_71 = arith.constant 0 : index
    %c0_72 = arith.constant 0 : index
    %97 = vector.load %arg13[%c1_70, %c0_71, %c0_72] : memref<2x32x96xf32, #tpu.memory_space<vmem>>, vector<1x32x96xf32>
    %98 = vector.shape_cast %97 : vector<1x32x96xf32> to vector<32x96xf32>
    %cst_73 = arith.constant dense<0.000000e+00> : vector<16x96xf32>
    %99 = tpu.matmul %96, %98, %cst_73 {dimension_numbers = #tpu.dot_dimension_numbers<[1], [0], [0], [1], [0, 0, 1, 1], [], []>} : vector<16x32xf32>, vector<32x96xf32>, vector<16x96xf32> -> vector<16x96xf32>
    %c1_74 = arith.constant 1 : index
    %c0_75 = arith.constant 0 : index
    %c0_76 = arith.constant 0 : index
    %100 = vector.load %arg14[%c1_74, %c0_75, %c0_76] : memref<2x1x96xf32, #tpu.memory_space<vmem>>, vector<1x1x96xf32>
    %101 = vector.shape_cast %100 : vector<1x1x96xf32> to vector<1x96xf32>
    %102 = vector.broadcast %101 : vector<1x96xf32> to vector<16x96xf32>
    %103 = arith.addf %99, %102 : vector<16x96xf32>
    %104 = tpu.concatenate %103, %103, %103 in 0 : vector<16x96xf32>, vector<16x96xf32>, vector<16x96xf32> -> vector<48x96xf32>
    %105 = tpu.concatenate %96, %96, %96 in 0 : vector<16x32xf32>, vector<16x32xf32>, vector<16x32xf32> -> vector<48x32xf32>
    %c1_77 = arith.constant 1 : index
    %c0_78 = arith.constant 0 : index
    %c0_79 = arith.constant 0 : index
    %106 = vector.load %arg11[%c1_77, %c0_78, %c0_79] : memref<2x16x96xf32, #tpu.memory_space<vmem>>, vector<1x16x96xf32>
    %107 = vector.shape_cast %106 : vector<1x16x96xf32> to vector<16x96xf32>
    %cst_80 = arith.constant dense<0.000000e+00> : vector<48x96xf32>
    %108 = tpu.matmul %94, %107, %cst_80 {dimension_numbers = #tpu.dot_dimension_numbers<[1], [0], [0], [1], [0, 0, 1, 1], [], []>} : vector<48x16xf32>, vector<16x96xf32>, vector<48x96xf32> -> vector<48x96xf32>
    %c1_81 = arith.constant 1 : index
    %c0_82 = arith.constant 0 : index
    %c0_83 = arith.constant 0 : index
    %109 = vector.load %arg12[%c1_81, %c0_82, %c0_83] : memref<2x1x96xf32, #tpu.memory_space<vmem>>, vector<1x1x96xf32>
    %110 = vector.shape_cast %109 : vector<1x1x96xf32> to vector<1x96xf32>
    %111 = vector.broadcast %110 : vector<1x96xf32> to vector<48x96xf32>
    %112 = arith.addf %108, %111 : vector<48x96xf32>
    %113 = vector.extract_strided_slice %112 {offsets = [0, 0], sizes = [48, 64], strides = [1, 1]} : vector<48x96xf32> to vector<48x64xf32>
    %114 = vector.extract_strided_slice %104 {offsets = [0, 0], sizes = [48, 64], strides = [1, 1]} : vector<48x96xf32> to vector<48x64xf32>
    %115 = arith.addf %113, %114 : vector<48x64xf32>
    %116 = arith.negf %115 : vector<48x64xf32>
    %117 = math.exp %116 : vector<48x64xf32>
    %cst_84 = arith.constant 1.000000e+00 : f32
    %118 = vector.broadcast %cst_84 : f32 to vector<48x64xf32>
    %119 = arith.addf %118, %117 : vector<48x64xf32>
    %120 = arith.divf %118, %119 : vector<48x64xf32>
    %121 = vector.extract_strided_slice %120 {offsets = [0, 0], sizes = [48, 32], strides = [1, 1]} : vector<48x64xf32> to vector<48x32xf32>
    %122 = vector.extract_strided_slice %120 {offsets = [0, 32], sizes = [48, 32], strides = [1, 1]} : vector<48x64xf32> to vector<48x32xf32>
    %123 = vector.extract_strided_slice %112 {offsets = [0, 64], sizes = [48, 32], strides = [1, 1]} : vector<48x96xf32> to vector<48x32xf32>
    %124 = vector.extract_strided_slice %104 {offsets = [0, 64], sizes = [48, 32], strides = [1, 1]} : vector<48x96xf32> to vector<48x32xf32>
    %125 = arith.mulf %121, %124 : vector<48x32xf32>
    %126 = arith.addf %123, %125 : vector<48x32xf32>
    %127 = math.tanh %126 : vector<48x32xf32>
    %cst_85 = arith.constant 1.000000e+00 : f32
    %128 = vector.broadcast %cst_85 : f32 to vector<48x32xf32>
    %129 = arith.subf %128, %122 : vector<48x32xf32>
    %130 = arith.mulf %129, %127 : vector<48x32xf32>
    %131 = arith.mulf %122, %105 : vector<48x32xf32>
    %132 = arith.addf %130, %131 : vector<48x32xf32>
    %133 = math.tanh %132 : vector<48x32xf32>
    %c1_86 = arith.constant 1 : index
    %c0_87 = arith.constant 0 : index
    %c0_88 = arith.constant 0 : index
    %134 = vector.load %arg15[%c1_86, %c0_87, %c0_88] : memref<2x8x10xf32, #tpu.memory_space<vmem>>, vector<1x8x10xf32>
    %135 = vector.shape_cast %134 : vector<1x8x10xf32> to vector<8x10xf32>
    %c1_89 = arith.constant 1 : index
    %c0_90 = arith.constant 0 : index
    %c0_91 = arith.constant 0 : index
    %136 = vector.load %arg16[%c1_89, %c0_90, %c0_91] : memref<2x10x8xf32, #tpu.memory_space<vmem>>, vector<1x10x8xf32>
    %137 = vector.shape_cast %136 : vector<1x10x8xf32> to vector<10x8xf32>
    %cst_92 = arith.constant dense<0.000000e+00> : vector<8x8xf32>
    %138 = tpu.matmul %135, %137, %cst_92 {dimension_numbers = #tpu.dot_dimension_numbers<[1], [0], [0], [1], [0, 0, 1, 1], [], []>} : vector<8x10xf32>, vector<10x8xf32>, vector<8x8xf32> -> vector<8x8xf32>
    %cst_93 = arith.constant 0.000000e+00 : f32
    %139 = vector.broadcast %cst_93 : f32 to vector<8x8xf32>
    %140 = arith.maximumf %138, %139 : vector<8x8xf32>
    %cst_94 = arith.constant dense<0xFF800000> : vector<8xf32>
    %141 = vector.multi_reduction <maximumf>, %140, %cst_94 [0] : vector<8x8xf32> to vector<8xf32>
    %142 = vector.shape_cast %141 : vector<8xf32> to vector<1x8xf32>
    %143 = vector.broadcast %142 : vector<1x8xf32> to vector<8x8xf32>
    %144 = arith.subf %140, %143 : vector<8x8xf32>
    %145 = math.exp %144 : vector<8x8xf32>
    %cst_95 = arith.constant dense<0.000000e+00> : vector<8xf32>
    %146 = vector.multi_reduction <add>, %145, %cst_95 [0] : vector<8x8xf32> to vector<8xf32>
    %147 = vector.shape_cast %146 : vector<8xf32> to vector<1x8xf32>
    %148 = vector.broadcast %147 : vector<1x8xf32> to vector<8x8xf32>
    %149 = arith.divf %145, %148 : vector<8x8xf32>
    %c0_96 = arith.constant 0 : index
    %c0_97 = arith.constant 0 : index
    %150 = vector.load %arg4[%c0_96, %c0_97] : memref<48x8xf32, #tpu.memory_space<vmem>>, vector<48x8xf32>
    %cst_98 = arith.constant dense<0.000000e+00> : vector<48x8xf32>
    %151 = tpu.matmul %150, %149, %cst_98 {dimension_numbers = #tpu.dot_dimension_numbers<[1], [0], [0], [1], [0, 0, 1, 1], [], []>} : vector<48x8xf32>, vector<8x8xf32>, vector<48x8xf32> -> vector<48x8xf32>
    %c0_99 = arith.constant 0 : index
    %c0_100 = arith.constant 0 : index
    %152 = vector.load %arg5[%c0_99, %c0_100] : memref<8x48xf32, #tpu.memory_space<vmem>>, vector<8x48xf32>
    %cst_101 = arith.constant dense<0.000000e+00> : vector<48x48xf32>
    %153 = tpu.matmul %151, %152, %cst_101 {dimension_numbers = #tpu.dot_dimension_numbers<[1], [0], [0], [1], [0, 0, 1, 1], [], []>} : vector<48x8xf32>, vector<8x48xf32>, vector<48x48xf32> -> vector<48x48xf32>
    %c0_102 = arith.constant 0 : index
    %c0_103 = arith.constant 0 : index
    %154 = vector.load %arg6[%c0_102, %c0_103] : memref<48x48xf32, #tpu.memory_space<vmem>>, vector<48x48xf32>
    %155 = arith.mulf %153, %154 : vector<48x48xf32>
    %c0_104 = arith.constant 0 : index
    %c0_105 = arith.constant 0 : index
    %c0_106 = arith.constant 0 : index
    %156 = vector.load %arg3[%c0_104, %c0_105, %c0_106] : memref<2x48x48xf32, #tpu.memory_space<vmem>>, vector<1x48x48xf32>
    %157 = vector.shape_cast %156 : vector<1x48x48xf32> to vector<48x48xf32>
    %cst_107 = arith.constant dense<0.000000e+00> : vector<48x32xf32>
    %158 = tpu.matmul %157, %133, %cst_107 {dimension_numbers = #tpu.dot_dimension_numbers<[1], [0], [0], [1], [0, 0, 1, 1], [], []>} : vector<48x48xf32>, vector<48x32xf32>, vector<48x32xf32> -> vector<48x32xf32>
    %cst_108 = arith.constant dense<0.000000e+00> : vector<48x32xf32>
    %159 = tpu.matmul %157, %158, %cst_108 {dimension_numbers = #tpu.dot_dimension_numbers<[1], [0], [0], [1], [0, 0, 1, 1], [], []>} : vector<48x48xf32>, vector<48x32xf32>, vector<48x32xf32> -> vector<48x32xf32>
    %c1_109 = arith.constant 1 : index
    %c0_110 = arith.constant 0 : index
    %c0_111 = arith.constant 0 : index
    %160 = vector.load %arg3[%c1_109, %c0_110, %c0_111] : memref<2x48x48xf32, #tpu.memory_space<vmem>>, vector<1x48x48xf32>
    %161 = vector.shape_cast %160 : vector<1x48x48xf32> to vector<48x48xf32>
    %cst_112 = arith.constant dense<0.000000e+00> : vector<48x32xf32>
    %162 = tpu.matmul %161, %133, %cst_112 {dimension_numbers = #tpu.dot_dimension_numbers<[1], [0], [0], [1], [0, 0, 1, 1], [], []>} : vector<48x48xf32>, vector<48x32xf32>, vector<48x32xf32> -> vector<48x32xf32>
    %cst_113 = arith.constant dense<0.000000e+00> : vector<48x32xf32>
    %163 = tpu.matmul %161, %162, %cst_113 {dimension_numbers = #tpu.dot_dimension_numbers<[1], [0], [0], [1], [0, 0, 1, 1], [], []>} : vector<48x48xf32>, vector<48x32xf32>, vector<48x32xf32> -> vector<48x32xf32>
    %cst_114 = arith.constant dense<0.000000e+00> : vector<48x32xf32>
    %164 = tpu.matmul %155, %133, %cst_114 {dimension_numbers = #tpu.dot_dimension_numbers<[1], [0], [0], [1], [0, 0, 1, 1], [], []>} : vector<48x48xf32>, vector<48x32xf32>, vector<48x32xf32> -> vector<48x32xf32>
    %cst_115 = arith.constant dense<0.000000e+00> : vector<48x32xf32>
    %165 = tpu.matmul %155, %164, %cst_115 {dimension_numbers = #tpu.dot_dimension_numbers<[1], [0], [0], [1], [0, 0, 1, 1], [], []>} : vector<48x48xf32>, vector<48x32xf32>, vector<48x32xf32> -> vector<48x32xf32>
    %166 = tpu.concatenate %133, %158, %159, %162, %163, %164, %165 in 1 : vector<48x32xf32>, vector<48x32xf32>, vector<48x32xf32>, vector<48x32xf32>, vector<48x32xf32>, vector<48x32xf32>, vector<48x32xf32> -> vector<48x224xf32>
    %c1_116 = arith.constant 1 : index
    %c0_117 = arith.constant 0 : index
    %c0_118 = arith.constant 0 : index
    %167 = vector.load %arg17[%c1_116, %c0_117, %c0_118] : memref<2x224x16xf32, #tpu.memory_space<vmem>>, vector<1x224x16xf32>
    %168 = vector.shape_cast %167 : vector<1x224x16xf32> to vector<224x16xf32>
    %cst_119 = arith.constant dense<0.000000e+00> : vector<48x16xf32>
    %169 = tpu.matmul %166, %168, %cst_119 {dimension_numbers = #tpu.dot_dimension_numbers<[1], [0], [0], [1], [0, 0, 1, 1], [], []>} : vector<48x224xf32>, vector<224x16xf32>, vector<48x16xf32> -> vector<48x16xf32>
    %c1_120 = arith.constant 1 : index
    %c0_121 = arith.constant 0 : index
    %c0_122 = arith.constant 0 : index
    %170 = vector.load %arg18[%c1_120, %c0_121, %c0_122] : memref<2x1x16xf32, #tpu.memory_space<vmem>>, vector<1x1x16xf32>
    %171 = vector.shape_cast %170 : vector<1x1x16xf32> to vector<1x16xf32>
    %172 = vector.broadcast %171 : vector<1x16xf32> to vector<48x16xf32>
    %173 = arith.addf %169, %172 : vector<48x16xf32>
    %174 = math.tanh %173 : vector<48x16xf32>
    %c0_123 = arith.constant 0 : index
    %c0_124 = arith.constant 0 : index
    %175 = vector.load %arg19[%c0_123, %c0_124] : memref<16x256xf32, #tpu.memory_space<vmem>>, vector<16x256xf32>
    %cst_125 = arith.constant dense<0.000000e+00> : vector<48x256xf32>
    %176 = tpu.matmul %174, %175, %cst_125 {dimension_numbers = #tpu.dot_dimension_numbers<[1], [0], [0], [1], [0, 0, 1, 1], [], []>} : vector<48x16xf32>, vector<16x256xf32>, vector<48x256xf32> -> vector<48x256xf32>
    %c0_126 = arith.constant 0 : index
    %c0_127 = arith.constant 0 : index
    %177 = vector.load %arg20[%c0_126, %c0_127] : memref<1x256xf32, #tpu.memory_space<vmem>>, vector<1x256xf32>
    %178 = vector.broadcast %177 : vector<1x256xf32> to vector<48x256xf32>
    %179 = arith.addf %176, %178 : vector<48x256xf32>
    %cst_128 = arith.constant 0.000000e+00 : f32
    %180 = vector.broadcast %cst_128 : f32 to vector<48x256xf32>
    %181 = arith.maximumf %179, %180 : vector<48x256xf32>
    %c0_129 = arith.constant 0 : index
    %c0_130 = arith.constant 0 : index
    %182 = vector.load %arg21[%c0_129, %c0_130] : memref<256x4xf32, #tpu.memory_space<vmem>>, vector<256x4xf32>
    %cst_131 = arith.constant dense<0.000000e+00> : vector<48x4xf32>
    %183 = tpu.matmul %181, %182, %cst_131 {dimension_numbers = #tpu.dot_dimension_numbers<[1], [0], [0], [1], [0, 0, 1, 1], [], []>} : vector<48x256xf32>, vector<256x4xf32>, vector<48x4xf32> -> vector<48x4xf32>
    %c0_132 = arith.constant 0 : index
    %c0_133 = arith.constant 0 : index
    %184 = vector.load %arg22[%c0_132, %c0_133] : memref<1x4xf32, #tpu.memory_space<vmem>>, vector<1x4xf32>
    %185 = vector.broadcast %184 : vector<1x4xf32> to vector<48x4xf32>
    %186 = arith.addf %183, %185 : vector<48x4xf32>
    %c0_134 = arith.constant 0 : index
    %c0_135 = arith.constant 0 : index
    %187 = vector.load %arg23[%c0_134, %c0_135] : memref<48x4xf32, #tpu.memory_space<vmem>>, vector<48x4xf32>
    tpu.vector_store %arg23[%c0_134, %c0_135], %186 {strides = array<i32>} : memref<48x4xf32, #tpu.memory_space<vmem>>, vector<48x4xf32>,
    return
  }
  func.func @transform_0(%arg0: i32) -> (i32, i32) {
    %c0_i32 = arith.constant 0 : i32
    %c0_i32_0 = arith.constant 0 : i32
    return %arg0, %c0_i32 : i32, i32
  }
  func.func @transform_1(%arg0: i32) -> (i32, i32, i32) {
    %c0_i32 = arith.constant 0 : i32
    %c0_i32_0 = arith.constant 0 : i32
    %c0_i32_1 = arith.constant 0 : i32
    %c0_i32_2 = arith.constant 0 : i32
    return %c0_i32, %c0_i32_0, %c0_i32_1 : i32, i32, i32
  }
  func.func @transform_2(%arg0: i32) -> (i32, i32, i32) {
    %c0_i32 = arith.constant 0 : i32
    %c0_i32_0 = arith.constant 0 : i32
    %c0_i32_1 = arith.constant 0 : i32
    %c0_i32_2 = arith.constant 0 : i32
    return %c0_i32, %c0_i32_0, %c0_i32_1 : i32, i32, i32
  }
  func.func @transform_3(%arg0: i32) -> (i32, i32) {
    %c0_i32 = arith.constant 0 : i32
    %c0_i32_0 = arith.constant 0 : i32
    %c0_i32_1 = arith.constant 0 : i32
    return %c0_i32, %c0_i32_0 : i32, i32
  }
  func.func @transform_4(%arg0: i32) -> (i32, i32) {
    %c0_i32 = arith.constant 0 : i32
    %c0_i32_0 = arith.constant 0 : i32
    %c0_i32_1 = arith.constant 0 : i32
    return %c0_i32, %c0_i32_0 : i32, i32
  }
  func.func @transform_5(%arg0: i32) -> (i32, i32) {
    %c0_i32 = arith.constant 0 : i32
    %c0_i32_0 = arith.constant 0 : i32
    %c0_i32_1 = arith.constant 0 : i32
    return %c0_i32, %c0_i32_0 : i32, i32
  }
  func.func @transform_6(%arg0: i32) -> (i32, i32) {
    %c0_i32 = arith.constant 0 : i32
    %c0_i32_0 = arith.constant 0 : i32
    %c0_i32_1 = arith.constant 0 : i32
    return %c0_i32, %c0_i32_0 : i32, i32
  }
  func.func @transform_7(%arg0: i32) -> (i32, i32) {
    %c0_i32 = arith.constant 0 : i32
    %c0_i32_0 = arith.constant 0 : i32
    %c0_i32_1 = arith.constant 0 : i32
    return %c0_i32, %c0_i32_0 : i32, i32
  }
  func.func @transform_8(%arg0: i32) -> (i32, i32) {
    %c0_i32 = arith.constant 0 : i32
    %c0_i32_0 = arith.constant 0 : i32
    %c0_i32_1 = arith.constant 0 : i32
    return %c0_i32, %c0_i32_0 : i32, i32
  }
  func.func @transform_9(%arg0: i32) -> (i32, i32) {
    %c0_i32 = arith.constant 0 : i32
    %c0_i32_0 = arith.constant 0 : i32
    %c0_i32_1 = arith.constant 0 : i32
    return %c0_i32, %c0_i32_0 : i32, i32
  }
  func.func @transform_10(%arg0: i32) -> (i32, i32, i32) {
    %c0_i32 = arith.constant 0 : i32
    %c0_i32_0 = arith.constant 0 : i32
    %c0_i32_1 = arith.constant 0 : i32
    %c0_i32_2 = arith.constant 0 : i32
    return %c0_i32, %c0_i32_0, %c0_i32_1 : i32, i32, i32
  }
  func.func @transform_11(%arg0: i32) -> (i32, i32, i32) {
    %c0_i32 = arith.constant 0 : i32
    %c0_i32_0 = arith.constant 0 : i32
    %c0_i32_1 = arith.constant 0 : i32
    %c0_i32_2 = arith.constant 0 : i32
    return %c0_i32, %c0_i32_0, %c0_i32_1 : i32, i32, i32
  }
  func.func @transform_12(%arg0: i32) -> (i32, i32, i32) {
    %c0_i32 = arith.constant 0 : i32
    %c0_i32_0 = arith.constant 0 : i32
    %c0_i32_1 = arith.constant 0 : i32
    %c0_i32_2 = arith.constant 0 : i32
    return %c0_i32, %c0_i32_0, %c0_i32_1 : i32, i32, i32
  }
  func.func @transform_13(%arg0: i32) -> (i32, i32, i32) {
    %c0_i32 = arith.constant 0 : i32
    %c0_i32_0 = arith.constant 0 : i32
    %c0_i32_1 = arith.constant 0 : i32
    %c0_i32_2 = arith.constant 0 : i32
    return %c0_i32, %c0_i32_0, %c0_i32_1 : i32, i32, i32
  }
  func.func @transform_14(%arg0: i32) -> (i32, i32, i32) {
    %c0_i32 = arith.constant 0 : i32
    %c0_i32_0 = arith.constant 0 : i32
    %c0_i32_1 = arith.constant 0 : i32
    %c0_i32_2 = arith.constant 0 : i32
    return %c0_i32, %c0_i32_0, %c0_i32_1 : i32, i32, i32
  }
  func.func @transform_15(%arg0: i32) -> (i32, i32, i32) {
    %c0_i32 = arith.constant 0 : i32
    %c0_i32_0 = arith.constant 0 : i32
    %c0_i32_1 = arith.constant 0 : i32
    %c0_i32_2 = arith.constant 0 : i32
    return %c0_i32, %c0_i32_0, %c0_i32_1 : i32, i32, i32
  }
  func.func @transform_16(%arg0: i32) -> (i32, i32, i32) {
    %c0_i32 = arith.constant 0 : i32
    %c0_i32_0 = arith.constant 0 : i32
    %c0_i32_1 = arith.constant 0 : i32
    %c0_i32_2 = arith.constant 0 : i32
    return %c0_i32, %c0_i32_0, %c0_i32_1 : i32, i32, i32
  }
  func.func @transform_17(%arg0: i32) -> (i32, i32, i32) {
    %c0_i32 = arith.constant 0 : i32
    %c0_i32_0 = arith.constant 0 : i32
    %c0_i32_1 = arith.constant 0 : i32
    %c0_i32_2 = arith.constant 0 : i32
    return %c0_i32, %c0_i32_0, %c0_i32_1 : i32, i32, i32
  }
  func.func @transform_18(%arg0: i32) -> (i32, i32) {
    %c0_i32 = arith.constant 0 : i32
    %c0_i32_0 = arith.constant 0 : i32
    %c0_i32_1 = arith.constant 0 : i32
    return %c0_i32, %c0_i32_0 : i32, i32
  }
  func.func @transform_19(%arg0: i32) -> (i32, i32) {
    %c0_i32 = arith.constant 0 : i32
    %c0_i32_0 = arith.constant 0 : i32
    %c0_i32_1 = arith.constant 0 : i32
    return %c0_i32, %c0_i32_0 : i32, i32
  }
  func.func @transform_20(%arg0: i32) -> (i32, i32) {
    %c0_i32 = arith.constant 0 : i32
    %c0_i32_0 = arith.constant 0 : i32
    %c0_i32_1 = arith.constant 0 : i32
    return %c0_i32, %c0_i32_0 : i32, i32
  }
  func.func @transform_21(%arg0: i32) -> (i32, i32) {
    %c0_i32 = arith.constant 0 : i32
    %c0_i32_0 = arith.constant 0 : i32
    %c0_i32_1 = arith.constant 0 : i32
    return %c0_i32, %c0_i32_0 : i32, i32
  }
  func.func @transform_22(%arg0: i32) -> (i32, i32) {
    %c0_i32 = arith.constant 0 : i32
    %c0_i32_0 = arith.constant 0 : i32
    return %arg0, %c0_i32 : i32, i32
  }
}

</mosaic_0001>

<bundles_post_ra>
// kernel: decoder_forward.1
= control target key start
LH: loop header
LB: loop body
LE: loop exit
PB: predicated region body
PF: predicated region fallthrough
CT: control target
= control target key end

     0   :  { %s7741_s0 = inlined_call_operand.vmem [shape: f32[96,4], index: 0, kind: input, shape index: {}]   ;;  %s7742_s1 = inlined_call_operand.vmem [shape: f32[2,16,32], index: 1, kind: input, shape index: {}]   ;;  %s7743_s2 = inlined_call_operand.vmem [shape: f32[2,48,48], index: 2, kind: input, shape index: {}]   ;;  %s7744_s3 = inlined_call_operand.vmem [shape: f32[48,8], index: 3, kind: input, shape index: {}]   ;;  %s7745_s4 = inlined_call_operand.vmem [shape: f32[8,48], index: 4, kind: input, shape index: {}]   ;;  %s7746_s5 = inlined_call_operand.vmem [shape: f32[48,48], index: 5, kind: input, shape index: {}]   ;;  %s7747_s6 = inlined_call_operand.vmem [shape: f32[4,256], index: 6, kind: input, shape index: {}]   ;;  %s7748_s7 = inlined_call_operand.vmem [shape: f32[1,256], index: 7, kind: input, shape index: {}]   ;;  %s7749_s8 = inlined_call_operand.vmem [shape: f32[256,16], index: 8, kind: input, shape index: {}]   ;;  %s7750_s9 = inlined_call_operand.vmem [shape: f32[1,16], index: 9, kind: input, shape index: {}]   ;;  %s7751_s10 = inlined_call_operand.vmem [shape: f32[2,16,96], index: 10, kind: input, shape index: {}]   ;;  %s7752_s11 = inlined_call_operand.vmem [shape: f32[2,1,96], index: 11, kind: input, shape index: {}]   ;;  %s7753_s12 = inlined_call_operand.vmem [shape: f32[2,32,96], index: 12, kind: input, shape index: {}]   ;;  %s7754_s13 = inlined_call_operand.vmem [shape: f32[2,1,96], index: 13, kind: input, shape index: {}]   ;;  %s7755_s14 = inlined_call_operand.vmem [shape: f32[2,8,10], index: 14, kind: input, shape index: {}]   ;;  %s7756_s15 = inlined_call_operand.vmem [shape: f32[2,10,8], index: 15, kind: input, shape index: {}]   ;;  %s7757_s16 = inlined_call_operand.vmem [shape: f32[2,224,16], index: 16, kind: input, shape index: {}]   ;;  %s7758_s17 = inlined_call_operand.vmem [shape: f32[2,1,16], index: 17, kind: input, shape index: {}]   ;;  %s7759_s18 = inlined_call_operand.vmem [shape: f32[16,256], index: 18, kind: input, shape index: {}]   ;;  %s7760_s19 = inlined_call_operand.vmem [shape: f32[1,256], index: 19, kind: input, shape index: {}]   ;;  %s7761_s20 = inlined_call_operand.vmem [shape: f32[256,4], index: 20, kind: input, shape index: {}]   ;;  %s7762_s21 = inlined_call_operand.vmem [shape: f32[1,4], index: 21, kind: input, shape index: {}]   ;;  %s7763_s22 = inlined_call_operand.vmem [shape: f32[96,4], index: 22, kind: output, shape index: {}]  }
   0x1   :  { %7777 = sst [smem:[#allocation3_spill]] %s7741_s0 }
   0x2   :  { %7778 = sst [smem:[#allocation4_spill]] %s7742_s1 }
   0x3   :  { %7779 = sst [smem:[#allocation5_spill]] %s7743_s2 }
   0x4   :  { %7780 = sst [smem:[#allocation6_spill]] %s7744_s3  ;;  %s6239_s3 = smov 0  }
   0x5   :  { %7781 = sst [smem:[#allocation7_spill]] %s7745_s4 }
   0x6   :  { %7782 = sst [smem:[#allocation8_spill]] %s7746_s5 }
   0x7   :  { %7783 = sst [smem:[#allocation9_spill]] %s7747_s6 }
   0x8   :  { %7784 = sst [smem:[#allocation10_spill]] %s7748_s7 }
   0x9   :  { %7785 = sst [smem:[#allocation11_spill]] %s7749_s8 }
   0xa   :  { %7786 = sst [smem:[#allocation12_spill]] %s7750_s9 }
   0xb   :  { %7787 = sst [smem:[#allocation13_spill]] %s7763_s22 }
   0xc LB: > { %7788 = sst [smem:[#allocation2_spill]] %s6115_s3  ;;  %s4619_s28 = sadd.s32 4294967295, %s6115_s3   ;;  %s6115_s3 = sphi %s6239_s3, %s32_s3  }
   0xd   : > { %p4623_p0 = scmp.ge.s32.totalorder %s6115_s3, 1  ;;  %p613_p1 = scmp.lt.s32.totalorder %s6115_s3, 3 }
   0xf   : > { %p614_p2 = pnand %p4623_p0, %p613_p1 }
  0x10   : > { %s7789_s4 = sld [smem:[#allocation9_spill]] (!%p614_p2)  ;;  %vm727_vm0 = vcmask (!%p614_p2), 1043456   ;;  %s675_s0 = smul.u32 (!%p614_p2), 6, %s4619_s28  ;;  %v6117_v3 = vmov (!%p614_p2), 0.0   ;;  %vm708_vm1 = vcmask (!%p614_p2), 31744   ;;  %v987_v57 = vld [vmem:[%s7753_s12] sm:$0xff] (!%p614_p2) }
  0x11   : > { %617 = sbr.rel (%p614_p2) target bundleno = 3939 (0xf63), region = 108  ;;  %s7790_s8 = sld [smem:[#allocation11_spill]] (!%p614_p2)  ;;  %796 = vmatprep.mubr.f32.mxu0 (!%p614_p2), %v6117_v3  ;;  %v988_v58 = vld [vmem:[%s7753_s12 + $0x8] sm:$0xff] (!%p614_p2)  ;;  %v989_v59 = vld [vmem:[%s7753_s12 + $0x10] sm:$0xff] (!%p614_p2)  ;;  %vm998_vm2 = vcmask (!%p614_p2), 261120   ;;  %v990_v61 = vld [vmem:[%s7753_s12 + $0x18] sm:$0xff] (!%p614_p2) }
  0x12   : > { %p676_p3 = scmp.lt.s32.totalorder (!%p614_p2), %s675_s0, 11  ;;  %s7791_s1 = sld [smem:[#allocation3_spill]] (!%p614_p2)  ;;  %v5534_v60 = vpack.c.bf16 (!%p614_p2), %v988_v58, %v987_v57  ;;  %v5538_v63 = vpack.c.bf16 (!%p614_p2), %v990_v61, %v989_v59  ;;  %vm1089_vm3 = vcmask (!%p614_p2), 130048   ;;  %vm1362_vm4 = vcmask (!%p614_p2), 1041408  }
  0x13   : > { %s7792_s27 = sld [smem:[#allocation4_spill]] (!%p614_p2)  ;;  %s7793_s7 = sld [smem:[#allocation10_spill]] (!%p614_p2)  ;;  %vm6120_vm5 = vmmov (!%p614_p2), 1   ;;  %vm6121_vm7 = vmmov (!%p614_p2), 0   ;;  %vm1358_vm8 = vcmask (!%p614_p2), 80896   ;;  %vm1437_vm9 = vcmask (!%p614_p2), 64512  }
  0x14   : > { %s7770_s26 = smov (!%p614_p2), 64   ;;  %s7794_s9 = sld [smem:[#allocation12_spill]] (!%p614_p2)  ;;  %vm6441_vm6 = vmpackc.low (!%p614_p2), %vm1362_vm4, %vm6120_vm5  ;;  %vm1732_vm10 = vcmask (!%p614_p2), 392192   ;;  %vm2490_vm11 = vcmask (!%p614_p2), 523264   ;;  %vm2497_vm12 = vcmask (!%p614_p2), 785408  }
  0x15   : > { %s7797_s28 = sld [smem:[#allocation6_spill]] (!%p614_p2)  ;;  %s7774_s24 = smov (!%p614_p2), 32  }
  0x16   : > { %v693_v0 = vld [vmem:[%s7789_s4] sm:$0xff] (!%p614_p2)  ;;  %s7799_s30 = sld [smem:[#allocation5_spill]] (!%p614_p2)  ;;  %s7800_s4 = sld [smem:[#allocation8_spill]] (!%p614_p2) }
  0x17   : > { %v861_v1 = vld [vmem:[%s7790_s8 + $0x80] sm:$0xff] (!%p614_p2)  ;;  %v707_v2 = vcombine.high (!%p614_p2), %v693_v0, %v693_v0  ;;  %v862_v4 = vld [vmem:[%s7790_s8 + $0x88] sm:$0xff] (!%p614_p2)  ;;  %v863_v9 = vld [vmem:[%s7790_s8 + $0x90] sm:$0xff] (!%p614_p2)  ;;  %s7805_s25 = sld [smem:[#allocation13_spill]] (!%p614_p2) }
  0x18   : > { %v845_v5 = vld [vmem:[%s7790_s8] sm:$0xff]  ;;  %v846_v6 = vld [vmem:[%s7790_s8 + $0x8] sm:$0xff]  ;;  %v5502_v7 = vpack.c.bf16 %v862_v4, %v861_v1  ;;  %v864_v10 = vld [vmem:[%s7790_s8 + $0x98] sm:$0xff]  ;;  %s7808_s0 = smov (!%p676_p3, %s675_s0), 11  ;;  %v696_v1 = vlaneseq }
  0x19   : > { %v5504_v8 = vpack.c.bf16 %v846_v6, %v845_v5  ;;  %v847_v11 = vld [vmem:[%s7790_s8 + $0x10] sm:$0xff]  ;;  %4626 = vmatprep.subr.msk.mxu0 %vm727_vm0, %v707_v2  ;;  %v5506_v12 = vpack.c.bf16 %v864_v10, %v863_v9  ;;  %v848_v13 = vld [vmem:[%s7790_s8 + $0x18] sm:$0xff]  ;;  %v865_v14 = vld [vmem:[%s7790_s8 + $0xa0] sm:$0xff]  ;;  %s7769_s2 = sshll.u32 %s7808_s0, 3 }
  0x1a   : > { %v866_v15 = vld [vmem:[%s7790_s8 + $0xa8] sm:$0xff]  ;;  %4627 = vmatpush1.msk.msra.mxu0 %vm727_vm0, %v693_v0  ;;  %5503 = vmatprep.subr.bf16.mxu1 %v5502_v7  ;;  %v5508_v16 = vpack.c.bf16 %v848_v13, %v847_v11  ;;  %v849_v18 = vld [vmem:[%s7790_s8 + $0x20] sm:$0xff]  ;;  %s6297_s5 = scalar_lea.vmem %s7791_s1, %s7769_s2  ;;  %v867_v20 = vld [vmem:[%s7790_s8 + $0xb0] sm:$0xff]  ;;  %v6402_v2 = vshrl.u32 %v696_v1, 7  ;;  %s7798_s1 = sld [smem:[#allocation7_spill]] }
  0x1b   : > { %5505 = vmatpush3.bf16.msra.mxu1 %v5504_v8  ;;  %v5510_v17 = vpack.c.bf16 %v866_v15, %v865_v14  ;;  %v850_v19 = vld [vmem:[%s7790_s8 + $0x28] sm:$0xff]  ;;  %v868_v21 = vld [vmem:[%s7790_s8 + $0xb8] sm:$0xff]  ;;  %v687_v22 = vld [vmem:[%s6297_s5] sm:$0xff]  ;;  %5535 = vmatprep.subr.bf16.mxu0 %v5534_v60  ;;  %s7772_s2 = smov 96  }
  0x1c   : > { %5507 = vmatprep.subr.bf16.mxu1 %v5506_v12  ;;  %4628 = vmatmul.mubr.msk.f32.vlgmr.msra.gmra.mrb[0].mxu0 %vm708_vm1, %v687_v22  ;;  %v5512_v23 = vpack.c.bf16 %v850_v19, %v849_v18  ;;  %v688_v24 = vld [vmem:[%s6297_s5 + $0x8] sm:$0xff]  ;;  %v5514_v25 = vpack.c.bf16 %v868_v21, %v867_v20  ;;  %v851_v26 = vld [vmem:[%s7790_s8 + $0x30] sm:$0xff]  ;;  %v852_v27 = vld [vmem:[%s7790_s8 + $0x38] sm:$0xff]  ;;  %v698_v4 = vsub.s32 0, %v6402_v2  ;;  %v702_v6 = vsub.s32 1, %v6402_v2 }
  0x1d   : > { %802 = vmatprep.mubr.f32.mxu0 %v6117_v3  ;;  %v869_v28 = vld [vmem:[%s7790_s8 + $0xc0] sm:$0xff]  ;;  %v870_v29 = vld [vmem:[%s7790_s8 + $0xc8] sm:$0xff]  ;;  %v5516_v30 = vpack.c.bf16 %v852_v27, %v851_v26  ;;  %v689_v31 = vld [vmem:[%s6297_s5 + $0x10] sm:$0xff]  ;;  %5537 = vmatpush3.bf16.msra.mxu0 %v5534_v60 }
  0x1e   : > { %v5518_v32 = vpack.c.bf16 %v870_v29, %v869_v28  ;;  %v853_v33 = vld [vmem:[%s7790_s8 + $0x40] sm:$0xff]  ;;  %v854_v34 = vld [vmem:[%s7790_s8 + $0x48] sm:$0xff]  ;;  %v871_v35 = vld [vmem:[%s7790_s8 + $0xd0] sm:$0xff]  ;;  %5539 = vmatprep.subr.bf16.mxu0 %v5538_v63 }
  0x1f   : > { %5509 = vmatpush3.bf16.msra.mxu1 %v5508_v16  ;;  %v872_v36 = vld [vmem:[%s7790_s8 + $0xd8] sm:$0xff]  ;;  %v5520_v37 = vpack.c.bf16 %v854_v34, %v853_v33  ;;  %v855_v40 = vld [vmem:[%s7790_s8 + $0x50] sm:$0xff]  ;;  %v873_v42 = vld [vmem:[%s7790_s8 + $0xe0] sm:$0xff] }
  0x20   : > { %5511 = vmatprep.subr.bf16.mxu1 %v5510_v17  ;;  %4629 = vmatmul.mubr.msk.f32.gmra.mrb[2].mxu0 %vm708_vm1, %v688_v24  ;;  %v690_v38 = vld [vmem:[%s6297_s5 + $0x18] sm:$0xff]  ;;  %v5522_v39 = vpack.c.bf16 %v872_v36, %v871_v35  ;;  %v874_v43 = vld [vmem:[%s7790_s8 + $0xe8] sm:$0xff]  ;;  %v691_v45 = vld [vmem:[%s6297_s5 + $0x20] sm:$0xff] }
  0x21   : > { %808 = vmatprep.mubr.f32.mxu0 %v6117_v3  ;;  %v856_v41 = vld [vmem:[%s7790_s8 + $0x58] sm:$0xff]  ;;  %v5526_v46 = vpack.c.bf16 %v874_v43, %v873_v42  ;;  %v692_v47 = vld [vmem:[%s6297_s5 + $0x28] sm:$0xff]  ;;  %v857_v48 = vld [vmem:[%s7790_s8 + $0x60] sm:$0xff]  ;;  %5541 = vmatpush3.bf16.msra.mxu0 %v5538_v63 }
  0x22   : > { %v5524_v44 = vpack.c.bf16 %v856_v41, %v855_v40  ;;  %v858_v49 = vld [vmem:[%s7790_s8 + $0x68] sm:$0xff]  ;;  %v875_v51 = vld [vmem:[%s7790_s8 + $0xf0] sm:$0xff]  ;;  %v876_v52 = vld [vmem:[%s7790_s8 + $0xf8] sm:$0xff] }
  0x23   : > { %5513 = vmatpush3.bf16.msra.mxu1 %v5512_v23  ;;  %v5528_v50 = vpack.c.bf16 %v858_v49, %v857_v48  ;;  %v5530_v53 = vpack.c.bf16 %v876_v52, %v875_v51  ;;  %v859_v54 = vld [vmem:[%s7790_s8 + $0x70] sm:$0xff]  ;;  %v860_v55 = vld [vmem:[%s7790_s8 + $0x78] sm:$0xff]  ;;  %v6391_v62 = vld [vmem:[%s7792_s27] sm:$0xff]  ;;  %v6118_v48 = vmov 0.0|0.0  }
  0x24   : > { %5515 = vmatprep.subr.bf16.mxu1 %v5514_v25  ;;  %4630 = vmatmul.mubr.msk.f32.gmra.mrb[4].mxu0 %vm708_vm1, %v689_v31  ;;  %v5532_v56 = vpack.c.bf16 %v860_v55, %v859_v54  ;;  %v6398_v0 = vld [vmem:[%s7792_s27 + $0x8] sm:$0xff]  ;;  %v694_v5 = vld [vmem:[%s7793_s7] sm:$0x3] }
  0x25   : > { %814 = vmatprep.mubr.f32.mxu0 %v6117_v3  ;;  %v699_v7 = vrot.slane %v694_v5, %v698_v4  ;;  %v703_v8 = vrot.slane %v694_v5, %v702_v6  ;;  %v4634_v55 = vld [vmem:[%s7794_s9] ss:$0 sm:$0xff]  ;;  %v1357_v5 = vld [vmem:[%s7756_s15 + $0x8] sm:$0x3]  ;;  %s7803_s9 = smov 64  }
  0x26   : > { %v1356_v1 = vld [vmem:[%s7756_s15] sm:$0xff] }
  0x27   : > { %5517 = vmatpush3.bf16.msra.mxu1 %v5516_v30 }
  0x28   : > { %5519 = vmatprep.subr.bf16.mxu1 %v5518_v32  ;;  %4631 = vmatmul.mubr.msk.f32.gmra.mrb[6].mxu0 %vm708_vm1, %v690_v38 }
  0x29   : > { %820 = vmatprep.mubr.f32.mxu0 %v6117_v3 }
  0x2b   : > { %5521 = vmatpush3.bf16.msra.mxu1 %v5520_v37 }
  0x2c   : > { %5523 = vmatprep.subr.bf16.mxu1 %v5522_v39  ;;  %4632 = vmatmul.mubr.msk.f32.gmra.mrb[8].mxu0 %vm708_vm1, %v691_v45  ;;  %v1080_v45 = vld [vmem:[%s7751_s10] sm:$0xff] }
  0x2d   : > { %826 = vmatprep.mubr.f32.mxu0 %v6117_v3 }
  0x2f   : > { %5525 = vmatpush3.bf16.msra.mxu1 %v5524_v44 }
  0x30   : > { %5527 = vmatprep.subr.bf16.mxu1 %v5526_v46  ;;  %4633 = vmatmul.mubr.msk.f32.gmra.mrb[10].mxu0 %vm708_vm1, %v692_v47  ;;  %v1081_v46 = vld [vmem:[%s7751_s10 + $0x8] sm:$0xff] }
  0x31   : > { %5152 = vmatprep.mubr.msk.f32.mxu0 %vm998_vm2, %v6391_v62  ;;  %v5542_v47 = vpack.c.bf16 %v1081_v46, %v1080_v45 }
  0x33   : > { %5529 = vmatpush3.bf16.msra.mxu1 %v5528_v50  ;;  %5543 = vmatprep.subr.bf16.mxu0 %v5542_v47  ;;  %v4635_v50 = vld [vmem:[%s7754_s13] ss:$0 sm:$0xff] }
  0x34   : > { %5531 = vmatprep.subr.bf16.mxu1 %v5530_v53  ;;  %5153 = vmatmul.mubr.msk.f32.vlgmr.msra.gmra.mrb[12].mxu0 %vm998_vm2, %v6398_v0 }
  0x35   : > { %5545 = vmatpush3.bf16.msra.mxu0 %v5542_v47 }
  0x36   : > { %5546 = vmatprep.subr.bf16.mxu0 %v6118_v48 }
  0x37   : > { %5533 = vmatpush3.bf16.msra.mxu1 %v5532_v56 }
  0xef   : > { %v798_v9 = vpop.f32.mrb[0].mxu0 }
  0xf0   : > { %v799_v10 = vadd.f32 %v798_v9, %v699_v7  ;;  %v800_v11 = vpop.f32.mrb[1].mxu0 }
  0xf1   : > { %v801_v12 = vadd.f32 %v800_v11, %v703_v8 }
  0xf2   : > { %v833_v15 = vmax.f32 %v799_v10, 0.0  ;;  %v5547_v10 = vpack.c.bf16 %v1357_v5, %v1356_v1 }
  0xf3   : > { %v804_v13 = vpop.f32.mrb[2].mxu0  ;;  %v834_v14 = vmax.f32 %v801_v12, 0.0 }
  0xf4   : > { %v805_v16 = vadd.f32 %v804_v13, %v699_v7  ;;  %v806_v17 = vpop.f32.mrb[3].mxu0  ;;  %v4740_v13 = vld [vmem:[%s7755_s14 + $0x8] sm:$0xff] }
  0xf5   : > { %v807_v18 = vadd.f32 %v806_v17, %v703_v8  ;;  %948 = vmatprep.mubr.f32.mxu1 %v834_v14 }
  0xf6   : > { %949 = vmatmul.mubr.f32.vlgmr.msra.gmra.mrb[0].mxu1 %v833_v15  ;;  %v835_v21 = vmax.f32 %v805_v16, 0.0 }
  0xf7   : > { %v836_v19 = vmax.f32 %v807_v18, 0.0  ;;  %v810_v20 = vpop.f32.mrb[4].mxu0 }
  0xf8   : > { %v811_v22 = vadd.f32 %v810_v20, %v699_v7  ;;  %v812_v23 = vpop.f32.mrb[5].mxu0 }
  0xf9   : > { %v813_v24 = vadd.f32 %v812_v23, %v703_v8  ;;  %953 = vmatprep.mubr.f32.mxu1 %v836_v19 }
  0xfa   : > { %954 = vmatmul.mubr.f32.gmra.mrb[2].mxu1 %v835_v21  ;;  %v837_v27 = vmax.f32 %v811_v22, 0.0 }
  0xfb   : > { %v838_v25 = vmax.f32 %v813_v24, 0.0  ;;  %v816_v26 = vpop.f32.mrb[6].mxu0 }
  0xfc   : > { %v817_v28 = vadd.f32 %v816_v26, %v699_v7  ;;  %v818_v29 = vpop.f32.mrb[7].mxu0 }
  0xfd   : > { %v819_v30 = vadd.f32 %v818_v29, %v703_v8  ;;  %958 = vmatprep.mubr.f32.mxu1 %v838_v25 }
  0xfe   : > { %959 = vmatmul.mubr.f32.gmra.mrb[4].mxu1 %v837_v27  ;;  %v839_v33 = vmax.f32 %v817_v28, 0.0 }
  0xff   : > { %v840_v31 = vmax.f32 %v819_v30, 0.0  ;;  %v822_v32 = vpop.f32.mrb[8].mxu0 }
 0x100   : > { %v823_v34 = vadd.f32 %v822_v32, %v699_v7  ;;  %v824_v35 = vpop.f32.mrb[9].mxu0  ;;  %v1457_v32 = vld [vmem:[%s7797_s28] sm:$0xff] }
 0x101   : > { %v825_v36 = vadd.f32 %v824_v35, %v703_v8  ;;  %963 = vmatprep.mubr.f32.mxu1 %v840_v31  ;;  %v1355_v31 = vld [vmem:[%s7755_s14] sm:$0xff] }
 0x102   : > { %964 = vmatmul.mubr.f32.gmra.mrb[6].mxu1 %v839_v33  ;;  %v841_v39 = vmax.f32 %v823_v34, 0.0  ;;  %v4638_v33 = vld [vmem:[%s7752_s11] ss:$0 sm:$0xff] }
 0x103   : > { %v842_v37 = vmax.f32 %v825_v36, 0.0  ;;  %v828_v38 = vpop.f32.mrb[10].mxu0 }
 0x104   : > { %v829_v40 = vadd.f32 %v828_v38, %v699_v7  ;;  %v830_v41 = vpop.f32.mrb[11].mxu0 }
 0x105   : > { %v831_v42 = vadd.f32 %v830_v41, %v703_v8  ;;  %968 = vmatprep.mubr.f32.mxu1 %v842_v37 }
 0x106   : > { %969 = vmatmul.mubr.f32.gmra.mrb[8].mxu1 %v841_v39  ;;  %v843_v44 = vmax.f32 %v829_v40, 0.0 }
 0x107   : > { %v844_v43 = vmax.f32 %v831_v42, 0.0  ;;  %v5154_v49 = vpop.f32.mrb[12].mxu0 }
 0x108   : > { %v1071_v51 = vpop.f32.mrb[13].mxu0  ;;  %v6425_v53 = vadd.f32 %v5154_v49, %v4635_v50 }
 0x109   : > { %973 = vmatprep.mubr.f32.mxu1 %v844_v43  ;;  %v6423_v52 = vadd.f32 %v4635_v50, %v1071_v51 }
 0x10a   : > { %974 = vmatmul.mubr.f32.gmra.mrb[10].mxu1 %v843_v44 }
 0x10b   : > { %1247 = vrot.lane.b32.xlu0 %v6423_v52, %s7770_s26 }
 0x10f   : > { %1249 = vrot.lane.b32.xlu0 %v6425_v53, %s7770_s26 }
 0x1c9   : > { %v4870_v54 = vpop.f32.mrb[0].mxu1 }
 0x1ca   : > { %v4871_v56 = vpop.f32.mrb[1].mxu1 }
 0x1cb   : > { %v4872_v57 = vadd.f32 %v4871_v56, %v4870_v54 }
 0x1cd   : > { %v951_v58 = vadd.f32 %v4872_v57, %v4634_v55  ;;  %v4873_v59 = vpop.f32.mrb[2].mxu1 }
 0x1ce   : > { %v4874_v60 = vpop.f32.mrb[3].mxu1 }
 0x1cf   : > { %v979_v61 = vmax.f32 %v951_v58, 0.0  ;;  %v4875_v63 = vadd.f32 %v4874_v60, %v4873_v59 }
 0x1d1   : > { %v956_v7 = vadd.f32 %v4875_v63, %v4634_v55  ;;  %v4876_v8 = vpop.f32.mrb[4].mxu1  ;;  %5159 = vmatprep.mubr.msk.f32.mxu0 %vm1089_vm3, %v979_v61 }
 0x1d2   : > { %v4877_v9 = vpop.f32.mrb[5].mxu1 }
 0x1d3   : > { %v980_v11 = vmax.f32 %v956_v7, 0.0  ;;  %v4878_v12 = vadd.f32 %v4877_v9, %v4876_v8 }
 0x1d5   : > { %v961_v14 = vadd.f32 %v4878_v12, %v4634_v55  ;;  %v4879_v15 = vpop.f32.mrb[6].mxu1  ;;  %5160 = vmatmul.mubr.msk.f32.vlgmr.msra.gmra.mrb[14].mxu0 %vm1089_vm3, %v980_v11 }
 0x1d6   : > { %v4880_v16 = vpop.f32.mrb[7].mxu1  ;;  %5549 = vmatpush3.bf16.msk.msra.mxu0 %vm6441_vm6, %v5547_v10  ;;  %v1248_v10 = vpop.permute.xlu0 %1247 }
 0x1d7   : > { %v981_v17 = vmax.f32 %v961_v14, 0.0  ;;  %v4881_v18 = vadd.f32 %v4880_v16, %v4879_v15 }
 0x1d9   : > { %v966_v19 = vadd.f32 %v4881_v18, %v4634_v55  ;;  %v4882_v20 = vpop.f32.mrb[8].mxu1  ;;  %5162 = vmatprep.mubr.msk.f32.mxu0 %vm1089_vm3, %v981_v17 }
 0x1da   : > { %v4883_v21 = vpop.f32.mrb[9].mxu1 }
 0x1db   : > { %v982_v22 = vmax.f32 %v966_v19, 0.0  ;;  %v4884_v23 = vadd.f32 %v4883_v21, %v4882_v20 }
 0x1dd   : > { %v971_v24 = vadd.f32 %v4884_v23, %v4634_v55  ;;  %v4885_v25 = vpop.f32.mrb[10].mxu1  ;;  %5163 = vmatmul.mubr.msk.f32.gmra.mrb[16].mxu0 %vm1089_vm3, %v982_v22 }
 0x1de   : > { %v4886_v26 = vpop.f32.mrb[11].mxu1 }
 0x1df   : > { %v983_v27 = vmax.f32 %v971_v24, 0.0  ;;  %v4887_v28 = vadd.f32 %v4886_v26, %v4885_v25 }
 0x1e1   : > { %v976_v29 = vadd.f32 %v4887_v28, %v4634_v55  ;;  %5165 = vmatprep.mubr.msk.f32.mxu0 %vm1089_vm3, %v983_v27 }
 0x1e3   : > { %v984_v30 = vmax.f32 %v976_v29, 0.0 }
 0x1e5   : > { %5166 = vmatmul.mubr.msk.f32.gmra.mrb[18].mxu0 %vm1089_vm3, %v984_v30 }
 0x1e6   : > { %5172 = vmatprep.mubr.msk.f32.mxu0 %vm6121_vm7, %v6117_v3 }
 0x1e9   : > { %5173 = vmatmul.mubr.msk.f32.vlgmr.msra.gmra.mrb[20].mxu0 %vm1358_vm8, %v1355_v31 }
 0x1ea   : > { %5177 = vmatprep.mubr.msk.f32.mxu0 %vm1437_vm9, %v1457_v32 }
 0x2a8   : > { %v5161_v34 = vpop.f32.mrb[14].mxu0 }
 0x2a9   : > { %v6465_v35 = vadd.f32 %v5161_v34, %v4638_v33  ;;  %v1174_v36 = vpop.f32.mrb[15].mxu0 }
 0x2aa   : > { %v6467_v37 = vadd.f32 %v4638_v33, %v1174_v36 }
 0x2ab   : > { %v1204_v38 = vadd.f32 %v6465_v35, %v6425_v53 }
 0x2ac   : > { %v1203_v39 = vadd.f32 %v6467_v37, %v6423_v52 }
 0x2ad   : > { %v4646_v40 = vmul.f32 -1.442695, %v1204_v38 }
 0x2ae   : > { %v4645_v41 = vmul.f32 -1.442695, %v1203_v39 }
 0x2af   : > { %5956 = vpow2.f32 %v4646_v40 }
 0x2b0   : > { %5958 = vpow2.f32 %v4645_v41  ;;  %v5164_v42 = vpop.f32.mrb[16].mxu0 }
 0x2b1   : > { %v6473_v43 = vadd.f32 %v5164_v42, %v4638_v33  ;;  %v1184_v44 = vpop.f32.mrb[17].mxu0 }
 0x2b2   : > { %v6475_v45 = vadd.f32 %v4638_v33, %v1184_v44  ;;  %v1576_v44 = vld [vmem:[%s7798_s1] sm:$0xff] }
 0x2b3   : > { %v1206_v46 = vadd.f32 %v6473_v43, %v6425_v53  ;;  %5186 = vmatprep.subr.mxu1 %v1576_v44 }
 0x2b4   : > { %v1205_v47 = vadd.f32 %v6475_v45, %v6423_v52  ;;  %5187 = vmatpush3.msra.mxu1 %v1576_v44 }
 0x2b5   : > { %v4648_v49 = vmul.f32 -1.442695, %v1206_v46 }
 0x2b6   : > { %v4647_v50 = vmul.f32 -1.442695, %v1205_v47 }
 0x2b7   : > { %5960 = vpow2.f32 %v4648_v49 }
 0x2b8   : > { %5962 = vpow2.f32 %v4647_v50  ;;  %v5167_v51 = vpop.f32.mrb[18].mxu0 }
 0x2b9   : > { %v5957_v54 = vpop.eup %5956  ;;  %v6481_v55 = vadd.f32 %v5167_v51, %v4638_v33  ;;  %v1194_v56 = vpop.f32.mrb[19].mxu0 }
 0x2ba   : > { %v5959_v57 = vpop.eup %5958  ;;  %v1228_v58 = vadd.f32 1.0, %v5957_v54  ;;  %v6483_v59 = vadd.f32 %v4638_v33, %v1194_v56 }
 0x2bb   : > { %v1227_v60 = vadd.f32 1.0, %v5959_v57  ;;  %v1208_v61 = vadd.f32 %v6481_v55, %v6425_v53 }
 0x2bc   : > { %5964 = vrcp.f32 %v1228_v58  ;;  %v1207_v63 = vadd.f32 %v6483_v59, %v6423_v52  ;;  %v1432_v1 = vpop.f32.mrb[20].mxu0  ;;  %v1250_v52 = vpop.permute.xlu0 %1249 }
 0x2bd   : > { %v4650_v5 = vmul.f32 -1.442695, %v1208_v61  ;;  %v1436_v7 = vmax.f32 %v1432_v1, 0.0  ;;  %v5174_v8 = vpop.f32.mrb[21].mxu0  ;;  %5966 = vrcp.f32 %v1227_v60  ;;  %v1458_v60 = vld [vmem:[%s7797_s28 + $0x8] sm:$0xff]  ;;  %v1461_v61 = vld [vmem:[%s7797_s28 + $0x20] sm:$0xff] }
 0x2be   : > { %v4649_v9 = vmul.f32 -1.442695, %v1207_v63  ;;  %v1462_v63 = vld [vmem:[%s7797_s28 + $0x28] sm:$0xff] }
 0x2bf   : > { %5968 = vpow2.f32 %v4650_v5  ;;  %v1438_v11 = vsel %vm1437_vm9, %v1436_v7, -inf }
 0x2c0   : > { %5970 = vpow2.f32 %v4649_v9  ;;  %v1439_v12 = vrot.slane %v1438_v11, 4 }
 0x2c1   : > { %v5961_v14 = vpop.eup %5960 }
 0x2c2   : > { %v5963_v15 = vpop.eup %5962  ;;  %v1230_v16 = vadd.f32 1.0, %v5961_v14  ;;  %v1440_v53 = vmax.f32 %v1438_v11, %v1439_v12 }
 0x2c3   : > { %v1229_v17 = vadd.f32 1.0, %v5963_v15 }
 0x2c4   : > { %5972 = vrcp.f32 %v1230_v16  ;;  %v1441_v18 = vrot.slane %v1440_v53, 2 }
 0x2c5   : > { %5974 = vrcp.f32 %v1229_v17 }
 0x2c6   : > { %v6490_v19 = vpop.eup %5964  ;;  %v1442_v20 = vmax.f32 %v1440_v53, %v1441_v18 }
 0x2c7   : > { %v1254_v21 = vmul.f32 %v6490_v19, %v1250_v52  ;;  %v6493_v22 = vpop.eup %5966 }
 0x2c8   : > { %v1443_v23 = vrot.slane %v1442_v20, 1  ;;  %v1253_v29 = vmul.f32 %v6493_v22, %v1248_v10 }
 0x2c9   : > { %v5969_v24 = vpop.eup %5968  ;;  %1267 = vrot.lane.b32.xlu1 %v1254_v21, %s7770_s26 }
 0x2ca   : > { %v5971_v25 = vpop.eup %5970  ;;  %v1232_v26 = vadd.f32 1.0, %v5969_v24  ;;  %v1444_v27 = vmax.f32 %v1442_v20, %v1443_v23  ;;  %v1295_v24 = vsub.f32 1.0, %v6493_v22 }
 0x2cb   : > { %v1231_v28 = vadd.f32 1.0, %v5971_v25 }
 0x2cc   : > { %5976 = vrcp.f32 %v1232_v26  ;;  %v1445_v30 = vsub.f32 %v1436_v7, %v1444_v27 }
 0x2cd   : > { %5978 = vrcp.f32 %v1231_v28  ;;  %1265 = vrot.lane.b32.xlu1 %v1253_v29, %s7770_s26 }
 0x2ce   : > { %v6498_v31 = vpop.eup %5972  ;;  %v1446_v32 = vmul.f32 1.442695, %v1445_v30 }
 0x2cf   : > { %v6500_v33 = vpop.eup %5974  ;;  %v1256_v34 = vmul.f32 %v6498_v31, %v1250_v52  ;;  %v1298_v30 = vsub.f32 1.0, %v6498_v31 }
 0x2d0   : > { %5980 = vpow2.f32 %v1446_v32  ;;  %v1255_v36 = vmul.f32 %v6500_v33, %v1248_v10 }
 0x2d1   : > { %1271 = vrot.lane.b32.xlu1 %v1256_v34, %s7770_s26  ;;  %v1297_v34 = vsub.f32 1.0, %v6500_v33 }
 0x2d2   : > { %1269 = vrot.lane.b32.xlu0 %v1255_v36, %s7770_s26 }
 0x2d6   : > { %v6506_v38 = vpop.eup %5976 }
 0x2d7   : > { %v6508_v39 = vpop.eup %5978  ;;  %v1258_v40 = vmul.f32 %v6506_v38, %v1250_v52  ;;  %v1296_v52 = vsub.f32 1.0, %v6490_v19 }
 0x2d8   : > { %v1257_v41 = vmul.f32 %v6508_v39, %v1248_v10 }
 0x2d9   : > { %1275 = vrot.lane.b32.xlu1 %v1258_v40, %s7770_s26 }
 0x2da   : > { %v5981_v42 = vpop.eup %5980  ;;  %1273 = vrot.lane.b32.xlu0 %v1257_v41, %s7770_s26 }
 0x2db   : > { %v1448_v46 = vsel %vm1437_vm9, %v5981_v42, 0.0 }
 0x2dc   : > { %v1449_v47 = vrot.slane %v1448_v46, 4 }
 0x2dd   : > { %1333 = vrot.lane.b32.xlu1 %v6398_v0, %s7774_s24  ;;  %v1459_v0 = vld [vmem:[%s7797_s28 + $0x10] sm:$0xff] }
 0x2de   : > { %v1450_v49 = vadd.f32 %v1449_v47, %v1448_v46  ;;  %1331 = vrot.lane.b32.xlu0 %v6391_v62, %s7774_s24  ;;  %v1460_v62 = vld [vmem:[%s7797_s28 + $0x18] sm:$0xff]  ;;  %v1300_v47 = vsub.f32 1.0, %v6506_v38  ;;  %s7801_s24 = smov 32  }
 0x2e0   : > { %v1451_v50 = vrot.slane %v1450_v49, 2 }
 0x2e2   : > { %v1452_v51 = vadd.f32 %v1451_v50, %v1450_v49 }
 0x2e4   : > { %v1453_v54 = vrot.slane %v1452_v51, 1 }
 0x2e6   : > { %v1454_v56 = vadd.f32 %v1453_v54, %v1452_v51  ;;  %v1299_v51 = vsub.f32 1.0, %v6508_v39 }
 0x2e8   : > { %5982 = vrcp.f32 %v1454_v56 }
 0x2f2   : > { %v5983_v57 = vpop.eup %5982 }
 0x2f3   : > { %v1456_v58 = vmul.f32 %v5983_v57, %v5981_v42 }
 0x2f5   : > { %5175 = vmatprep.subr.mxu0 %v1456_v58 }
 0x2f6   : > { %5176 = vmatpush3.msra.mxu0 %v1456_v58 }
 0x2f7   : > { %5178 = vmatmul.mubr.msk.f32.vlgmr.msra.gmra.mrb[22].mxu0 %vm1437_vm9, %v1458_v60 }
 0x2f8   : > { %5180 = vmatprep.mubr.msk.f32.mxu0 %vm1437_vm9, %v1459_v0 }
 0x2fb   : > { %5181 = vmatmul.mubr.msk.f32.gmra.mrb[24].mxu0 %vm1437_vm9, %v1460_v62 }
 0x2fc   : > { %5183 = vmatprep.mubr.msk.f32.mxu0 %vm1437_vm9, %v1461_v61 }
 0x2ff   : > { %5184 = vmatmul.mubr.msk.f32.gmra.mrb[26].mxu0 %vm1437_vm9, %v1462_v63 }
 0x33b   : > { %v1268_v1 = vpop.permute.xlu1 %1267 }
 0x33c   : > { %v1284_v5 = vadd.f32 %v1268_v1, %v6465_v35 }
 0x33e   : > { %5984 = vtanh.f32 %v1284_v5 }
 0x33f   : > { %v1266_v7 = vpop.permute.xlu1 %1265 }
 0x340   : > { %v1283_v8 = vadd.f32 %v1266_v7, %v6467_v37 }
 0x342   : > { %5986 = vtanh.f32 %v1283_v8 }
 0x343   : > { %v1272_v9 = vpop.permute.xlu1 %1271 }
 0x344   : > { %v1286_v10 = vadd.f32 %v1272_v9, %v6473_v43  ;;  %v1270_v11 = vpop.permute.xlu0 %1269  ;;  %v1702_v9 = vld [vmem:[%s7799_s30] sm:$0xff] }
 0x345   : > { %v1285_v12 = vadd.f32 %v1270_v11, %v6475_v45  ;;  %5209 = vmatprep.mubr.msk.f32.mxu0 %vm1732_vm10, %v1702_v9 }
 0x346   : > { %5988 = vtanh.f32 %v1286_v10 }
 0x347   : > { %5990 = vtanh.f32 %v1285_v12 }
 0x348   : > { %v5985_v14 = vpop.eup %5984 }
 0x349   : > { %1309 = vrot.lane.b32.xlu1 %v5985_v14, %s7772_s2 }
 0x34b   : > { %v1276_v15 = vpop.permute.xlu1 %1275 }
 0x34c   : > { %v5987_v16 = vpop.eup %5986  ;;  %v1288_v35 = vadd.f32 %v1276_v15, %v6481_v55  ;;  %v1274_v53 = vpop.permute.xlu0 %1273 }
 0x34d   : > { %v1287_v37 = vadd.f32 %v1274_v53, %v6483_v59  ;;  %1307 = vrot.lane.b32.xlu0 %v5987_v16, %s7772_s2 }
 0x34e   : > { %5992 = vtanh.f32 %v1288_v35 }
 0x34f   : > { %5994 = vtanh.f32 %v1287_v37  ;;  %v1334_v55 = vpop.permute.xlu1 %1333 }
 0x350   : > { %v5989_v43 = vpop.eup %5988  ;;  %v1332_v59 = vpop.permute.xlu0 %1331  ;;  %v1338_v23 = vmul.f32 %v6490_v19, %v1334_v55  ;;  %v1340_v36 = vmul.f32 %v6498_v31, %v1334_v55  ;;  %v1342_v54 = vmul.f32 %v6506_v38, %v1334_v55 }
 0x351   : > { %v5991_v17 = vpop.eup %5990  ;;  %1313 = vrot.lane.b32.xlu1 %v5989_v43, %s7772_s2  ;;  %v1337_v27 = vmul.f32 %v6493_v22, %v1332_v59  ;;  %v1339_v19 = vmul.f32 %v6500_v33, %v1332_v59  ;;  %v1341_v33 = vmul.f32 %v6508_v39, %v1332_v59  ;;  %v6607_v59 = vld [vmem:[%s7799_s30 + $0x8] sm:$0xff] }
 0x352   : > { %1311 = vrot.lane.b32.xlu0 %v5991_v17, %s7772_s2 }
 0x358   : > { %v5993_v45 = vpop.eup %5992 }
 0x359   : > { %v5995_v18 = vpop.eup %5994  ;;  %1317 = vrot.lane.b32.xlu1 %v5993_v45, %s7772_s2 }
 0x35a   : > { %1315 = vrot.lane.b32.xlu0 %v5995_v18, %s7772_s2 }
 0x3bb   : > { %v1310_v20 = vpop.permute.xlu1 %1309 }
 0x3bc   : > { %v1326_v21 = vmul.f32 %v1310_v20, %v1296_v52  ;;  %v6612_v20 = vld [vmem:[%s7799_s30 + $0x10] sm:$0xff] }
 0x3be   : > { %v1344_v25 = vadd.f32 %v1338_v23, %v1326_v21  ;;  %v6621_v21 = vld [vmem:[%s7799_s30 + $0x18] sm:$0xff]  ;;  %v6626_v23 = vld [vmem:[%s7799_s30 + $0x20] sm:$0xff] }
 0x3bf   : > { %v1308_v26 = vpop.permute.xlu0 %1307 }
 0x3c0   : > { %v1325_v28 = vmul.f32 %v1308_v26, %v1295_v24  ;;  %5996 = vtanh.f32 %v1344_v25  ;;  %v6635_v24 = vld [vmem:[%s7799_s30 + $0x28] sm:$0xff]  ;;  %v6640_v25 = vld [vmem:[%s7799_s30 + $0x30] sm:$0xff]  ;;  %v6649_v26 = vld [vmem:[%s7799_s30 + $0x38] sm:$0xff] }
 0x3c2   : > { %v1343_v29 = vadd.f32 %v1337_v27, %v1325_v28  ;;  %v6654_v27 = vld [vmem:[%s7799_s30 + $0x40] sm:$0xff]  ;;  %v6663_v28 = vld [vmem:[%s7799_s30 + $0x48] sm:$0xff] }
 0x3c3   : > { %v1314_v32 = vpop.permute.xlu1 %1313 }
 0x3c4   : > { %5998 = vtanh.f32 %v1343_v29  ;;  %v1328_v40 = vmul.f32 %v1314_v32, %v1298_v30  ;;  %v1312_v41 = vpop.permute.xlu0 %1311  ;;  %v6668_v29 = vld [vmem:[%s7799_s30 + $0x50] sm:$0xff]  ;;  %v6677_v30 = vld [vmem:[%s7799_s30 + $0x58] sm:$0xff]  ;;  %v1690_v32 = vld [vmem:[%s7800_s4] sm:$0xff] }
 0x3c5   : > { %v1327_v42 = vmul.f32 %v1312_v41, %v1297_v34 }
 0x3c6   : > { %v1346_v44 = vadd.f32 %v1340_v36, %v1328_v40  ;;  %v1691_v36 = vld [vmem:[%s7800_s4 + $0x8] sm:$0xff] }
 0x3c7   : > { %v1345_v46 = vadd.f32 %v1339_v19, %v1327_v42  ;;  %v1692_v42 = vld [vmem:[%s7800_s4 + $0x10] sm:$0xff] }
 0x3c8   : > { %6000 = vtanh.f32 %v1346_v44 }
 0x3c9   : > { %6002 = vtanh.f32 %v1345_v46  ;;  %v1693_v46 = vld [vmem:[%s7800_s4 + $0x18] sm:$0xff] }
 0x3ca   : > { %v5179_v22 = vpop.f32.mrb[22].mxu0  ;;  %v5997_v57 = vpop.eup %5996 }
 0x3cb   : > { %v1547_v49 = vpop.f32.mrb[23].mxu0  ;;  %v1318_v50 = vpop.permute.xlu1 %1317 }
 0x3cc   : > { %v1330_v31 = vmul.f32 %v1318_v50, %v1300_v47  ;;  %5188 = vmatprep.mubr.msk.f32.mxu1 %vm1437_vm9, %v1547_v49  ;;  %v1316_v56 = vpop.permute.xlu0 %1315  ;;  %v1694_v50 = vld [vmem:[%s7800_s4 + $0x20] sm:$0xff] }
 0x3cd   : > { %v1329_v58 = vmul.f32 %v1316_v56, %v1299_v51  ;;  %5189 = vmatmul.mubr.msk.f32.vlgmr.msra.gmra.mrb[12].mxu1 %vm1437_vm9, %v5179_v22 }
 0x3ce   : > { %v5999_v60 = vpop.eup %5998  ;;  %v1348_v0 = vadd.f32 %v1342_v54, %v1330_v31  ;;  %v5182_v62 = vpop.f32.mrb[24].mxu0  ;;  %v1695_v54 = vld [vmem:[%s7800_s4 + $0x28] sm:$0xff] }
 0x3cf   : > { %v1347_v61 = vadd.f32 %v1341_v33, %v1329_v58  ;;  %v1557_v63 = vpop.f32.mrb[25].mxu0  ;;  %v5845_v1 = vpack.i.bf16 %v5997_v57, %v5999_v60 }
 0x3d0   : > { %6004 = vtanh.f32 %v1348_v0  ;;  %5191 = vmatprep.mubr.msk.f32.mxu1 %vm1437_vm9, %v1557_v63 }
 0x3d1   : > { %6006 = vtanh.f32 %v1347_v61  ;;  %5192 = vmatmul.mubr.msk.f32.gmra.mrb[14].mxu1 %vm1437_vm9, %v5182_v62  ;;  %5846 = vrot.lane.b32.xlu0 %v5845_v1, %s7772_s2 }
 0x3d2   : > { %v6001_v38 = vpop.eup %6000  ;;  %v5185_v5 = vpop.f32.mrb[26].mxu0 }
 0x3d3   : > { %v6003_v39 = vpop.eup %6002  ;;  %v1567_v7 = vpop.f32.mrb[27].mxu0 }
 0x3d4   : > { %5194 = vmatprep.mubr.msk.f32.mxu1 %vm1437_vm9, %v1567_v7  ;;  %v5850_v8 = vpack.i.bf16 %v6001_v38, %v6003_v39 }
 0x3d5   : > { %5195 = vmatmul.mubr.msk.f32.gmra.mrb[16].mxu1 %vm1437_vm9, %v5185_v5 }
 0x3d6   : > { %5851 = vrot.lane.b32.xlu1 %v5850_v8, %s7772_s2  ;;  %5230 = vmatprep.mubr.msk.f32.mxu1 %vm1732_vm10, %v1702_v9 }
 0x3da   : > { %v6005_v10 = vpop.eup %6004 }
 0x3db   : > { %v6007_v11 = vpop.eup %6006 }
 0x3dc   : > { %v5855_v12 = vpack.i.bf16 %v6005_v10, %v6007_v11 }
 0x3de   : > { %5856 = vrot.lane.b32.xlu0 %v5855_v12, %s7772_s2  ;;  %s7802_s2 = smov 96  }
 0x443   : > { %v6580_v14 = vpop.permute.xlu0 %5846 }
 0x444   : > { %v5849_v15 = vunpack.i.h.bf16 %v6580_v14  ;;  %v5848_v16 = vunpack.i.l.bf16 %v6580_v14 }
 0x446   : > { %v5550_v35 = vpack.c.bf16 %v5849_v15, %v5848_v16 }
 0x448   : > { %5551 = vmatprep.subr.bf16.mxu0 %v5550_v35  ;;  %v6588_v53 = vpop.permute.xlu1 %5851 }
 0x449   : > { %v5854_v37 = vunpack.i.h.bf16 %v6588_v53  ;;  %v5853_v43 = vunpack.i.l.bf16 %v6588_v53  ;;  %5553 = vmatpush3.bf16.msra.mxu0 %v5550_v35 }
 0x44b   : > { %v5554_v17 = vpack.c.bf16 %v5854_v37, %v5853_v43 }
 0x44d   : > { %5555 = vmatprep.subr.bf16.mxu0 %v5554_v17 }
 0x44e   : > { %5557 = vmatpush3.bf16.msra.mxu0 %v5554_v17 }
 0x450   : > { %v6596_v45 = vpop.permute.xlu0 %5856 }
 0x451   : > { %v5859_v18 = vunpack.i.h.bf16 %v6596_v45  ;;  %v5858_v55 = vunpack.i.l.bf16 %v6596_v45  ;;  %v4725_v45 = vld [vmem:[%s7751_s10 + $0x18] sm:$0xff] }
 0x453   : > { %v5558_v52 = vpack.c.bf16 %v5859_v18, %v5858_v55 }
 0x455   : > { %5559 = vmatprep.subr.bf16.mxu0 %v5558_v52 }
 0x456   : > { %5561 = vmatpush3.bf16.msra.mxu0 %v5558_v52 }
 0x457   : > { %5575 = vmatprep.subr.bf16.mxu0 %v5550_v35 }
 0x459   : > { %5210 = vmatmul.mubr.msk.f32.vlgmr.msra.gmra.mrb[28].mxu0 %vm1732_vm10, %v6607_v59 }
 0x45a   : > { %5577 = vmatpush3.bf16.msra.mxu0 %v5550_v35  ;;  %5212 = vmatprep.mubr.msk.f32.mxu0 %vm1732_vm10, %v6612_v20 }
 0x45b   : > { %5579 = vmatprep.subr.bf16.mxu0 %v5554_v17 }
 0x45d   : > { %5213 = vmatmul.mubr.msk.f32.gmra.mrb[30].mxu0 %vm1732_vm10, %v6621_v21 }
 0x45e   : > { %5581 = vmatpush3.bf16.msra.mxu0 %v5554_v17  ;;  %5215 = vmatprep.mubr.msk.f32.mxu0 %vm1732_vm10, %v6626_v23 }
 0x45f   : > { %5583 = vmatprep.subr.bf16.mxu0 %v5558_v52 }
 0x461   : > { %5216 = vmatmul.mubr.msk.f32.gmra.mrb[32].mxu0 %vm1732_vm10, %v6635_v24 }
 0x462   : > { %5585 = vmatpush3.bf16.msra.mxu0 %v5558_v52  ;;  %5251 = vmatprep.mubr.msk.f32.mxu0 %vm1732_vm10, %v6640_v25 }
 0x463   : > { %5599 = vmatprep.subr.bf16.mxu0 %v5550_v35 }
 0x465   : > { %5252 = vmatmul.mubr.msk.f32.vlgmr.msra.gmra.mrb[34].mxu0 %vm1732_vm10, %v6649_v26 }
 0x466   : > { %5601 = vmatpush3.bf16.msra.mxu0 %v5550_v35  ;;  %5254 = vmatprep.mubr.msk.f32.mxu0 %vm1732_vm10, %v6654_v27 }
 0x467   : > { %5603 = vmatprep.subr.bf16.mxu0 %v5554_v17 }
 0x469   : > { %5255 = vmatmul.mubr.msk.f32.gmra.mrb[36].mxu0 %vm1732_vm10, %v6663_v28 }
 0x46a   : > { %5605 = vmatpush3.bf16.msra.mxu0 %v5554_v17  ;;  %5257 = vmatprep.mubr.msk.f32.mxu0 %vm1732_vm10, %v6668_v29 }
 0x46b   : > { %5607 = vmatprep.subr.bf16.mxu0 %v5558_v52 }
 0x46d   : > { %5258 = vmatmul.mubr.msk.f32.gmra.mrb[38].mxu0 %vm1732_vm10, %v6677_v30 }
 0x46e   : > { %5609 = vmatpush3.bf16.msra.mxu0 %v5558_v52 }
 0x46f   : > { %5622 = vmatprep.subr.bf16.mxu0 %v6118_v48 }
 0x4a0   : > { %v5190_v34 = vpop.f32.mrb[12].mxu1 }
 0x4a1   : > { %v1661_v40 = vpop.f32.mrb[13].mxu1  ;;  %v6690_v19 = vmul.f32 %v5190_v34, %v1691_v36  ;;  %v2516_v36 = vld [vmem:[%s7757_s16] sm:$0xff] }
 0x4a2   : > { %v6688_v41 = vmul.f32 %v1690_v32, %v1661_v40  ;;  %v2517_v40 = vld [vmem:[%s7757_s16 + $0x8] sm:$0xff] }
 0x4a4   : > { %v5193_v44 = vpop.f32.mrb[14].mxu1  ;;  %5293 = vmatprep.mubr.msk.f32.mxu0 %vm1732_vm10, %v6688_v41 }
 0x4a5   : > { %v1671_v22 = vpop.f32.mrb[15].mxu1  ;;  %5294 = vmatmul.mubr.msk.f32.vlgmr.msra.gmra.mrb[40].mxu0 %vm1732_vm10, %v6690_v19  ;;  %v6704_v49 = vmul.f32 %v5193_v44, %v1693_v46  ;;  %v2520_v46 = vld [vmem:[%s7757_s16 + $0x20] sm:$0xff] }
 0x4a6   : > { %v6702_v47 = vmul.f32 %v1692_v42, %v1671_v22  ;;  %v2519_v42 = vld [vmem:[%s7757_s16 + $0x18] sm:$0xff]  ;;  %v2521_v22 = vld [vmem:[%s7757_s16 + $0x28] sm:$0xff] }
 0x4a8   : > { %v5196_v51 = vpop.f32.mrb[16].mxu1  ;;  %5296 = vmatprep.mubr.msk.f32.mxu0 %vm1732_vm10, %v6702_v47 }
 0x4a9   : > { %v1681_v31 = vpop.f32.mrb[17].mxu1  ;;  %5297 = vmatmul.mubr.msk.f32.gmra.mrb[42].mxu0 %vm1732_vm10, %v6704_v49  ;;  %v6718_v57 = vmul.f32 %v5196_v51, %v1695_v54  ;;  %v5629_v51 = vpack.c.bf16 %v2521_v22, %v2520_v46  ;;  %v2522_v54 = vld [vmem:[%s7757_s16 + $0x30] sm:$0xff]  ;;  %v2535_v46 = vld [vmem:[%s7757_s16 + $0x98] sm:$0xff] }
 0x4aa   : > { %v6716_v56 = vmul.f32 %v1694_v50, %v1681_v31  ;;  %v2523_v31 = vld [vmem:[%s7757_s16 + $0x38] sm:$0xff] }
 0x4ac   : > { %5299 = vmatprep.mubr.msk.f32.mxu0 %vm1732_vm10, %v6716_v56 }
 0x4ad   : > { %5300 = vmatmul.mubr.msk.f32.gmra.mrb[44].mxu0 %vm1732_vm10, %v6718_v57 }
 0x52c   : > { %v5211_v33 = vpop.f32.mrb[28].mxu0 }
 0x52d   : > { %v1817_v58 = vpop.f32.mrb[29].mxu0 }
 0x52e   : > { %v5860_v60 = vpack.i.bf16 %v5211_v33, %v1817_v58  ;;  %v5562_v0 = vpack.c.bf16 %v5211_v33, %v1817_v58  ;;  %v5632_v58 = vpack.c.bf16 %v2523_v31, %v2522_v54  ;;  %v2539_v54 = vld [vmem:[%s7757_s16 + $0xb8] sm:$0xff] }
 0x530   : > { %5861 = vrot.lane.b32.xlu1 %v5860_v60, %s7801_s24  ;;  %v5214_v62 = vpop.f32.mrb[30].mxu0  ;;  %5563 = vmatprep.subr.bf16.mxu1 %v5562_v0  ;;  %v2524_v60 = vld [vmem:[%s7757_s16 + $0x40] sm:$0xff] }
 0x531   : > { %v1827_v61 = vpop.f32.mrb[31].mxu0  ;;  %5565 = vmatpush3.bf16.msra.mxu1 %v5562_v0  ;;  %v2525_v0 = vld [vmem:[%s7757_s16 + $0x48] sm:$0xff] }
 0x532   : > { %v5865_v63 = vpack.i.bf16 %v5214_v62, %v1827_v61  ;;  %v5566_v1 = vpack.c.bf16 %v5214_v62, %v1827_v61 }
 0x534   : > { %5866 = vrot.lane.b32.xlu0 %v5865_v63, %s7801_s24  ;;  %v6726_v38 = vpop.f32.mrb[32].mxu0  ;;  %5567 = vmatprep.subr.bf16.mxu1 %v5566_v1 }
 0x535   : > { %v6728_v5 = vpop.f32.mrb[33].mxu0  ;;  %5569 = vmatpush3.bf16.msra.mxu1 %v5566_v1  ;;  %v5635_v1 = vpack.c.bf16 %v2525_v0, %v2524_v60  ;;  %v2543_v60 = vld [vmem:[%s7757_s16 + $0xd8] sm:$0xff] }
 0x536   : > { %v5890_v39 = vpack.i.bf16 %v6726_v38, %v6728_v5  ;;  %v5570_v7 = vpack.c.bf16 %v6726_v38, %v6728_v5  ;;  %v4718_v38 = vld [vmem:[%s7753_s12 + $0x30] sm:$0xff] }
 0x538   : > { %5571 = vmatprep.subr.bf16.mxu1 %v5570_v7  ;;  %v5253_v8 = vpop.f32.mrb[34].mxu0 }
 0x539   : > { %5573 = vmatpush3.bf16.msra.mxu1 %v5570_v7  ;;  %v2032_v9 = vpop.f32.mrb[35].mxu0  ;;  %v2526_v7 = vld [vmem:[%s7757_s16 + $0x50] sm:$0xff] }
 0x53a   : > { %v5870_v10 = vpack.i.bf16 %v5253_v8, %v2032_v9  ;;  %v5586_v11 = vpack.c.bf16 %v5253_v8, %v2032_v9  ;;  %v2527_v8 = vld [vmem:[%s7757_s16 + $0x58] sm:$0xff] }
 0x53c   : > { %5231 = vmatmul.mubr.msk.f32.vlgmr.msra.gmra.mrb[18].mxu1 %vm1732_vm10, %v6607_v59  ;;  %v6736_v12 = vpop.f32.mrb[36].mxu0  ;;  %5587 = vmatprep.subr.bf16.mxu1 %v5586_v11 }
 0x53d   : > { %v6738_v35 = vpop.f32.mrb[37].mxu0  ;;  %5589 = vmatpush3.bf16.msra.mxu1 %v5586_v11  ;;  %5233 = vmatprep.mubr.msk.f32.mxu1 %vm1732_vm10, %v6612_v20  ;;  %v5638_v11 = vpack.c.bf16 %v2527_v8, %v2526_v7 }
 0x53e   : > { %v5885_v17 = vpack.i.bf16 %v6736_v12, %v6738_v35  ;;  %v5590_v52 = vpack.c.bf16 %v6736_v12, %v6738_v35  ;;  %5871 = vrot.lane.b32.xlu1 %v5870_v10, %s7802_s2  ;;  %v4717_v12 = vld [vmem:[%s7753_s12 + $0x28] sm:$0xff]  ;;  %v6943_v35 = vld [vmem:[%s7792_s27 + $0x10] sm:$0xff] }
 0x540   : > { %5234 = vmatmul.mubr.msk.f32.gmra.mrb[20].mxu1 %vm1732_vm10, %v6621_v21  ;;  %v6749_v59 = vpop.f32.mrb[38].mxu0  ;;  %5591 = vmatprep.subr.bf16.mxu1 %v5590_v52 }
 0x541   : > { %v6751_v32 = vpop.f32.mrb[39].mxu0  ;;  %5593 = vmatpush3.bf16.msra.mxu1 %v5590_v52  ;;  %5236 = vmatprep.mubr.msk.f32.mxu1 %vm1732_vm10, %v6626_v23  ;;  %v2528_v52 = vld [vmem:[%s7757_s16 + $0x60] sm:$0xff] }
 0x542   : > { %v5594_v20 = vpack.c.bf16 %v6749_v59, %v6751_v32 }
 0x544   : > { %5237 = vmatmul.mubr.msk.f32.gmra.mrb[22].mxu1 %vm1732_vm10, %v6635_v24  ;;  %5595 = vmatprep.subr.bf16.mxu1 %v5594_v20 }
 0x545   : > { %5597 = vmatpush3.bf16.msra.mxu1 %v5594_v20  ;;  %5272 = vmatprep.mubr.msk.f32.mxu1 %vm1732_vm10, %v6640_v25  ;;  %v2529_v20 = vld [vmem:[%s7757_s16 + $0x68] sm:$0xff] }
 0x548   : > { %5273 = vmatmul.mubr.msk.f32.vlgmr.msra.gmra.mrb[24].mxu1 %vm1732_vm10, %v6649_v26 }
 0x549   : > { %5275 = vmatprep.mubr.msk.f32.mxu1 %vm1732_vm10, %v6654_v27 }
 0x54c   : > { %5276 = vmatmul.mubr.msk.f32.gmra.mrb[26].mxu1 %vm1732_vm10, %v6663_v28 }
 0x54d   : > { %5278 = vmatprep.mubr.msk.f32.mxu1 %vm1732_vm10, %v6668_v29 }
 0x550   : > { %5279 = vmatmul.mubr.msk.f32.gmra.mrb[28].mxu1 %vm1732_vm10, %v6677_v30 }
 0x551   : > { %5314 = vmatprep.mubr.msk.f32.mxu1 %vm1732_vm10, %v6688_v41  ;;  %v2518_v41 = vld [vmem:[%s7757_s16 + $0x10] sm:$0xff] }
 0x552   : > { %v5626_v44 = vpack.c.bf16 %v2519_v42, %v2518_v41  ;;  %v2532_v41 = vld [vmem:[%s7757_s16 + $0x80] sm:$0xff] }
 0x578   : > { %v5295_v21 = vpop.f32.mrb[40].mxu0 }
 0x579   : > { %2444 = vrot.lane.b32.xlu0 %v5295_v21, %s7801_s24  ;;  %v2240_v23 = vpop.f32.mrb[41].mxu0 }
 0x57a   : > { %v5610_v24 = vpack.c.bf16 %v5295_v21, %v2240_v23 }
 0x57c   : > { %v6774_v26 = vpop.f32.mrb[42].mxu0  ;;  %5611 = vmatprep.subr.bf16.mxu1 %v5610_v24 }
 0x57d   : > { %2442 = vrot.lane.b32.xlu0 %v2240_v23, %s7801_s24  ;;  %v2250_v27 = vpop.f32.mrb[43].mxu0  ;;  %5613 = vmatpush3.bf16.msra.mxu1 %v5610_v24  ;;  %v5641_v24 = vpack.c.bf16 %v2529_v20, %v2528_v52 }
 0x57e   : > { %v5614_v28 = vpack.c.bf16 %v6774_v26, %v2250_v27  ;;  %2446 = vrot.lane.b32.xlu1 %v2250_v27, %s7801_s24  ;;  %v2530_v27 = vld [vmem:[%s7757_s16 + $0x70] sm:$0xff] }
 0x580   : > { %v6779_v29 = vpop.f32.mrb[44].mxu0  ;;  %5615 = vmatprep.subr.bf16.mxu1 %v5614_v28 }
 0x581   : > { %v6781_v30 = vpop.f32.mrb[45].mxu0  ;;  %5617 = vmatpush3.bf16.msra.mxu1 %v5614_v28  ;;  %v2531_v28 = vld [vmem:[%s7757_s16 + $0x78] sm:$0xff] }
 0x582   : > { %v5618_v34 = vpack.c.bf16 %v6779_v29, %v6781_v30 }
 0x584   : > { %5619 = vmatprep.subr.bf16.mxu1 %v5618_v34 }
 0x585   : > { %5621 = vmatpush3.bf16.msra.mxu1 %v5618_v34 }
 0x588   : > { %5315 = vmatmul.mubr.msk.f32.vlgmr.msra.gmra.mrb[30].mxu1 %vm1732_vm10, %v6690_v19  ;;  %v5623_v19 = vpack.c.bf16 %v2517_v40, %v2516_v36  ;;  %v5644_v40 = vpack.c.bf16 %v2531_v28, %v2530_v27 }
 0x589   : > { %5317 = vmatprep.mubr.msk.f32.mxu1 %vm1732_vm10, %v6702_v47 }
 0x58a   : > { %5624 = vmatpush1.bf16.msra.mxu0 %v5623_v19  ;;  %v2533_v19 = vld [vmem:[%s7757_s16 + $0x88] sm:$0xff] }
 0x58b   : > { %5625 = vmatprep.subr.bf16.mxu0 %v6118_v48  ;;  %v5647_v42 = vpack.c.bf16 %v2533_v19, %v2532_v41 }
 0x58c   : > { %5318 = vmatmul.mubr.msk.f32.gmra.mrb[32].mxu1 %vm1732_vm10, %v6704_v49 }
 0x58d   : > { %5320 = vmatprep.mubr.msk.f32.mxu1 %vm1732_vm10, %v6716_v56 }
 0x58e   : > { %5627 = vmatpush1.bf16.msra.mxu0 %v5626_v44  ;;  %v2534_v44 = vld [vmem:[%s7757_s16 + $0x90] sm:$0xff] }
 0x58f   : > { %5628 = vmatprep.subr.bf16.mxu0 %v6118_v48  ;;  %v5650_v22 = vpack.c.bf16 %v2535_v46, %v2534_v44 }
 0x590   : > { %5321 = vmatmul.mubr.msk.f32.gmra.mrb[34].mxu1 %vm1732_vm10, %v6718_v57 }
 0x591   : > { %5331 = vmatprep.mubr.msk.f32.mxu1 %vm998_vm2, %v6943_v35 }
 0x592   : > { %5630 = vmatpush1.bf16.msra.mxu0 %v5629_v51  ;;  %v2538_v51 = vld [vmem:[%s7757_s16 + $0xb0] sm:$0xff] }
 0x593   : > { %5631 = vmatprep.subr.bf16.mxu0 %v6118_v48  ;;  %v5656_v31 = vpack.c.bf16 %v2539_v54, %v2538_v51 }
 0x596   : > { %5633 = vmatpush1.bf16.msra.mxu0 %v5632_v58  ;;  %v2542_v58 = vld [vmem:[%s7757_s16 + $0xd0] sm:$0xff] }
 0x597   : > { %5634 = vmatprep.subr.bf16.mxu0 %v6118_v48  ;;  %v5662_v0 = vpack.c.bf16 %v2543_v60, %v2542_v58 }
 0x59a   : > { %5636 = vmatpush1.bf16.msra.mxu0 %v5635_v1 }
 0x59b   : > { %5637 = vmatprep.subr.bf16.mxu0 %v6118_v48 }
 0x59e   : > { %5639 = vmatpush1.bf16.msra.mxu0 %v5638_v11 }
 0x59f   : > { %5640 = vmatprep.subr.bf16.mxu0 %v6118_v48 }
 0x5a2   : > { %5642 = vmatpush1.bf16.msra.mxu0 %v5641_v24 }
 0x5a3   : > { %5643 = vmatprep.subr.bf16.mxu0 %v6118_v48 }
 0x5a6   : > { %5645 = vmatpush1.bf16.msra.mxu0 %v5644_v40 }
 0x5a7   : > { %5646 = vmatprep.subr.bf16.mxu0 %v6118_v48 }
 0x5aa   : > { %5648 = vmatpush1.bf16.msra.mxu0 %v5647_v42 }
 0x5ab   : > { %5649 = vmatprep.subr.bf16.mxu0 %v6118_v48 }
 0x5ae   : > { %5651 = vmatpush1.bf16.msra.mxu0 %v5650_v22 }
 0x5af   : > { %5652 = vmatprep.subr.bf16.mxu0 %v6118_v48 }
 0x60f   : > { %v5232_v47 = vpop.f32.mrb[18].mxu1 }
 0x610   : > { %v1912_v49 = vpop.f32.mrb[19].mxu1 }
 0x611   : > { %v5875_v50 = vpack.i.bf16 %v5232_v47, %v1912_v49  ;;  %v2536_v47 = vld [vmem:[%s7757_s16 + $0xa0] sm:$0xff]  ;;  %v2537_v49 = vld [vmem:[%s7757_s16 + $0xa8] sm:$0xff] }
 0x613   : > { %5876 = vrot.lane.b32.xlu1 %v5875_v50, %s7803_s9  ;;  %v5235_v56 = vpop.f32.mrb[20].mxu1  ;;  %v5653_v50 = vpack.c.bf16 %v2537_v49, %v2536_v47 }
 0x614   : > { %v1922_v57 = vpop.f32.mrb[21].mxu1 }
 0x615   : > { %v5880_v33 = vpack.i.bf16 %v5235_v56, %v1922_v57  ;;  %5654 = vmatpush1.bf16.msra.mxu0 %v5653_v50  ;;  %v2540_v56 = vld [vmem:[%s7757_s16 + $0xc0] sm:$0xff]  ;;  %v2541_v57 = vld [vmem:[%s7757_s16 + $0xc8] sm:$0xff] }
 0x616   : > { %5655 = vmatprep.subr.bf16.mxu0 %v6118_v48 }
 0x617   : > { %5881 = vrot.lane.b32.xlu0 %v5880_v33, %s7803_s9  ;;  %v6830_v62 = vpop.f32.mrb[22].mxu1  ;;  %v5659_v33 = vpack.c.bf16 %v2541_v57, %v2540_v56 }
 0x618   : > { %v6832_v61 = vpop.f32.mrb[23].mxu1 }
 0x619   : > { %v5895_v63 = vpack.i.bf16 %v6830_v62, %v6832_v61  ;;  %5657 = vmatpush1.bf16.msra.mxu0 %v5656_v31  ;;  %v5862_v62 = vpop.permute.xlu1 %5861  ;;  %v5867_v61 = vpop.permute.xlu0 %5866 }
 0x61a   : > { %5658 = vmatprep.subr.bf16.mxu0 %v6118_v48  ;;  %v5863_v28 = vunpack.i.l.bf16 %v5862_v62  ;;  %v5864_v19 = vunpack.i.h.bf16 %v5862_v62  ;;  %v5868_v58 = vunpack.i.l.bf16 %v5867_v61 }
 0x61b   : > { %v6843_v9 = vpop.f32.mrb[24].mxu1 }
 0x61c   : > { %v6845_v10 = vpop.f32.mrb[25].mxu1  ;;  %v2484_v42 = vsel %vm998_vm2, %v5848_v16, %v5863_v28  ;;  %v2485_v16 = vsel %vm998_vm2, %v5849_v15, %v5864_v19 }
 0x61d   : > { %5660 = vmatpush1.bf16.msra.mxu0 %v5659_v33 }
 0x61e   : > { %5661 = vmatprep.subr.bf16.mxu0 %v6118_v48 }
 0x61f   : > { %v6854_v21 = vpop.f32.mrb[26].mxu1 }
 0x620   : > { %v6856_v23 = vpop.f32.mrb[27].mxu1 }
 0x621   : > { %5663 = vmatpush1.bf16.msra.mxu0 %v5662_v0 }
 0x623   : > { %v6865_v34 = vpop.f32.mrb[28].mxu1 }
 0x624   : > { %v6867_v36 = vpop.f32.mrb[29].mxu1 }
 0x65b   : > { %v5316_v1 = vpop.f32.mrb[30].mxu1 }
 0x65c   : > { %2468 = vrot.lane.b32.xlu1 %v5316_v1, %s7803_s9  ;;  %v2335_v7 = vpop.f32.mrb[31].mxu1 }
 0x65d   : > { %2466 = vrot.lane.b32.xlu0 %v2335_v7, %s7803_s9  ;;  %v5869_v7 = vunpack.i.h.bf16 %v5867_v61 }
 0x65f   : > { %v5319_v8 = vpop.f32.mrb[32].mxu1 }
 0x660   : > { %2448 = vrot.lane.b32.xlu1 %v6774_v26, %s7801_s24  ;;  %v2345_v11 = vpop.f32.mrb[33].mxu1  ;;  %v4716_v26 = vld [vmem:[%s7753_s12 + $0x20] sm:$0xff] }
 0x661   : > { %5886 = vrot.lane.b32.xlu0 %v5885_v17, %s7802_s2  ;;  %v5664_v5 = vpack.c.bf16 %v4717_v12, %v4716_v26 }
 0x663   : > { %v5322_v52 = vpop.f32.mrb[34].mxu1  ;;  %5665 = vmatprep.subr.bf16.mxu1 %v5664_v5 }
 0x664   : > { %5891 = vrot.lane.b32.xlu1 %v5890_v39, %s7801_s24  ;;  %v2355_v20 = vpop.f32.mrb[35].mxu1  ;;  %v4719_v39 = vld [vmem:[%s7753_s12 + $0x38] sm:$0xff]  ;;  %5667 = vmatpush3.bf16.msra.mxu1 %v5664_v5 }
 0x665   : > { %2450 = vrot.lane.b32.xlu0 %v6781_v30, %s7801_s24  ;;  %v5668_v17 = vpack.c.bf16 %v4719_v39, %v4718_v38  ;;  %v6959_v30 = vld [vmem:[%s7792_s27 + $0x18] sm:$0xff] }
 0x667   : > { %5669 = vmatprep.subr.bf16.mxu1 %v5668_v17 }
 0x668   : > { %2470 = vrot.lane.b32.xlu1 %v2345_v11, %s7803_s9  ;;  %5671 = vmatpush3.bf16.msra.mxu1 %v5668_v17  ;;  %v2486_v11 = vsel %vm998_vm2, %v5853_v43, %v5868_v58 }
 0x669   : > { %2472 = vrot.lane.b32.xlu0 %v5319_v8, %s7803_s9 }
 0x66b   : > { %5332 = vmatmul.mubr.msk.f32.vlgmr.msra.gmra.mrb[36].mxu1 %vm998_vm2, %v6959_v30 }
 0x66c   : > { %5896 = vrot.lane.b32.xlu1 %v5895_v63, %s7803_s9  ;;  %v2445_v63 = vpop.permute.xlu0 %2444 }
 0x66d   : > { %2474 = vrot.lane.b32.xlu0 %v2355_v20, %s7803_s9  ;;  %v2505_v51 = vsel %vm998_vm2, %v6843_v9, %v2445_v63 }
 0x670   : > { %2426 = vrot.lane.b32.xlu1 %v6751_v32, %s7802_s2  ;;  %v5872_v32 = vpop.permute.xlu1 %5871 }
 0x671   : > { %2452 = vrot.lane.b32.xlu0 %v6779_v29, %s7801_s24  ;;  %v2443_v29 = vpop.permute.xlu0 %2442  ;;  %v5873_v22 = vunpack.i.l.bf16 %v5872_v32  ;;  %v5874_v57 = vunpack.i.h.bf16 %v5872_v32 }
 0x672   : > { %v2504_v47 = vsel %vm998_vm2, %v6845_v10, %v2443_v29 }
 0x674   : > { %2476 = vrot.lane.b32.xlu1 %v5322_v52, %s7803_s9  ;;  %v2447_v24 = vpop.permute.xlu1 %2446 }
 0x675   : > { %2428 = vrot.lane.b32.xlu0 %v6749_v59, %s7802_s2  ;;  %v2506_v15 = vsel %vm998_vm2, %v6856_v23, %v2447_v24 }
 0x685   : > { %v5877_v27 = vpop.permute.xlu1 %5876 }
 0x686   : > { %v5878_v40 = vunpack.i.l.bf16 %v5877_v27  ;;  %v5879_v44 = vunpack.i.h.bf16 %v5877_v27 }
 0x688   : > { %v2491_v46 = vsel %vm2490_vm11, %v2484_v42, %v5878_v40  ;;  %v2492_v10 = vsel %vm2490_vm11, %v2485_v16, %v5879_v44 }
 0x689   : > { %v5882_v41 = vpop.permute.xlu0 %5881  ;;  %v2498_v54 = vsel %vm2497_vm12, %v2491_v46, %v5873_v22  ;;  %v2499_v9 = vsel %vm2497_vm12, %v2492_v10, %v5874_v57 }
 0x68a   : > { %v5883_v0 = vunpack.i.l.bf16 %v5882_v41  ;;  %v5884_v52 = vunpack.i.h.bf16 %v5882_v41 }
 0x68c   : > { %v2493_v38 = vsel %vm2490_vm11, %v2486_v11, %v5883_v0  ;;  %v4741_v0 = vld [vmem:[%s7756_s15 + $0x10] sm:$0xff] }
 0x6ce   : > { %v2469_v59 = vpop.permute.xlu1 %2468 }
 0x6cf   : > { %v2467_v49 = vpop.permute.xlu0 %2466  ;;  %v2511_v31 = vsel %vm2490_vm11, %v2505_v51, %v2469_v59 }
 0x6d0   : > { %v2510_v50 = vsel %vm2490_vm11, %v2504_v47, %v2467_v49  ;;  %v4721_v49 = vld [vmem:[%s7754_s13 + $0x1] ss:$0 sm:$0xff] }
 0x6d1   : > { %4708 = vmatprep.mubr.msk.f32.mxu0 %vm2497_vm12, %v2510_v50 }
 0x6d2   : > { %v2449_v56 = vpop.permute.xlu1 %2448  ;;  %2634 = vmatmul.mubr.f32.vlgmr.msra.gmra.mrb[46].mxu0 %v2498_v54  ;;  %v4707_v54 = vld [vmem:[%s7758_s17] ss:$0 sm:$0xff] }
 0x6d3   : > { %4709 = vmatprep.mubr.msk.f32.mxu0 %vm2497_vm12, %v2511_v31  ;;  %v5887_v33 = vpop.permute.xlu0 %5886  ;;  %v2507_v20 = vsel %vm998_vm2, %v6854_v21, %v2449_v56  ;;  %v2487_v21 = vsel %vm998_vm2, %v5854_v37, %v5869_v7 }
 0x6d4   : > { %v5888_v14 = vunpack.i.l.bf16 %v5887_v33  ;;  %v5889_v5 = vunpack.i.h.bf16 %v5887_v33  ;;  %v2494_v63 = vsel %vm2490_vm11, %v2487_v21, %v5884_v52 }
 0x6d6   : > { %v5892_v60 = vpop.permute.xlu1 %5891  ;;  %2639 = vmatmul.mubr.f32.gmra.mrb[48].mxu0 %v2499_v9  ;;  %v2500_v23 = vsel %vm2497_vm12, %v2493_v38, %v5888_v14  ;;  %v2501_v29 = vsel %vm2497_vm12, %v2494_v63, %v5889_v5 }
 0x6d7   : > { %v2451_v1 = vpop.permute.xlu0 %2450  ;;  %v5893_v39 = vunpack.i.l.bf16 %v5892_v60  ;;  %v5894_v28 = vunpack.i.h.bf16 %v5892_v60 }
 0x6d8   : > { %v2508_v62 = vsel %vm998_vm2, %v6867_v36, %v2451_v1  ;;  %v4742_v1 = vld [vmem:[%s7756_s15 + $0x18] sm:$0x3] }
 0x6d9   : > { %v2488_v27 = vsel %vm998_vm2, %v5858_v55, %v5893_v39  ;;  %v2489_v55 = vsel %vm998_vm2, %v5859_v18, %v5894_v28 }
 0x6da   : > { %v2471_v8 = vpop.permute.xlu1 %2470 }
 0x6db   : > { %v2512_v26 = vsel %vm2490_vm11, %v2506_v15, %v2471_v8  ;;  %v2473_v12 = vpop.permute.xlu0 %2472  ;;  %v5677_v15 = vpack.c.bf16 %v4742_v1, %v4741_v0 }
 0x6dc   : > { %v2513_v17 = vsel %vm2490_vm11, %v2507_v20, %v2473_v12  ;;  %4710 = vmatprep.mubr.msk.f32.mxu0 %vm2497_vm12, %v2512_v26 }
 0x6dd   : > { %2644 = vmatmul.mubr.f32.gmra.mrb[50].mxu0 %v2500_v23 }
 0x6de   : > { %4711 = vmatprep.mubr.msk.f32.mxu0 %vm2497_vm12, %v2513_v17  ;;  %v5897_v43 = vpop.permute.xlu1 %5896 }
 0x6df   : > { %v5898_v61 = vunpack.i.l.bf16 %v5897_v43  ;;  %v2475_v32 = vpop.permute.xlu0 %2474  ;;  %v5899_v36 = vunpack.i.h.bf16 %v5897_v43 }
 0x6e0   : > { %v2514_v24 = vsel %vm2490_vm11, %v2508_v62, %v2475_v32  ;;  %v6084_v62 = vld [vmem:[%s7797_s28] sm:$0xff] }
 0x6e1   : > { %2649 = vmatmul.mubr.f32.gmra.mrb[52].mxu0 %v2501_v29  ;;  %v2495_v53 = vsel %vm2490_vm11, %v2488_v27, %v5898_v61  ;;  %v2496_v59 = vsel %vm2490_vm11, %v2489_v55, %v5899_v36  ;;  %v4727_v61 = vld [vmem:[%s7752_s11 + $0x1] ss:$0 sm:$0xff] }
 0x6e2   : > { %v2427_v37 = vpop.permute.xlu1 %2426  ;;  %4712 = vmatprep.mubr.msk.f32.mxu0 %vm2497_vm12, %v2514_v24 }
 0x6e3   : > { %v2453_v40 = vpop.permute.xlu0 %2452  ;;  %v2502_v41 = vsel %vm2497_vm12, %v2495_v53, %v2427_v37 }
 0x6e4   : > { %v2509_v19 = vsel %vm998_vm2, %v6865_v34, %v2453_v40  ;;  %v4724_v34 = vld [vmem:[%s7751_s10 + $0x10] sm:$0xff] }
 0x6e5   : > { %2654 = vmatmul.mubr.f32.gmra.mrb[54].mxu0 %v2502_v41  ;;  %v5672_v18 = vpack.c.bf16 %v4725_v45, %v4724_v34 }
 0x6e6   : > { %v2477_v42 = vpop.permute.xlu1 %2476 }
 0x6e7   : > { %v2515_v44 = vsel %vm2490_vm11, %v2509_v19, %v2477_v42  ;;  %v2429_v46 = vpop.permute.xlu0 %2428  ;;  %5673 = vmatprep.subr.bf16.mxu1 %v5672_v18 }
 0x6e8   : > { %4713 = vmatprep.mubr.msk.f32.mxu0 %vm2497_vm12, %v2515_v44  ;;  %v2503_v22 = vsel %vm2497_vm12, %v2496_v59, %v2429_v46  ;;  %5675 = vmatpush3.bf16.msra.mxu1 %v5672_v18 }
 0x6e9   : > { %2659 = vmatmul.mubr.f32.gmra.mrb[56].mxu0 %v2503_v22  ;;  %5676 = vmatprep.subr.bf16.mxu1 %v6118_v48 }
 0x6ea   : > { %5430 = vmatprep.mubr.msk.f32.mxu0 %vm1732_vm10, %v6640_v25 }
 0x73e   : > { %v5333_v47 = vpop.f32.mrb[36].mxu1 }
 0x73f   : > { %v7032_v50 = vadd.f32 %v5333_v47, %v4721_v49  ;;  %v2758_v25 = vpop.f32.mrb[37].mxu1 }
 0x740   : > { %v7034_v51 = vadd.f32 %v4721_v49, %v2758_v25 }
 0x741   : > { %2937 = vrot.lane.b32.xlu0 %v7032_v50, %s7803_s9 }
 0x742   : > { %2935 = vrot.lane.b32.xlu1 %v7034_v51, %s7803_s9 }
 0x7a5   : > { %v2635_v16 = vpop.f32.mrb[46].mxu0 }
 0x7a6   : > { %v2636_v31 = vadd.f32 %v4707_v54, %v2635_v16  ;;  %v2637_v56 = vpop.f32.mrb[47].mxu0 }
 0x7a8   : > { %6008 = vtanh.f32 %v2636_v31 }
 0x7a9   : > { %v2640_v10 = vpop.f32.mrb[48].mxu0 }
 0x7aa   : > { %v2641_v57 = vadd.f32 %v4707_v54, %v2640_v10  ;;  %v2642_v33 = vpop.f32.mrb[49].mxu0 }
 0x7ac   : > { %6010 = vtanh.f32 %v2641_v57 }
 0x7b0   : > { %v2645_v9 = vpop.f32.mrb[50].mxu0 }
 0x7b1   : > { %v2646_v58 = vadd.f32 %v4707_v54, %v2645_v9  ;;  %v2647_v60 = vpop.f32.mrb[51].mxu0 }
 0x7b2   : > { %v6009_v14 = vpop.eup %6008 }
 0x7b3   : > { %6012 = vtanh.f32 %v2646_v58  ;;  %5338 = vmatprep.mubr.msk.f32.mxu1 %vm1089_vm3, %v6009_v14  ;;  %v2938_v0 = vpop.permute.xlu0 %2937 }
 0x7b4   : > { %v2650_v7 = vpop.f32.mrb[52].mxu0 }
 0x7b5   : > { %v2651_v8 = vadd.f32 %v4707_v54, %v2650_v7  ;;  %v2652_v11 = vpop.f32.mrb[53].mxu0 }
 0x7b6   : > { %v6011_v52 = vpop.eup %6010 }
 0x7b7   : > { %6014 = vtanh.f32 %v2651_v8  ;;  %5339 = vmatmul.mubr.msk.f32.vlgmr.msra.gmra.mrb[38].mxu1 %vm1089_vm3, %v6011_v52 }
 0x7b8   : > { %v2655_v20 = vpop.f32.mrb[54].mxu0  ;;  %5679 = vmatpush3.bf16.msk.msra.mxu1 %vm6441_vm6, %v5677_v15  ;;  %v2936_v15 = vpop.permute.xlu1 %2935 }
 0x7b9   : > { %v2656_v26 = vadd.f32 %v4707_v54, %v2655_v20  ;;  %v2657_v12 = vpop.f32.mrb[55].mxu0 }
 0x7bb   : > { %6016 = vtanh.f32 %v2656_v26 }
 0x7bc   : > { %v2660_v38 = vpop.f32.mrb[56].mxu0 }
 0x7bd   : > { %v6013_v5 = vpop.eup %6012  ;;  %v2661_v39 = vadd.f32 %v4707_v54, %v2660_v38  ;;  %v2662_v17 = vpop.f32.mrb[57].mxu0 }
 0x7be   : > { %5341 = vmatprep.mubr.msk.f32.mxu1 %vm1089_vm3, %v6013_v5 }
 0x7bf   : > { %6018 = vtanh.f32 %v2661_v39 }
 0x7c1   : > { %v6015_v23 = vpop.eup %6014 }
 0x7c2   : > { %5342 = vmatmul.mubr.msk.f32.gmra.mrb[40].mxu1 %vm1089_vm3, %v6015_v23 }
 0x7c5   : > { %v6017_v43 = vpop.eup %6016 }
 0x7c6   : > { %5344 = vmatprep.mubr.msk.f32.mxu1 %vm1089_vm3, %v6017_v43 }
 0x7c9   : > { %v6019_v21 = vpop.eup %6018 }
 0x7ca   : > { %5345 = vmatmul.mubr.msk.f32.gmra.mrb[42].mxu1 %vm1089_vm3, %v6019_v21 }
 0x7cb   : > { %5351 = vmatprep.mubr.msk.f32.mxu1 %vm6121_vm7, %v6117_v3 }
 0x7ce   : > { %5352 = vmatmul.mubr.msk.f32.vlgmr.msra.gmra.mrb[44].mxu1 %vm1358_vm8, %v4740_v13 }
 0x7cf   : > { %5356 = vmatprep.mubr.msk.f32.mxu1 %vm1437_vm9, %v6084_v62 }
 0x88a   : > { %v5340_v32 = vpop.f32.mrb[38].mxu1 }
 0x88b   : > { %v7070_v63 = vadd.f32 %v5340_v32, %v4727_v61  ;;  %v2862_v24 = vpop.f32.mrb[39].mxu1 }
 0x88c   : > { %v7072_v29 = vadd.f32 %v4727_v61, %v2862_v24 }
 0x88d   : > { %v2892_v27 = vadd.f32 %v7070_v63, %v7032_v50 }
 0x88e   : > { %v2891_v53 = vadd.f32 %v7072_v29, %v7034_v51 }
 0x88f   : > { %v4735_v28 = vmul.f32 -1.442695, %v2892_v27 }
 0x890   : > { %v4734_v37 = vmul.f32 -1.442695, %v2891_v53 }
 0x891   : > { %6020 = vpow2.f32 %v4735_v28 }
 0x892   : > { %6022 = vpow2.f32 %v4734_v37 }
 0x895   : > { %v5343_v36 = vpop.f32.mrb[40].mxu1 }
 0x896   : > { %v7078_v40 = vadd.f32 %v5343_v36, %v4727_v61  ;;  %v2872_v41 = vpop.f32.mrb[41].mxu1 }
 0x897   : > { %v7080_v19 = vadd.f32 %v4727_v61, %v2872_v41 }
 0x898   : > { %v2894_v42 = vadd.f32 %v7078_v40, %v7032_v50 }
 0x899   : > { %v2893_v55 = vadd.f32 %v7080_v19, %v7034_v51 }
 0x89a   : > { %v4737_v44 = vmul.f32 -1.442695, %v2894_v42 }
 0x89b   : > { %v6021_v46 = vpop.eup %6020  ;;  %v4736_v59 = vmul.f32 -1.442695, %v2893_v55 }
 0x89c   : > { %v6023_v22 = vpop.eup %6022  ;;  %v2916_v34 = vadd.f32 1.0, %v6021_v46  ;;  %6024 = vpow2.f32 %v4737_v44 }
 0x89d   : > { %v2915_v45 = vadd.f32 1.0, %v6023_v22  ;;  %6026 = vpow2.f32 %v4736_v59  ;;  %v5346_v18 = vpop.f32.mrb[42].mxu1 }
 0x89e   : > { %6028 = vrcp.f32 %v2916_v34  ;;  %v7086_v47 = vadd.f32 %v5346_v18, %v4727_v61  ;;  %v2882_v49 = vpop.f32.mrb[43].mxu1  ;;  %v6088_v18 = vld [vmem:[%s7797_s28 + $0x18] sm:$0xff] }
 0x89f   : > { %6030 = vrcp.f32 %v2915_v45  ;;  %v7088_v25 = vadd.f32 %v4727_v61, %v2882_v49  ;;  %v6085_v45 = vld [vmem:[%s7797_s28 + $0x8] sm:$0xff]  ;;  %v6089_v49 = vld [vmem:[%s7797_s28 + $0x20] sm:$0xff] }
 0x8a0   : > { %v2896_v54 = vadd.f32 %v7086_v47, %v7032_v50 }
 0x8a1   : > { %v2895_v16 = vadd.f32 %v7088_v25, %v7034_v51  ;;  %v3120_v31 = vpop.f32.mrb[44].mxu1 }
 0x8a2   : > { %v4739_v56 = vmul.f32 -1.442695, %v2896_v54  ;;  %v3124_v10 = vmax.f32 %v3120_v31, 0.0  ;;  %v5353_v57 = vpop.f32.mrb[45].mxu1  ;;  %v6090_v54 = vld [vmem:[%s7797_s28 + $0x28] sm:$0xff] }
 0x8a3   : > { %v4738_v33 = vmul.f32 -1.442695, %v2895_v16 }
 0x8a4   : > { %6032 = vpow2.f32 %v4739_v56  ;;  %v3125_v9 = vsel %vm1437_vm9, %v3124_v10, -inf }
 0x8a5   : > { %6034 = vpow2.f32 %v4738_v33  ;;  %v3126_v58 = vrot.slane %v3125_v9, 4 }
 0x8a6   : > { %v6025_v60 = vpop.eup %6024 }
 0x8a7   : > { %v6027_v1 = vpop.eup %6026  ;;  %v2918_v14 = vadd.f32 1.0, %v6025_v60  ;;  %v3127_v7 = vmax.f32 %v3125_v9, %v3126_v58 }
 0x8a8   : > { %v7095_v50 = vpop.eup %6028  ;;  %v2917_v8 = vadd.f32 1.0, %v6027_v1 }
 0x8a9   : > { %v7097_v51 = vpop.eup %6030  ;;  %6036 = vrcp.f32 %v2918_v14  ;;  %v3128_v11 = vrot.slane %v3127_v7, 2  ;;  %v2942_v52 = vmul.f32 %v7095_v50, %v2938_v0 }
 0x8aa   : > { %6038 = vrcp.f32 %v2917_v8  ;;  %v2941_v20 = vmul.f32 %v7097_v51, %v2936_v15 }
 0x8ab   : > { %v3129_v26 = vmax.f32 %v3127_v7, %v3128_v11  ;;  %2955 = vrot.lane.b32.xlu0 %v2942_v52, %s7803_s9 }
 0x8ac   : > { %2953 = vrot.lane.b32.xlu1 %v2941_v20, %s7803_s9 }
 0x8ad   : > { %v3130_v12 = vrot.slane %v3129_v26, 1 }
 0x8ae   : > { %v6033_v38 = vpop.eup %6032 }
 0x8af   : > { %v6035_v5 = vpop.eup %6034  ;;  %v2920_v39 = vadd.f32 1.0, %v6033_v38  ;;  %v3131_v17 = vmax.f32 %v3129_v26, %v3130_v12 }
 0x8b0   : > { %v2919_v23 = vadd.f32 1.0, %v6035_v5 }
 0x8b1   : > { %6040 = vrcp.f32 %v2920_v39  ;;  %v3132_v43 = vsub.f32 %v3124_v10, %v3131_v17 }
 0x8b2   : > { %6042 = vrcp.f32 %v2919_v23 }
 0x8b3   : > { %v7103_v21 = vpop.eup %6036  ;;  %v3133_v13 = vmul.f32 1.442695, %v3132_v43 }
 0x8b4   : > { %v7105_v62 = vpop.eup %6038  ;;  %v2944_v61 = vmul.f32 %v7103_v21, %v2938_v0  ;;  %v2986_v23 = vsub.f32 1.0, %v7103_v21 }
 0x8b5   : > { %6044 = vpow2.f32 %v3133_v13  ;;  %v2943_v32 = vmul.f32 %v7105_v62, %v2936_v15  ;;  %v2985_v13 = vsub.f32 1.0, %v7105_v62 }
 0x8b6   : > { %2959 = vrot.lane.b32.xlu0 %v2944_v61, %s7803_s9 }
 0x8b7   : > { %2957 = vrot.lane.b32.xlu1 %v2943_v32, %s7803_s9 }
 0x8bb   : > { %v7111_v24 = vpop.eup %6040 }
 0x8bc   : > { %v7113_v27 = vpop.eup %6042  ;;  %v2946_v53 = vmul.f32 %v7111_v24, %v2938_v0 }
 0x8bd   : > { %v2945_v28 = vmul.f32 %v7113_v27, %v2936_v15 }
 0x8be   : > { %2963 = vrot.lane.b32.xlu0 %v2946_v53, %s7803_s9 }
 0x8bf   : > { %v6045_v37 = vpop.eup %6044  ;;  %2961 = vrot.lane.b32.xlu1 %v2945_v28, %s7803_s9 }
 0x8c0   : > { %v3135_v36 = vsel %vm1437_vm9, %v6045_v37, 0.0 }
 0x8c1   : > { %v3136_v41 = vrot.slane %v3135_v36, 4 }
 0x8c2   : > { %3021 = vrot.lane.b32.xlu0 %v6959_v30, %s7801_s24  ;;  %v6086_v30 = vld [vmem:[%s7798_s1] sm:$0xff] }
 0x8c3   : > { %v3137_v42 = vadd.f32 %v3136_v41, %v3135_v36  ;;  %3019 = vrot.lane.b32.xlu1 %v6943_v35, %s7801_s24  ;;  %v6087_v35 = vld [vmem:[%s7797_s28 + $0x10] sm:$0xff] }
 0x8c5   : > { %v3138_v55 = vrot.slane %v3137_v42, 2 }
 0x8c7   : > { %v3139_v44 = vadd.f32 %v3138_v55, %v3137_v42 }
 0x8c9   : > { %v3140_v46 = vrot.slane %v3139_v44, 1 }
 0x8cb   : > { %v3141_v59 = vadd.f32 %v3140_v46, %v3139_v44  ;;  %v2988_v44 = vsub.f32 1.0, %v7111_v24 }
 0x8cd   : > { %6046 = vrcp.f32 %v3141_v59 }
 0x8d7   : > { %v6047_v22 = vpop.eup %6046 }
 0x8d8   : > { %v3143_v34 = vmul.f32 %v6047_v22, %v6045_v37 }
 0x8da   : > { %5354 = vmatprep.subr.mxu1 %v3143_v34 }
 0x8db   : > { %5355 = vmatpush3.msra.mxu1 %v3143_v34 }
 0x8dc   : > { %5357 = vmatmul.mubr.msk.f32.vlgmr.msra.gmra.mrb[46].mxu1 %vm1437_vm9, %v6085_v45  ;;  %5365 = vmatprep.subr.mxu1 %v6086_v30 }
 0x8dd   : > { %5359 = vmatprep.mubr.msk.f32.mxu1 %vm1437_vm9, %v6087_v35  ;;  %5366 = vmatpush3.msra.mxu1 %v6086_v30 }
 0x8e0   : > { %5360 = vmatmul.mubr.msk.f32.gmra.mrb[48].mxu1 %vm1437_vm9, %v6088_v18 }
 0x8e1   : > { %5362 = vmatprep.mubr.msk.f32.mxu1 %vm1437_vm9, %v6089_v49 }
 0x8e4   : > { %5363 = vmatmul.mubr.msk.f32.gmra.mrb[50].mxu1 %vm1437_vm9, %v6090_v54 }
 0x91d   : > { %v2956_v16 = vpop.permute.xlu0 %2955 }
 0x91e   : > { %v2972_v31 = vadd.f32 %v2956_v16, %v7070_v63  ;;  %v2954_v56 = vpop.permute.xlu1 %2953 }
 0x91f   : > { %v2971_v10 = vadd.f32 %v2954_v56, %v7072_v29 }
 0x920   : > { %6048 = vtanh.f32 %v2972_v31 }
 0x921   : > { %6050 = vtanh.f32 %v2971_v10  ;;  %v6091_v10 = vld [vmem:[%s7799_s30] sm:$0xff] }
 0x928   : > { %v2960_v57 = vpop.permute.xlu0 %2959 }
 0x929   : > { %v2974_v33 = vadd.f32 %v2960_v57, %v7078_v40  ;;  %v2958_v9 = vpop.permute.xlu1 %2957 }
 0x92a   : > { %v6049_v58 = vpop.eup %6048  ;;  %v2973_v60 = vadd.f32 %v2958_v9, %v7080_v19 }
 0x92b   : > { %v6051_v0 = vpop.eup %6050  ;;  %6052 = vtanh.f32 %v2974_v33  ;;  %2997 = vrot.lane.b32.xlu0 %v6049_v58, %s7802_s2 }
 0x92c   : > { %6054 = vtanh.f32 %v2973_v60  ;;  %2995 = vrot.lane.b32.xlu1 %v6051_v0, %s7802_s2 }
 0x930   : > { %v2964_v63 = vpop.permute.xlu0 %2963 }
 0x931   : > { %v2976_v1 = vadd.f32 %v2964_v63, %v7086_v47  ;;  %v2962_v29 = vpop.permute.xlu1 %2961  ;;  %v2984_v47 = vsub.f32 1.0, %v7095_v50 }
 0x932   : > { %v2975_v14 = vadd.f32 %v2962_v29, %v7088_v25  ;;  %v2983_v25 = vsub.f32 1.0, %v7097_v51 }
 0x933   : > { %6056 = vtanh.f32 %v2976_v1 }
 0x934   : > { %6058 = vtanh.f32 %v2975_v14  ;;  %v3022_v8 = vpop.permute.xlu0 %3021 }
 0x935   : > { %v6053_v40 = vpop.eup %6052  ;;  %v3020_v11 = vpop.permute.xlu1 %3019  ;;  %v3026_v20 = vmul.f32 %v7095_v50, %v3022_v8  ;;  %v3028_v61 = vmul.f32 %v7103_v21, %v3022_v8  ;;  %v2987_v21 = vsub.f32 1.0, %v7113_v27  ;;  %v3030_v22 = vmul.f32 %v7111_v24, %v3022_v8 }
 0x936   : > { %v6055_v7 = vpop.eup %6054  ;;  %3001 = vrot.lane.b32.xlu0 %v6053_v40, %s7802_s2  ;;  %v3025_v38 = vmul.f32 %v7097_v51, %v3020_v11  ;;  %v3027_v50 = vmul.f32 %v7105_v62, %v3020_v11  ;;  %v3029_v45 = vmul.f32 %v7113_v27, %v3020_v11  ;;  %v7211_v11 = vld [vmem:[%s7799_s30 + $0x8] sm:$0xff] }
 0x937   : > { %2999 = vrot.lane.b32.xlu1 %v6055_v7, %s7802_s2 }
 0x93d   : > { %v6057_v19 = vpop.eup %6056 }
 0x93e   : > { %v6059_v15 = vpop.eup %6058  ;;  %3005 = vrot.lane.b32.xlu0 %v6057_v19, %s7802_s2 }
 0x93f   : > { %3003 = vrot.lane.b32.xlu1 %v6059_v15, %s7802_s2 }
 0x99d   : > { %v2998_v52 = vpop.permute.xlu0 %2997 }
 0x99e   : > { %v3014_v26 = vmul.f32 %v2998_v52, %v2984_v47  ;;  %v2996_v12 = vpop.permute.xlu1 %2995  ;;  %v7218_v47 = vld [vmem:[%s7799_s30 + $0x38] sm:$0xff]  ;;  %v7225_v52 = vld [vmem:[%s7799_s30 + $0x10] sm:$0xff] }
 0x99f   : > { %v3013_v5 = vmul.f32 %v2996_v12, %v2983_v25  ;;  %v7232_v25 = vld [vmem:[%s7799_s30 + $0x40] sm:$0xff] }
 0x9a0   : > { %v3032_v39 = vadd.f32 %v3026_v20, %v3014_v26  ;;  %v7239_v20 = vld [vmem:[%s7799_s30 + $0x18] sm:$0xff]  ;;  %v7246_v26 = vld [vmem:[%s7799_s30 + $0x48] sm:$0xff]  ;;  %v7253_v12 = vld [vmem:[%s7799_s30 + $0x20] sm:$0xff] }
 0x9a1   : > { %v3031_v17 = vadd.f32 %v3025_v38, %v3013_v5  ;;  %v7260_v38 = vld [vmem:[%s7799_s30 + $0x50] sm:$0xff]  ;;  %v7267_v5 = vld [vmem:[%s7799_s30 + $0x28] sm:$0xff] }
 0x9a2   : > { %6060 = vtanh.f32 %v3032_v39  ;;  %v7274_v39 = vld [vmem:[%s7799_s30 + $0x58] sm:$0xff] }
 0x9a3   : > { %6062 = vtanh.f32 %v3031_v17 }
 0x9a8   : > { %v3002_v43 = vpop.permute.xlu0 %3001 }
 0x9a9   : > { %v3016_v32 = vmul.f32 %v3002_v43, %v2986_v23  ;;  %v3000_v53 = vpop.permute.xlu1 %2999  ;;  %v6102_v43 = vld [vmem:[%s7800_s4] sm:$0xff] }
 0x9aa   : > { %v3015_v28 = vmul.f32 %v3000_v53, %v2985_v13 }
 0x9ab   : > { %v3034_v37 = vadd.f32 %v3028_v61, %v3016_v32  ;;  %v6103_v61 = vld [vmem:[%s7800_s4 + $0x8] sm:$0xff] }
 0x9ac   : > { %v6061_v36 = vpop.eup %6060  ;;  %v3033_v51 = vadd.f32 %v3027_v50, %v3015_v28  ;;  %v6104_v28 = vld [vmem:[%s7800_s4 + $0x10] sm:$0xff] }
 0x9ad   : > { %v6063_v41 = vpop.eup %6062  ;;  %6064 = vtanh.f32 %v3034_v37 }
 0x9ae   : > { %6066 = vtanh.f32 %v3033_v51  ;;  %v5900_v42 = vpack.i.bf16 %v6061_v36, %v6063_v41  ;;  %v6105_v36 = vld [vmem:[%s7800_s4 + $0x18] sm:$0xff] }
 0x9af   : > { %v5358_v55 = vpop.f32.mrb[46].mxu1 }
 0x9b0   : > { %v3006_v46 = vpop.permute.xlu0 %3005  ;;  %v3210_v59 = vpop.f32.mrb[47].mxu1  ;;  %5901 = vrot.lane.b32.xlu1 %v5900_v42, %s7802_s2 }
 0x9b1   : > { %v3018_v62 = vmul.f32 %v3006_v46, %v2988_v44  ;;  %5367 = vmatprep.mubr.msk.f32.mxu1 %vm1437_vm9, %v3210_v59  ;;  %v3004_v34 = vpop.permute.xlu1 %3003  ;;  %v6107_v46 = vld [vmem:[%s7800_s4 + $0x28] sm:$0xff] }
 0x9b2   : > { %v3017_v30 = vmul.f32 %v3004_v34, %v2987_v21  ;;  %5368 = vmatmul.mubr.msk.f32.vlgmr.msra.gmra.mrb[52].mxu1 %vm1437_vm9, %v5358_v55  ;;  %v6106_v55 = vld [vmem:[%s7800_s4 + $0x20] sm:$0xff] }
 0x9b3   : > { %v3036_v35 = vadd.f32 %v3030_v22, %v3018_v62  ;;  %v5361_v18 = vpop.f32.mrb[48].mxu1 }
 0x9b4   : > { %v3035_v49 = vadd.f32 %v3029_v45, %v3017_v30  ;;  %v3220_v54 = vpop.f32.mrb[49].mxu1 }
 0x9b5   : > { %6068 = vtanh.f32 %v3036_v35  ;;  %5370 = vmatprep.mubr.msk.f32.mxu1 %vm1437_vm9, %v3220_v54 }
 0x9b6   : > { %6070 = vtanh.f32 %v3035_v49  ;;  %5371 = vmatmul.mubr.msk.f32.gmra.mrb[54].mxu1 %vm1437_vm9, %v5361_v18 }
 0x9b7   : > { %v6065_v24 = vpop.eup %6064  ;;  %v5364_v16 = vpop.f32.mrb[50].mxu1 }
 0x9b8   : > { %v6067_v31 = vpop.eup %6066  ;;  %v3230_v56 = vpop.f32.mrb[51].mxu1 }
 0x9b9   : > { %5373 = vmatprep.mubr.msk.f32.mxu1 %vm1437_vm9, %v3230_v56  ;;  %v5905_v27 = vpack.i.bf16 %v6065_v24, %v6067_v31 }
 0x9ba   : > { %5374 = vmatmul.mubr.msk.f32.gmra.mrb[56].mxu1 %vm1437_vm9, %v5364_v16 }
 0x9bb   : > { %5906 = vrot.lane.b32.xlu0 %v5905_v27, %s7802_s2  ;;  %5388 = vmatprep.mubr.msk.f32.mxu1 %vm1732_vm10, %v6091_v10 }
 0x9bf   : > { %v6069_v57 = vpop.eup %6068 }
 0x9c0   : > { %v6071_v33 = vpop.eup %6070 }
 0x9c1   : > { %v5910_v9 = vpack.i.bf16 %v6069_v57, %v6071_v33 }
 0x9c3   : > { %5911 = vrot.lane.b32.xlu1 %v5910_v9, %s7802_s2 }
 0xa22   : > { %v7184_v58 = vpop.permute.xlu1 %5901 }
 0xa23   : > { %v5904_v60 = vunpack.i.h.bf16 %v7184_v58  ;;  %v5903_v0 = vunpack.i.l.bf16 %v7184_v58 }
 0xa25   : > { %v5680_v63 = vpack.c.bf16 %v5904_v60, %v5903_v0 }
 0xa27   : > { %5681 = vmatprep.subr.bf16.mxu1 %v5680_v63  ;;  %5705 = vmatprep.subr.bf16.mxu0 %v5680_v63 }
 0xa28   : > { %5683 = vmatpush3.bf16.msra.mxu1 %v5680_v63  ;;  %5707 = vmatpush3.bf16.msra.mxu0 %v5680_v63 }
 0xa2d   : > { %v7192_v1 = vpop.permute.xlu0 %5906 }
 0xa2e   : > { %v5909_v29 = vunpack.i.h.bf16 %v7192_v1  ;;  %v5908_v14 = vunpack.i.l.bf16 %v7192_v1 }
 0xa30   : > { %v5684_v40 = vpack.c.bf16 %v5909_v29, %v5908_v14 }
 0xa32   : > { %5685 = vmatprep.subr.bf16.mxu1 %v5684_v40  ;;  %5709 = vmatprep.subr.bf16.mxu0 %v5684_v40 }
 0xa33   : > { %5687 = vmatpush3.bf16.msra.mxu1 %v5684_v40  ;;  %5711 = vmatpush3.bf16.msra.mxu0 %v5684_v40 }
 0xa35   : > { %v7200_v7 = vpop.permute.xlu1 %5911 }
 0xa36   : > { %v5914_v19 = vunpack.i.h.bf16 %v7200_v7  ;;  %v5913_v15 = vunpack.i.l.bf16 %v7200_v7  ;;  %v4279_v7 = vld [vmem:[%s7759_s18 + $0x18] sm:$0xff] }
 0xa38   : > { %v5688_v8 = vpack.c.bf16 %v5914_v19, %v5913_v15 }
 0xa3a   : > { %5689 = vmatprep.subr.bf16.mxu1 %v5688_v8  ;;  %5713 = vmatprep.subr.bf16.mxu0 %v5688_v8 }
 0xa3b   : > { %5691 = vmatpush3.bf16.msra.mxu1 %v5688_v8  ;;  %5715 = vmatpush3.bf16.msra.mxu0 %v5688_v8 }
 0xa3c   : > { %5729 = vmatprep.subr.bf16.mxu0 %v5680_v63 }
 0xa3e   : > { %5389 = vmatmul.mubr.msk.f32.vlgmr.msra.gmra.mrb[58].mxu1 %vm1732_vm10, %v7211_v11  ;;  %5431 = vmatmul.mubr.msk.f32.vlgmr.msra.gmra.mrb[58].mxu0 %vm1732_vm10, %v7218_v47 }
 0xa3f   : > { %5731 = vmatpush3.bf16.msra.mxu0 %v5680_v63  ;;  %5391 = vmatprep.mubr.msk.f32.mxu1 %vm1732_vm10, %v7225_v52 }
 0xa40   : > { %5733 = vmatprep.subr.bf16.mxu0 %v5684_v40  ;;  %5433 = vmatprep.mubr.msk.f32.mxu0 %vm1732_vm10, %v7232_v25 }
 0xa42   : > { %5392 = vmatmul.mubr.msk.f32.gmra.mrb[60].mxu1 %vm1732_vm10, %v7239_v20  ;;  %5434 = vmatmul.mubr.msk.f32.gmra.mrb[60].mxu0 %vm1732_vm10, %v7246_v26 }
 0xa43   : > { %5735 = vmatpush3.bf16.msra.mxu0 %v5684_v40  ;;  %5394 = vmatprep.mubr.msk.f32.mxu1 %vm1732_vm10, %v7253_v12 }
 0xa44   : > { %5737 = vmatprep.subr.bf16.mxu0 %v5688_v8  ;;  %5436 = vmatprep.mubr.msk.f32.mxu0 %vm1732_vm10, %v7260_v38 }
 0xa46   : > { %5395 = vmatmul.mubr.msk.f32.gmra.mrb[62].mxu1 %vm1732_vm10, %v7267_v5  ;;  %5437 = vmatmul.mubr.msk.f32.gmra.mrb[62].mxu0 %vm1732_vm10, %v7274_v39 }
 0xa47   : > { %5739 = vmatpush3.bf16.msra.mxu0 %v5688_v8  ;;  %5409 = vmatprep.mubr.msk.f32.mxu1 %vm1732_vm10, %v6091_v10 }
 0xa48   : > { %5752 = vmatprep.subr.bf16.mxu0 %v6118_v48 }
 0xa85   : > { %v5369_v17 = vpop.f32.mrb[52].mxu1 }
 0xa86   : > { %v3323_v23 = vpop.f32.mrb[53].mxu1  ;;  %v7288_v32 = vmul.f32 %v6103_v61, %v5369_v17 }
 0xa87   : > { %v7283_v13 = vmul.f32 %v6102_v43, %v3323_v23  ;;  %v4793_v23 = vld [vmem:[%s7757_s16 + $0xe0] sm:$0xff]  ;;  %v4794_v43 = vld [vmem:[%s7757_s16 + $0xe8] sm:$0xff] }
 0xa88   : > { %v5753_v61 = vpack.c.bf16 %v4794_v43, %v4793_v23  ;;  %v4809_v23 = vld [vmem:[%s7757_s16 + $0x160] sm:$0xff]  ;;  %v4810_v43 = vld [vmem:[%s7757_s16 + $0x168] sm:$0xff] }
 0xa89   : > { %v5372_v53 = vpop.f32.mrb[54].mxu1  ;;  %5472 = vmatprep.mubr.msk.f32.mxu0 %vm1732_vm10, %v7283_v13 }
 0xa8a   : > { %v3333_v50 = vpop.f32.mrb[55].mxu1  ;;  %5473 = vmatmul.mubr.msk.f32.vlgmr.msra.gmra.mrb[64].mxu0 %vm1732_vm10, %v7288_v32  ;;  %v7302_v51 = vmul.f32 %v6105_v36, %v5372_v53 }
 0xa8b   : > { %v7297_v37 = vmul.f32 %v6104_v28, %v3333_v50  ;;  %5754 = vmatpush1.bf16.msra.mxu0 %v5753_v61  ;;  %v4797_v50 = vld [vmem:[%s7757_s16 + $0x100] sm:$0xff]  ;;  %v4798_v28 = vld [vmem:[%s7757_s16 + $0x108] sm:$0xff]  ;;  %v4811_v61 = vld [vmem:[%s7757_s16 + $0x170] sm:$0xff] }
 0xa8c   : > { %5755 = vmatprep.subr.bf16.mxu0 %v6118_v48 }
 0xa8d   : > { %v5375_v41 = vpop.f32.mrb[56].mxu1  ;;  %5475 = vmatprep.mubr.msk.f32.mxu0 %vm1732_vm10, %v7297_v37 }
 0xa8e   : > { %v3343_v42 = vpop.f32.mrb[57].mxu1  ;;  %5476 = vmatmul.mubr.msk.f32.gmra.mrb[66].mxu0 %vm1732_vm10, %v7302_v51  ;;  %v7316_v59 = vmul.f32 %v6107_v46, %v5375_v41  ;;  %v5759_v41 = vpack.c.bf16 %v4798_v28, %v4797_v50  ;;  %v4813_v50 = vld [vmem:[%s7757_s16 + $0x180] sm:$0xff]  ;;  %v4814_v28 = vld [vmem:[%s7757_s16 + $0x188] sm:$0xff] }
 0xa8f   : > { %v7311_v44 = vmul.f32 %v6106_v55, %v3343_v42  ;;  %v4799_v42 = vld [vmem:[%s7757_s16 + $0x110] sm:$0xff]  ;;  %v4800_v55 = vld [vmem:[%s7757_s16 + $0x118] sm:$0xff] }
 0xa91   : > { %5478 = vmatprep.mubr.msk.f32.mxu0 %vm1732_vm10, %v7311_v44 }
 0xa92   : > { %5479 = vmatmul.mubr.msk.f32.gmra.mrb[68].mxu0 %vm1732_vm10, %v7316_v59 }
 0xb11   : > { %v5390_v21 = vpop.f32.mrb[58].mxu1  ;;  %v5432_v22 = vpop.f32.mrb[58].mxu0 }
 0xb12   : > { %v3448_v62 = vpop.f32.mrb[59].mxu1  ;;  %v3638_v34 = vpop.f32.mrb[59].mxu0 }
 0xb13   : > { %v5915_v45 = vpack.i.bf16 %v5390_v21, %v3448_v62  ;;  %v5692_v30 = vpack.c.bf16 %v5390_v21, %v3448_v62  ;;  %v5920_v35 = vpack.i.bf16 %v5432_v22, %v3638_v34  ;;  %v5716_v18 = vpack.c.bf16 %v5432_v22, %v3638_v34  ;;  %v4801_v22 = vld [vmem:[%s7757_s16 + $0x120] sm:$0xff]  ;;  %v4802_v62 = vld [vmem:[%s7757_s16 + $0x128] sm:$0xff] }
 0xb14   : > { %v5762_v21 = vpack.c.bf16 %v4800_v55, %v4799_v42  ;;  %v4817_v42 = vld [vmem:[%s7757_s16 + $0x1a0] sm:$0xff]  ;;  %v4818_v55 = vld [vmem:[%s7757_s16 + $0x1a8] sm:$0xff] }
 0xb15   : > { %5916 = vrot.lane.b32.xlu0 %v5915_v45, %s7801_s24  ;;  %v5393_v49 = vpop.f32.mrb[60].mxu1  ;;  %5693 = vmatprep.subr.bf16.mxu1 %v5692_v30  ;;  %v7323_v54 = vpop.f32.mrb[60].mxu0 }
 0xb16   : > { %v3458_v24 = vpop.f32.mrb[61].mxu1  ;;  %5695 = vmatpush3.bf16.msra.mxu1 %v5692_v30  ;;  %v7325_v16 = vpop.f32.mrb[61].mxu0 }
 0xb17   : > { %v5925_v31 = vpack.i.bf16 %v5393_v49, %v3458_v24  ;;  %v5696_v56 = vpack.c.bf16 %v5393_v49, %v3458_v24  ;;  %v5940_v27 = vpack.i.bf16 %v7323_v54, %v7325_v16  ;;  %v5720_v10 = vpack.c.bf16 %v7323_v54, %v7325_v16  ;;  %v4804_v49 = vld [vmem:[%s7757_s16 + $0x138] sm:$0xff] }
 0xb19   : > { %5926 = vrot.lane.b32.xlu1 %v5925_v31, %s7801_s24  ;;  %v7332_v57 = vpop.f32.mrb[62].mxu1  ;;  %5697 = vmatprep.subr.bf16.mxu1 %v5696_v56  ;;  %v7334_v33 = vpop.f32.mrb[62].mxu0 }
 0xb1a   : > { %v7336_v9 = vpop.f32.mrb[63].mxu1  ;;  %5699 = vmatpush3.bf16.msra.mxu1 %v5696_v56  ;;  %v7338_v63 = vpop.f32.mrb[63].mxu0  ;;  %5921 = vrot.lane.b32.xlu0 %v5920_v35, %s7802_s2  ;;  %v5765_v35 = vpack.c.bf16 %v4802_v62, %v4801_v22 }
 0xb1b   : > { %v5945_v40 = vpack.i.bf16 %v7332_v57, %v7336_v9  ;;  %v5700_v8 = vpack.c.bf16 %v7332_v57, %v7336_v9  ;;  %v5724_v17 = vpack.c.bf16 %v7334_v33, %v7338_v63 }
 0xb1d   : > { %5701 = vmatprep.subr.bf16.mxu1 %v5700_v8 }
 0xb1e   : > { %5703 = vmatpush3.bf16.msra.mxu1 %v5700_v8  ;;  %v4806_v8 = vld [vmem:[%s7757_s16 + $0x148] sm:$0xff] }
 0xb1f   : > { %5717 = vmatprep.subr.bf16.mxu1 %v5716_v18 }
 0xb21   : > { %5410 = vmatmul.mubr.msk.f32.vlgmr.msra.gmra.mrb[64].mxu1 %vm1732_vm10, %v7211_v11  ;;  %v6108_v11 = vld [vmem:[%s7799_s30 + $0x30] sm:$0xff] }
 0xb22   : > { %5719 = vmatpush3.bf16.msra.mxu1 %v5716_v18  ;;  %5412 = vmatprep.mubr.msk.f32.mxu1 %vm1732_vm10, %v7225_v52  ;;  %v4803_v18 = vld [vmem:[%s7757_s16 + $0x130] sm:$0xff] }
 0xb23   : > { %5721 = vmatprep.subr.bf16.mxu1 %v5720_v10  ;;  %v5768_v56 = vpack.c.bf16 %v4804_v49, %v4803_v18 }
 0xb25   : > { %5413 = vmatmul.mubr.msk.f32.gmra.mrb[66].mxu1 %vm1732_vm10, %v7239_v20 }
 0xb26   : > { %5723 = vmatpush3.bf16.msra.mxu1 %v5720_v10  ;;  %5415 = vmatprep.mubr.msk.f32.mxu1 %vm1732_vm10, %v7253_v12  ;;  %v4805_v10 = vld [vmem:[%s7757_s16 + $0x140] sm:$0xff] }
 0xb27   : > { %5725 = vmatprep.subr.bf16.mxu1 %v5724_v17 }
 0xb29   : > { %5416 = vmatmul.mubr.msk.f32.gmra.mrb[68].mxu1 %vm1732_vm10, %v7267_v5 }
 0xb2a   : > { %5727 = vmatpush3.bf16.msra.mxu1 %v5724_v17  ;;  %5451 = vmatprep.mubr.msk.f32.mxu1 %vm1732_vm10, %v6108_v11 }
 0xb2d   : > { %5452 = vmatmul.mubr.msk.f32.vlgmr.msra.gmra.mrb[70].mxu1 %vm1732_vm10, %v7218_v47 }
 0xb2e   : > { %5454 = vmatprep.mubr.msk.f32.mxu1 %vm1732_vm10, %v7232_v25 }
 0xb31   : > { %5455 = vmatmul.mubr.msk.f32.gmra.mrb[72].mxu1 %vm1732_vm10, %v7246_v26 }
 0xb32   : > { %5457 = vmatprep.mubr.msk.f32.mxu1 %vm1732_vm10, %v7260_v38 }
 0xb35   : > { %5458 = vmatmul.mubr.msk.f32.gmra.mrb[74].mxu1 %vm1732_vm10, %v7274_v39 }
 0xb36   : > { %5493 = vmatprep.mubr.msk.f32.mxu1 %vm1732_vm10, %v7283_v13  ;;  %v4795_v13 = vld [vmem:[%s7757_s16 + $0xf0] sm:$0xff] }
 0xb5d   : > { %v5474_v52 = vpop.f32.mrb[64].mxu0 }
 0xb5e   : > { %v3846_v20 = vpop.f32.mrb[65].mxu0  ;;  %4050 = vrot.lane.b32.xlu1 %v5474_v52, %s7801_s24 }
 0xb5f   : > { %v5740_v47 = vpack.c.bf16 %v5474_v52, %v3846_v20  ;;  %v5771_v52 = vpack.c.bf16 %v4806_v8, %v4805_v10 }
 0xb61   : > { %v7374_v12 = vpop.f32.mrb[66].mxu0  ;;  %5741 = vmatprep.subr.bf16.mxu1 %v5740_v47 }
 0xb62   : > { %v3856_v25 = vpop.f32.mrb[67].mxu0  ;;  %4048 = vrot.lane.b32.xlu1 %v3846_v20, %s7801_s24  ;;  %5743 = vmatpush3.bf16.msra.mxu1 %v5740_v47  ;;  %v4807_v20 = vld [vmem:[%s7757_s16 + $0x150] sm:$0xff]  ;;  %v4808_v47 = vld [vmem:[%s7757_s16 + $0x158] sm:$0xff] }
 0xb63   : > { %v5744_v26 = vpack.c.bf16 %v7374_v12, %v3856_v25  ;;  %4052 = vrot.lane.b32.xlu0 %v3856_v25, %s7801_s24 }
 0xb65   : > { %v7379_v38 = vpop.f32.mrb[68].mxu0  ;;  %5745 = vmatprep.subr.bf16.mxu1 %v5744_v26 }
 0xb66   : > { %v7381_v5 = vpop.f32.mrb[69].mxu0  ;;  %5747 = vmatpush3.bf16.msra.mxu1 %v5744_v26 }
 0xb67   : > { %v5748_v39 = vpack.c.bf16 %v7379_v38, %v7381_v5 }
 0xb69   : > { %5749 = vmatprep.subr.bf16.mxu1 %v5748_v39 }
 0xb6a   : > { %5751 = vmatpush3.bf16.msra.mxu1 %v5748_v39  ;;  %v5774_v39 = vpack.c.bf16 %v4808_v47, %v4807_v20 }
 0xb6d   : > { %5494 = vmatmul.mubr.msk.f32.vlgmr.msra.gmra.mrb[76].mxu1 %vm1732_vm10, %v7288_v32  ;;  %v4796_v32 = vld [vmem:[%s7757_s16 + $0xf8] sm:$0xff] }
 0xb6e   : > { %5496 = vmatprep.mubr.msk.f32.mxu1 %vm1732_vm10, %v7297_v37  ;;  %v5756_v53 = vpack.c.bf16 %v4796_v32, %v4795_v13  ;;  %v5777_v13 = vpack.c.bf16 %v4810_v43, %v4809_v23  ;;  %v4812_v32 = vld [vmem:[%s7757_s16 + $0x178] sm:$0xff] }
 0xb70   : > { %5757 = vmatpush1.bf16.msra.mxu0 %v5756_v53  ;;  %v5780_v53 = vpack.c.bf16 %v4812_v32, %v4811_v61 }
 0xb71   : > { %5497 = vmatmul.mubr.msk.f32.gmra.mrb[78].mxu1 %vm1732_vm10, %v7302_v51  ;;  %5758 = vmatprep.subr.bf16.mxu0 %v6118_v48 }
 0xb72   : > { %5499 = vmatprep.mubr.msk.f32.mxu1 %vm1732_vm10, %v7311_v44 }
 0xb74   : > { %5760 = vmatpush1.bf16.msra.mxu0 %v5759_v41 }
 0xb75   : > { %5500 = vmatmul.mubr.msk.f32.gmra.mrb[80].mxu1 %vm1732_vm10, %v7316_v59  ;;  %5761 = vmatprep.subr.bf16.mxu0 %v6118_v48 }
 0xb76   : > { %4374 = vmatprep.mubr.f32.mxu1 %v6117_v3 }
 0xb78   : > { %5763 = vmatpush1.bf16.msra.mxu0 %v5762_v21 }
 0xb79   : > { %5764 = vmatprep.subr.bf16.mxu0 %v6118_v48 }
 0xb7c   : > { %5766 = vmatpush1.bf16.msra.mxu0 %v5765_v35 }
 0xb7d   : > { %5767 = vmatprep.subr.bf16.mxu0 %v6118_v48 }
 0xb80   : > { %5769 = vmatpush1.bf16.msra.mxu0 %v5768_v56 }
 0xb81   : > { %5770 = vmatprep.subr.bf16.mxu0 %v6118_v48 }
 0xb84   : > { %5772 = vmatpush1.bf16.msra.mxu0 %v5771_v52 }
 0xb85   : > { %5773 = vmatprep.subr.bf16.mxu0 %v6118_v48 }
 0xb87   : > { %v5917_v54 = vpop.permute.xlu0 %5916 }
 0xb88   : > { %5775 = vmatpush1.bf16.msra.mxu0 %v5774_v39 }
 0xb89   : > { %5776 = vmatprep.subr.bf16.mxu0 %v6118_v48 }
 0xb8b   : > { %v5927_v16 = vpop.permute.xlu1 %5926 }
 0xb8c   : > { %5778 = vmatpush1.bf16.msra.mxu0 %v5777_v13  ;;  %v5928_v32 = vunpack.i.l.bf16 %v5927_v16 }
 0xb8d   : > { %5779 = vmatprep.subr.bf16.mxu0 %v6118_v48 }
 0xb90   : > { %5781 = vmatpush1.bf16.msra.mxu0 %v5780_v53 }
 0xb91   : > { %5782 = vmatprep.subr.bf16.mxu0 %v6118_v48 }
 0xbd0   : > { %v4051_v57 = vpop.permute.xlu1 %4050 }
 0xbf4   : > { %v5411_v37 = vpop.f32.mrb[64].mxu1 }
 0xbf5   : > { %v3543_v36 = vpop.f32.mrb[65].mxu1 }
 0xbf6   : > { %v5930_v51 = vpack.i.bf16 %v5411_v37, %v3543_v36  ;;  %v5783_v37 = vpack.c.bf16 %v4814_v28, %v4813_v50  ;;  %v4815_v36 = vld [vmem:[%s7757_s16 + $0x190] sm:$0xff] }
 0xbf8   : > { %5931 = vrot.lane.b32.xlu0 %v5930_v51, %s7803_s9  ;;  %v5414_v44 = vpop.f32.mrb[66].mxu1  ;;  %v4816_v51 = vld [vmem:[%s7757_s16 + $0x198] sm:$0xff]  ;;  %5784 = vmatpush1.bf16.msra.mxu0 %v5783_v37  ;;  %v5929_v37 = vunpack.i.h.bf16 %v5927_v16 }
 0xbf9   : > { %v3553_v46 = vpop.f32.mrb[67].mxu1  ;;  %v5786_v41 = vpack.c.bf16 %v4816_v51, %v4815_v36  ;;  %5785 = vmatprep.subr.bf16.mxu0 %v6118_v48  ;;  %v4092_v51 = vsel %vm998_vm2, %v5908_v14, %v5928_v32 }
 0xbfa   : > { %v5935_v59 = vpack.i.bf16 %v5414_v44, %v3553_v46  ;;  %v5789_v44 = vpack.c.bf16 %v4818_v55, %v4817_v42  ;;  %v4819_v46 = vld [vmem:[%s7757_s16 + $0x1b0] sm:$0xff] }
 0xbfc   : > { %5936 = vrot.lane.b32.xlu1 %v5935_v59, %s7803_s9  ;;  %v7431_v34 = vpop.f32.mrb[68].mxu1  ;;  %5787 = vmatpush1.bf16.msra.mxu0 %v5786_v41  ;;  %v4820_v59 = vld [vmem:[%s7757_s16 + $0x1b8] sm:$0xff] }
 0xbfd   : > { %v7433_v45 = vpop.f32.mrb[69].mxu1  ;;  %5788 = vmatprep.subr.bf16.mxu0 %v6118_v48  ;;  %v5792_v21 = vpack.c.bf16 %v4820_v59, %v4819_v46 }
 0xbfe   : > { %v5950_v30 = vpack.i.bf16 %v7431_v34, %v7433_v45 }
 0xc00   : > { %v7444_v24 = vpop.f32.mrb[70].mxu1  ;;  %5790 = vmatpush1.bf16.msra.mxu0 %v5789_v44 }
 0xc01   : > { %v7446_v31 = vpop.f32.mrb[71].mxu1  ;;  %5791 = vmatprep.subr.bf16.mxu0 %v6118_v48  ;;  %v4109_v47 = vsel %vm998_vm2, %v7444_v24, %v4051_v57 }
 0xc04   : > { %v7455_v17 = vpop.f32.mrb[72].mxu1  ;;  %5793 = vmatpush1.bf16.msra.mxu0 %v5792_v21 }
 0xc05   : > { %v7457_v11 = vpop.f32.mrb[73].mxu1 }
 0xc08   : > { %v7466_v25 = vpop.f32.mrb[74].mxu1 }
 0xc09   : > { %v7468_v26 = vpop.f32.mrb[75].mxu1 }
 0xc40   : > { %v5495_v22 = vpop.f32.mrb[76].mxu1 }
 0xc41   : > { %4074 = vrot.lane.b32.xlu0 %v5495_v22, %s7803_s9  ;;  %v3941_v62 = vpop.f32.mrb[77].mxu1 }
 0xc42   : > { %4072 = vrot.lane.b32.xlu1 %v3941_v62, %s7803_s9 }
 0xc44   : > { %v5498_v35 = vpop.f32.mrb[78].mxu1 }
 0xc45   : > { %4054 = vrot.lane.b32.xlu0 %v7374_v12, %s7801_s24  ;;  %v3951_v48 = vpop.f32.mrb[79].mxu1 }
 0xc46   : > { %5941 = vrot.lane.b32.xlu1 %v5940_v27, %s7802_s2  ;;  %v5922_v27 = vpop.permute.xlu0 %5921 }
 0xc47   : > { %v5924_v13 = vunpack.i.h.bf16 %v5922_v27 }
 0xc48   : > { %v5501_v18 = vpop.f32.mrb[80].mxu1 }
 0xc49   : > { %5946 = vrot.lane.b32.xlu0 %v5945_v40, %s7801_s24  ;;  %v3961_v49 = vpop.f32.mrb[81].mxu1  ;;  %v4049_v40 = vpop.permute.xlu1 %4048 }
 0xc4a   : > { %4056 = vrot.lane.b32.xlu1 %v7381_v5, %s7801_s24  ;;  %v4053_v9 = vpop.permute.xlu0 %4052  ;;  %v5918_v5 = vunpack.i.l.bf16 %v5917_v54  ;;  %v4108_v8 = vsel %vm998_vm2, %v7446_v31, %v4049_v40 }
 0xc4d   : > { %4076 = vrot.lane.b32.xlu0 %v3951_v48, %s7803_s9 }
 0xc4e   : > { %4078 = vrot.lane.b32.xlu1 %v5498_v35, %s7803_s9 }
 0xc51   : > { %5951 = vrot.lane.b32.xlu0 %v5950_v30, %s7803_s9  ;;  %v5919_v30 = vunpack.i.h.bf16 %v5917_v54 }
 0xc52   : > { %4080 = vrot.lane.b32.xlu1 %v3961_v49, %s7803_s9 }
 0xc55   : > { %4032 = vrot.lane.b32.xlu0 %v7338_v63, %s7802_s2  ;;  %v4090_v63 = vsel %vm998_vm2, %v5903_v0, %v5918_v5  ;;  %v4091_v0 = vsel %vm998_vm2, %v5904_v60, %v5919_v30  ;;  %v4110_v60 = vsel %vm998_vm2, %v7457_v11, %v4053_v9 }
 0xc56   : > { %4058 = vrot.lane.b32.xlu1 %v7379_v38, %s7801_s24  ;;  %s7804_s24 = sshll.u32 %s7808_s0, 3 }
 0xc57   : > { %s685_s26 = scalar_lea.vmem %s7805_s25, %s7804_s24 }
 0xc59   : > { %4082 = vrot.lane.b32.xlu0 %v5501_v18, %s7803_s9 }
 0xc5a   : > { %4034 = vrot.lane.b32.xlu1 %v7334_v33, %s7802_s2  ;;  %v5923_v33 = vunpack.i.l.bf16 %v5922_v27 }
 0xc6a   : > { %v5932_v12 = vpop.permute.xlu0 %5931 }
 0xc6b   : > { %v5933_v34 = vunpack.i.l.bf16 %v5932_v12  ;;  %v5934_v38 = vunpack.i.h.bf16 %v5932_v12 }
 0xc6d   : > { %v4096_v56 = vsel %vm2490_vm11, %v4090_v63, %v5933_v34  ;;  %v4097_v31 = vsel %vm2490_vm11, %v4091_v0, %v5934_v38  ;;  %v4277_v63 = vld [vmem:[%s7759_s18 + $0x8] sm:$0xff]  ;;  %v4278_v38 = vld [vmem:[%s7759_s18 + $0x10] sm:$0xff] }
 0xc6e   : > { %v5937_v45 = vpop.permute.xlu1 %5936  ;;  %v4102_v39 = vsel %vm2497_vm12, %v4096_v56, %v5923_v33  ;;  %v4103_v24 = vsel %vm2497_vm12, %v4097_v31, %v5924_v13  ;;  %v4440_v33 = vld [vmem:[%s7761_s20 + $0x88] sm:$0xff]  ;;  %v4423_v31 = vld [vmem:[%s7761_s20] sm:$0xff] }
 0xc6f   : > { %v5938_v50 = vunpack.i.l.bf16 %v5937_v45  ;;  %v5939_v41 = vunpack.i.h.bf16 %v5937_v45  ;;  %v4424_v13 = vld [vmem:[%s7761_s20 + $0x8] sm:$0xff] }
 0xc71   : > { %v4098_v46 = vsel %vm2490_vm11, %v4092_v51, %v5938_v50  ;;  %v4443_v51 = vld [vmem:[%s7761_s20 + $0xa0] sm:$0xff] }
 0xcb3   : > { %v4075_v10 = vpop.permute.xlu0 %4074 }
 0xcb4   : > { %v4073_v52 = vpop.permute.xlu1 %4072  ;;  %v4115_v23 = vsel %vm2490_vm11, %v4109_v47, %v4075_v10  ;;  %v4439_v10 = vld [vmem:[%s7761_s20 + $0x80] sm:$0xff] }
 0xcb5   : > { %v4114_v20 = vsel %vm2490_vm11, %v4108_v8, %v4073_v52  ;;  %v5798_v8 = vpack.c.bf16 %v4440_v33, %v4439_v10  ;;  %v4822_v52 = vld [vmem:[%s7758_s17 + $0x1] ss:$0 sm:$0xff] }
 0xcb6   : > { %4823 = vmatprep.mubr.msk.f32.mxu0 %vm2497_vm12, %v4114_v20 }
 0xcb7   : > { %v4055_v43 = vpop.permute.xlu0 %4054  ;;  %4240 = vmatmul.mubr.f32.vlgmr.msra.gmra.mrb[70].mxu0 %v4102_v39 }
 0xcb8   : > { %4824 = vmatprep.mubr.msk.f32.mxu0 %vm2497_vm12, %v4115_v23  ;;  %v5942_v61 = vpop.permute.xlu1 %5941  ;;  %v4111_v42 = vsel %vm998_vm2, %v7455_v17, %v4055_v43  ;;  %v4093_v17 = vsel %vm998_vm2, %v5909_v29, %v5929_v37  ;;  %v4425_v37 = vld [vmem:[%s7761_s20 + $0x10] sm:$0xff] }
 0xcb9   : > { %v5943_v58 = vunpack.i.l.bf16 %v5942_v61  ;;  %v5944_v59 = vunpack.i.h.bf16 %v5942_v61  ;;  %v4099_v18 = vsel %vm2490_vm11, %v4093_v17, %v5939_v41  ;;  %v4441_v61 = vld [vmem:[%s7761_s20 + $0x90] sm:$0xff]  ;;  %v4444_v41 = vld [vmem:[%s7761_s20 + $0xa8] sm:$0xff]  ;;  %v4446_v17 = vld [vmem:[%s7761_s20 + $0xb8] sm:$0xff] }
 0xcbb   : > { %v5947_v53 = vpop.permute.xlu0 %5946  ;;  %4245 = vmatmul.mubr.f32.gmra.mrb[72].mxu0 %v4103_v24  ;;  %v4104_v11 = vsel %vm2497_vm12, %v4098_v46, %v5943_v58  ;;  %v4105_v54 = vsel %vm2497_vm12, %v4099_v18, %v5944_v59  ;;  %v4442_v24 = vld [vmem:[%s7761_s20 + $0x98] sm:$0xff]  ;;  %v5806_v59 = vpack.c.bf16 %v4444_v41, %v4443_v51 }
 0xcbc   : > { %v4057_v28 = vpop.permute.xlu1 %4056  ;;  %v5948_v21 = vunpack.i.l.bf16 %v5947_v53  ;;  %v5949_v27 = vunpack.i.h.bf16 %v5947_v53  ;;  %v5800_v53 = vpack.c.bf16 %v4424_v13, %v4423_v31  ;;  %v5802_v58 = vpack.c.bf16 %v4442_v24, %v4441_v61  ;;  %v4438_v31 = vld [vmem:[%s7761_s20 + $0x78] sm:$0xff]  ;;  %v4280_v61 = vld [vmem:[%s7760_s19] sm:$0x3] }
 0xcbd   : > { %v4112_v62 = vsel %vm998_vm2, %v7468_v26, %v4057_v28  ;;  %v4285_v24 = vrot.slane %v4280_v61, %v698_v4 }
 0xcbe   : > { %v4094_v16 = vsel %vm998_vm2, %v5913_v15, %v5948_v21  ;;  %v4095_v15 = vsel %vm998_vm2, %v5914_v19, %v5949_v27  ;;  %v4276_v19 = vld [vmem:[%s7759_s18] sm:$0xff]  ;;  %v4448_v27 = vld [vmem:[%s7761_s20 + $0xc8] sm:$0xff] }
 0xcbf   : > { %v4077_v36 = vpop.permute.xlu0 %4076  ;;  %v5796_v56 = vpack.c.bf16 %v4278_v38, %v4276_v19  ;;  %v4427_v21 = vld [vmem:[%s7761_s20 + $0x20] sm:$0xff]  ;;  %v4433_v19 = vld [vmem:[%s7761_s20 + $0x50] sm:$0xff] }
 0xcc0   : > { %v4116_v55 = vsel %vm2490_vm11, %v4110_v60, %v4077_v36  ;;  %v4079_v44 = vpop.permute.xlu1 %4078  ;;  %v4426_v60 = vld [vmem:[%s7761_s20 + $0x18] sm:$0xff]  ;;  %v4451_v38 = vld [vmem:[%s7761_s20 + $0xe0] sm:$0xff] }
 0xcc1   : > { %v4117_v22 = vsel %vm2490_vm11, %v4111_v42, %v4079_v44  ;;  %4825 = vmatprep.mubr.msk.f32.mxu0 %vm2497_vm12, %v4116_v55  ;;  %v5804_v55 = vpack.c.bf16 %v4426_v60, %v4425_v37 }
 0xcc2   : > { %4250 = vmatmul.mubr.f32.gmra.mrb[74].mxu0 %v4104_v11 }
 0xcc3   : > { %4826 = vmatprep.mubr.msk.f32.mxu0 %vm2497_vm12, %v4117_v22  ;;  %v5952_v14 = vpop.permute.xlu0 %5951  ;;  %v4428_v22 = vld [vmem:[%s7761_s20 + $0x28] sm:$0xff] }
 0xcc4   : > { %v5953_v35 = vunpack.i.l.bf16 %v5952_v14  ;;  %v4081_v48 = vpop.permute.xlu1 %4080  ;;  %v5954_v26 = vunpack.i.h.bf16 %v5952_v14  ;;  %v4445_v14 = vld [vmem:[%s7761_s20 + $0xb0] sm:$0xff] }
 0xcc5   : > { %v4118_v49 = vsel %vm2490_vm11, %v4112_v62, %v4081_v48 }
 0xcc6   : > { %4255 = vmatmul.mubr.f32.gmra.mrb[76].mxu0 %v4105_v54  ;;  %v4100_v1 = vsel %vm2490_vm11, %v4094_v16, %v5953_v35  ;;  %v4101_v45 = vsel %vm2490_vm11, %v4095_v15, %v5954_v26  ;;  %v5808_v35 = vpack.c.bf16 %v4428_v22, %v4427_v21  ;;  %v4429_v54 = vld [vmem:[%s7761_s20 + $0x30] sm:$0xff]  ;;  %v4430_v16 = vld [vmem:[%s7761_s20 + $0x38] sm:$0xff]  ;;  %v4431_v15 = vld [vmem:[%s7761_s20 + $0x40] sm:$0xff] }
 0xcc7   : > { %v4033_v29 = vpop.permute.xlu0 %4032  ;;  %4827 = vmatprep.mubr.msk.f32.mxu0 %vm2497_vm12, %v4118_v49  ;;  %v5810_v49 = vpack.c.bf16 %v4446_v17, %v4445_v14  ;;  %v5812_v26 = vpack.c.bf16 %v4430_v16, %v4429_v54 }
 0xcc8   : > { %v4059_v57 = vpop.permute.xlu1 %4058  ;;  %v4106_v9 = vsel %vm2497_vm12, %v4100_v1, %v4033_v29  ;;  %v4447_v1 = vld [vmem:[%s7761_s20 + $0xc0] sm:$0xff] }
 0xcc9   : > { %v4113_v40 = vsel %vm998_vm2, %v7466_v25, %v4059_v57  ;;  %v5794_v25 = vpack.c.bf16 %v4279_v7, %v4277_v63 }
 0xcca   : > { %4260 = vmatmul.mubr.f32.gmra.mrb[78].mxu0 %v4106_v9 }
 0xccb   : > { %v4083_v12 = vpop.permute.xlu0 %4082  ;;  %5795 = vmatprep.subr.bf16.mxu1 %v5794_v25  ;;  %v4434_v25 = vld [vmem:[%s7761_s20 + $0x58] sm:$0xff] }
 0xccc   : > { %v4119_v5 = vsel %vm2490_vm11, %v4113_v40, %v4083_v12  ;;  %v4035_v34 = vpop.permute.xlu1 %4034  ;;  %5797 = vmatpush1.bf16.msra.mxu1 %v5796_v56  ;;  %v5814_v12 = vpack.c.bf16 %v4448_v27, %v4447_v1  ;;  %v4452_v56 = vld [vmem:[%s7761_s20 + $0xe8] sm:$0xff]  ;;  %v5820_v10 = vpack.c.bf16 %v4434_v25, %v4433_v19 }
 0xccd   : > { %4828 = vmatprep.mubr.msk.f32.mxu0 %vm2497_vm12, %v4119_v5  ;;  %v4107_v30 = vsel %vm2497_vm12, %v4101_v45, %v4035_v34  ;;  %5799 = vmatprep.subr.bf16.mxu1 %v5798_v8  ;;  %v4432_v5 = vld [vmem:[%s7761_s20 + $0x48] sm:$0xff]  ;;  %v4449_v34 = vld [vmem:[%s7761_s20 + $0xd0] sm:$0xff]  ;;  %v4450_v45 = vld [vmem:[%s7761_s20 + $0xd8] sm:$0xff]  ;;  %v5822_v8 = vpack.c.bf16 %v4452_v56, %v4451_v38 }
 0xcce   : > { %4265 = vmatmul.mubr.f32.gmra.mrb[80].mxu0 %v4107_v30  ;;  %v5816_v30 = vpack.c.bf16 %v4432_v5, %v4431_v15  ;;  %v5818_v7 = vpack.c.bf16 %v4450_v45, %v4449_v34  ;;  %v4835_v15 = vld [vmem:[%s7762_s21] ss:$0 sm:$0xff] }
 0xd8a   : > { %v4241_v20 = vpop.f32.mrb[70].mxu0 }
 0xd8b   : > { %v4242_v47 = vadd.f32 %v4822_v52, %v4241_v20  ;;  %v4243_v39 = vpop.f32.mrb[71].mxu0  ;;  %v4435_v20 = vld [vmem:[%s7761_s20 + $0x60] sm:$0xff] }
 0xd8d   : > { %6072 = vtanh.f32 %v4242_v47  ;;  %v4436_v47 = vld [vmem:[%s7761_s20 + $0x68] sm:$0xff] }
 0xd8e   : > { %v4246_v0 = vpop.f32.mrb[72].mxu0  ;;  %v5824_v39 = vpack.c.bf16 %v4436_v47, %v4435_v20 }
 0xd8f   : > { %v4247_v23 = vadd.f32 %v4822_v52, %v4246_v0  ;;  %v4248_v43 = vpop.f32.mrb[73].mxu0  ;;  %v4453_v0 = vld [vmem:[%s7761_s20 + $0xf0] sm:$0xff] }
 0xd90   : > { %v4437_v43 = vld [vmem:[%s7761_s20 + $0x70] sm:$0xff] }
 0xd91   : > { %6074 = vtanh.f32 %v4247_v23  ;;  %v5828_v13 = vpack.c.bf16 %v4438_v31, %v4437_v43 }
 0xd95   : > { %v4251_v32 = vpop.f32.mrb[74].mxu0 }
 0xd96   : > { %v4252_v50 = vadd.f32 %v4822_v52, %v4251_v32  ;;  %v4253_v28 = vpop.f32.mrb[75].mxu0  ;;  %v4289_v32 = vrot.slane %v4280_v61, %v702_v6 }
 0xd97   : > { %v6073_v36 = vpop.eup %6072 }
 0xd98   : > { %6076 = vtanh.f32 %v4252_v50  ;;  %4829 = vmatmul.mubr.msk.f32.vlgmr.msra.gmra.mrb[82].mxu1 %vm1089_vm3, %v6073_v36 }
 0xd99   : > { %v4256_v42 = vpop.f32.mrb[76].mxu0  ;;  %4380 = vmatprep.mubr.f32.mxu1 %v6117_v3  ;;  %5801 = vmatpush3.bf16.msra.mxu1 %v5800_v53 }
 0xd9a   : > { %v4257_v44 = vadd.f32 %v4822_v52, %v4256_v42  ;;  %v4258_v46 = vpop.f32.mrb[77].mxu0  ;;  %5803 = vmatprep.subr.bf16.mxu1 %v5802_v58 }
 0xd9b   : > { %v6075_v11 = vpop.eup %6074 }
 0xd9c   : > { %6078 = vtanh.f32 %v4257_v44  ;;  %4830 = vmatmul.mubr.msk.f32.gmra.mrb[84].mxu1 %vm1089_vm3, %v6075_v11 }
 0xd9d   : > { %v4261_v62 = vpop.f32.mrb[78].mxu0  ;;  %4386 = vmatprep.mubr.f32.mxu1 %v6117_v3  ;;  %5805 = vmatpush3.bf16.msra.mxu1 %v5804_v55 }
 0xd9e   : > { %v4262_v48 = vadd.f32 %v4822_v52, %v4261_v62  ;;  %v4263_v18 = vpop.f32.mrb[79].mxu0  ;;  %5807 = vmatprep.subr.bf16.mxu1 %v5806_v59 }
 0xda0   : > { %6080 = vtanh.f32 %v4262_v48 }
 0xda1   : > { %v4266_v29 = vpop.f32.mrb[80].mxu0  ;;  %5809 = vmatpush3.bf16.msra.mxu1 %v5808_v35 }
 0xda2   : > { %v6077_v57 = vpop.eup %6076  ;;  %v4267_v9 = vadd.f32 %v4822_v52, %v4266_v29  ;;  %v4268_v40 = vpop.f32.mrb[81].mxu0  ;;  %5811 = vmatprep.subr.bf16.mxu1 %v5810_v49 }
 0xda3   : > { %4831 = vmatmul.mubr.msk.f32.gmra.mrb[86].mxu1 %vm1089_vm3, %v6077_v57 }
 0xda4   : > { %6082 = vtanh.f32 %v4267_v9  ;;  %4392 = vmatprep.mubr.f32.mxu1 %v6117_v3 }
 0xda5   : > { %5813 = vmatpush3.bf16.msra.mxu1 %v5812_v26 }
 0xda6   : > { %v6079_v63 = vpop.eup %6078  ;;  %5815 = vmatprep.subr.bf16.mxu1 %v5814_v12 }
 0xda7   : > { %4832 = vmatmul.mubr.msk.f32.gmra.mrb[88].mxu1 %vm1089_vm3, %v6079_v63 }
 0xda8   : > { %4398 = vmatprep.mubr.f32.mxu1 %v6117_v3 }
 0xda9   : > { %5817 = vmatpush3.bf16.msra.mxu1 %v5816_v30 }
 0xdaa   : > { %v6081_v33 = vpop.eup %6080  ;;  %5819 = vmatprep.subr.bf16.mxu1 %v5818_v7 }
 0xdab   : > { %4833 = vmatmul.mubr.msk.f32.gmra.mrb[90].mxu1 %vm1089_vm3, %v6081_v33 }
 0xdac   : > { %4404 = vmatprep.mubr.f32.mxu1 %v6117_v3  ;;  %v4454_v3 = vld [vmem:[%s7761_s20 + $0xf8] sm:$0xff] }
 0xdad   : > { %5821 = vmatpush3.bf16.msra.mxu1 %v5820_v10  ;;  %v5826_v23 = vpack.c.bf16 %v4454_v3, %v4453_v0 }
 0xdae   : > { %v6083_v52 = vpop.eup %6082  ;;  %5823 = vmatprep.subr.bf16.mxu1 %v5822_v8 }
 0xdaf   : > { %4834 = vmatmul.mubr.msk.f32.gmra.mrb[92].mxu1 %vm1089_vm3, %v6083_v52 }
 0xdb1   : > { %5825 = vmatpush3.bf16.msra.mxu1 %v5824_v39 }
 0xdb2   : > { %5827 = vmatprep.subr.bf16.mxu1 %v5826_v23 }
 0xdb5   : > { %5829 = vmatpush3.bf16.msra.mxu1 %v5828_v13 }
 0xe6b   : > { %v4376_v53 = vpop.f32.mrb[82].mxu1 }
 0xe6c   : > { %v4377_v50 = vadd.f32 %v4376_v53, %v4285_v24  ;;  %v4378_v28 = vpop.f32.mrb[83].mxu1 }
 0xe6d   : > { %v4379_v58 = vadd.f32 %v4378_v28, %v4289_v32 }
 0xe6e   : > { %v4411_v36 = vmax.f32 %v4377_v50, 0.0 }
 0xe6f   : > { %v4412_v37 = vmax.f32 %v4379_v58, 0.0  ;;  %v4382_v60 = vpop.f32.mrb[84].mxu1 }
 0xe70   : > { %v4383_v51 = vadd.f32 %v4382_v60, %v4285_v24  ;;  %v4384_v41 = vpop.f32.mrb[85].mxu1 }
 0xe71   : > { %v4385_v42 = vadd.f32 %v4384_v41, %v4289_v32  ;;  %4526 = vmatprep.mubr.f32.mxu1 %v4412_v37 }
 0xe72   : > { %4527 = vmatmul.mubr.f32.vlgmr.msra.gmra.mrb[94].mxu1 %v4411_v36  ;;  %v4413_v44 = vmax.f32 %v4383_v51, 0.0 }
 0xe73   : > { %v4414_v55 = vmax.f32 %v4385_v42, 0.0 }
 0xe75   : > { %4531 = vmatprep.mubr.f32.mxu1 %v4414_v55 }
 0xe76   : > { %v4388_v46 = vpop.f32.mrb[86].mxu1  ;;  %4532 = vmatmul.mubr.f32.gmra.mrb[96].mxu1 %v4413_v44 }
 0xe77   : > { %v4389_v4 = vadd.f32 %v4388_v46, %v4285_v24  ;;  %v4390_v2 = vpop.f32.mrb[87].mxu1 }
 0xe78   : > { %v4391_v6 = vadd.f32 %v4390_v2, %v4289_v32 }
 0xe79   : > { %v4415_v22 = vmax.f32 %v4389_v4, 0.0 }
 0xe7a   : > { %v4416_v59 = vmax.f32 %v4391_v6, 0.0  ;;  %v4394_v21 = vpop.f32.mrb[88].mxu1 }
 0xe7b   : > { %v4395_v11 = vadd.f32 %v4394_v21, %v4285_v24  ;;  %v4396_v14 = vpop.f32.mrb[89].mxu1 }
 0xe7c   : > { %v4397_v17 = vadd.f32 %v4396_v14, %v4289_v32  ;;  %4536 = vmatprep.mubr.f32.mxu1 %v4416_v59 }
 0xe7d   : > { %4537 = vmatmul.mubr.f32.gmra.mrb[98].mxu1 %v4415_v22  ;;  %v4417_v48 = vmax.f32 %v4395_v11, 0.0 }
 0xe7e   : > { %v4418_v62 = vmax.f32 %v4397_v17, 0.0  ;;  %v4400_v35 = vpop.f32.mrb[90].mxu1 }
 0xe7f   : > { %v4401_v18 = vadd.f32 %v4400_v35, %v4285_v24  ;;  %v4402_v49 = vpop.f32.mrb[91].mxu1 }
 0xe80   : > { %v4403_v54 = vadd.f32 %v4402_v49, %v4289_v32  ;;  %4541 = vmatprep.mubr.f32.mxu1 %v4418_v62 }
 0xe81   : > { %4542 = vmatmul.mubr.f32.gmra.mrb[100].mxu1 %v4417_v48  ;;  %v4419_v27 = vmax.f32 %v4401_v18, 0.0 }
 0xe82   : > { %v4420_v16 = vmax.f32 %v4403_v54, 0.0  ;;  %v4406_v1 = vpop.f32.mrb[92].mxu1 }
 0xe83   : > { %v4407_v29 = vadd.f32 %v4406_v1, %v4285_v24  ;;  %v4408_v26 = vpop.f32.mrb[93].mxu1 }
 0xe84   : > { %v4409_v57 = vadd.f32 %v4408_v26, %v4289_v32  ;;  %4546 = vmatprep.mubr.f32.mxu1 %v4420_v16 }
 0xe85   : > { %4547 = vmatmul.mubr.f32.gmra.mrb[102].mxu1 %v4419_v27  ;;  %v4421_v40 = vmax.f32 %v4407_v29, 0.0 }
 0xe86   : > { %v4422_v9 = vmax.f32 %v4409_v57, 0.0 }
 0xe88   : > { %4551 = vmatprep.mubr.f32.mxu1 %v4422_v9 }
 0xe89   : > { %4552 = vmatmul.mubr.f32.gmra.mrb[104].mxu1 %v4421_v40 }
 0xf45   : > { %v5126_v12 = vpop.f32.mrb[94].mxu1 }
 0xf46   : > { %v5127_v5 = vpop.f32.mrb[95].mxu1 }
 0xf47   : > { %v5128_v34 = vadd.f32 %v5127_v5, %v5126_v12 }
 0xf49   : > { %v4529_v45 = vadd.f32 %v5128_v34, %v4835_v15  ;;  %v5129_v30 = vpop.f32.mrb[96].mxu1 }
 0xf4a   : > { %v5130_v63 = vpop.f32.mrb[97].mxu1 }
 0xf4b   : > { %4557 = vst.msk [vmem:[%s685_s26] sm:$0xff] %vm708_vm1, %v4529_v45  ;;  %v5131_v7 = vadd.f32 %v5130_v63, %v5129_v30 }
 0xf4d   : > { %v4534_v19 = vadd.f32 %v5131_v7, %v4835_v15 }
 0xf4f   : > { %4558 = vst.msk [vmem:[%s685_s26 + $0x8] sm:$0xff] %vm708_vm1, %v4534_v19 }
 0xf50   : > { %v5132_v25 = vpop.f32.mrb[98].mxu1 }
 0xf51   : > { %v5133_v38 = vpop.f32.mrb[99].mxu1 }
 0xf52   : > { %v5134_v56 = vadd.f32 %v5133_v38, %v5132_v25 }
 0xf54   : > { %v4539_v10 = vadd.f32 %v5134_v56, %v4835_v15  ;;  %v5135_v33 = vpop.f32.mrb[100].mxu1 }
 0xf55   : > { %v5136_v8 = vpop.f32.mrb[101].mxu1 }
 0xf56   : > { %4559 = vst.msk [vmem:[%s685_s26 + $0x10] sm:$0xff] %vm708_vm1, %v4539_v10  ;;  %v5137_v52 = vadd.f32 %v5136_v8, %v5135_v33 }
 0xf58   : > { %v4544_v20 = vadd.f32 %v5137_v52, %v4835_v15  ;;  %v5138_v47 = vpop.f32.mrb[102].mxu1 }
 0xf59   : > { %v5139_v39 = vpop.f32.mrb[103].mxu1 }
 0xf5a   : > { %4560 = vst.msk [vmem:[%s685_s26 + $0x18] sm:$0xff] %vm708_vm1, %v4544_v20  ;;  %v5140_v0 = vadd.f32 %v5139_v39, %v5138_v47 }
 0xf5c   : > { %v4549_v3 = vadd.f32 %v5140_v0, %v4835_v15  ;;  %v5141_v23 = vpop.f32.mrb[104].mxu1 }
 0xf5d   : > { %v5142_v43 = vpop.f32.mrb[105].mxu1 }
 0xf5e   : > { %4561 = vst.msk [vmem:[%s685_s26 + $0x20] sm:$0xff] %vm708_vm1, %v4549_v3  ;;  %v5143_v31 = vadd.f32 %v5142_v43, %v5141_v23 }
 0xf60   : > { %v4554_v13 = vadd.f32 %v5143_v31, %v4835_v15 }
 0xf62   : > { %4562 = vst.msk [vmem:[%s685_s26 + $0x28] sm:$0xff] %vm708_vm1, %v4554_v13 }
 0xf63 PF: > { %s7806_s0 = sld [smem:[#allocation2_spill]] }
 0xf69   : > { %s32_s3 = sadd.s32 1, %s7806_s0  }
 0xf6a   : > { %p29_p4 = scmp.ge.s32.totalorder %s32_s3, 4  }
 0xf6c   :  { %31 = sbr.rel (!%p29_p4) target bundleno = 12 (0xc), region = 148 }

</bundles_post_ra>
